<compile_context>
chip_gen: v7x
topology: tpu7x:2x2x1
jax: 0.10.0
libtpu: 0.0.40
codegen_flags: <defaults>
</compile_context>

<pallas_src>
import jax
import jax.numpy as jnp
from jax import lax
from jax.experimental import pallas as pl
from jax.experimental.pallas import tpu as pltpu


# ---------------------------------------------------------------------------
# The fused inception kernel: one (batch, frame) tile per grid step.
# ---------------------------------------------------------------------------
def _inception_kernel(xc_ref, xn_ref,
                      wpw_ref, bpw_ref, wsp_ref, bsp_ref, w3_ref, b3_ref,
                      o_ref,
                      ypad_ref, ppad_ref, sp_prev_ref, sp_curr_ref):
    """Shapes per grid step (channels-last):

      xc/xn    : (1, 1, H, W, Cin) f32  frames t / t+1 (t+1 clamped at the end
                                        of the clip and masked to zero padding)
      wpw      : (Cin, Cpw)   bf16      [w0*s0 | w1a*s1a | w2a*s2a]
      bpw      : (1, Cpw)     f32
      wsp      : (9*Csp, c2+c4) bf16    block-diag b1b/b2b taps, im2col layout
      bsp      : (1, c2+c4)   f32
      w3       : (Cin, c5)    bf16      pool-branch 1x1 (scale folded)
      b3       : (1, c5)      f32
      o_ref    : (1, 1, H, W, Ctot) f32
      ypad_ref : VMEM (H+2, W+2, Csp) f32   zero-padded b1a/b2a activations
      ppad_ref : VMEM (H+2, W+2, Cin) f32   zero-padded frame for spatial max
      sp_prev  : VMEM (H, W, Cin) f32       spatialmax3x3(x[t-1])  (carried)
      sp_curr  : VMEM (H, W, Cin) f32       spatialmax3x3(x[t])    (carried)
    """
    H, W = o_ref.shape[2], o_ref.shape[3]
    cin = xc_ref.shape[4]
    cpw = wpw_ref.shape[1]
    csp = ypad_ref.shape[2]
    c0 = cpw - csp
    ctot = o_ref.shape[4]

    t = pl.program_id(1)
    nt = pl.num_programs(1)

    def spatial_max(v):
        """3x3 stride-1 zero-padded spatial max of one (H, W, Cin) frame."""
        ppad_ref[1:H + 1, 1:W + 1, :] = v
        wmax = jnp.maximum(jnp.maximum(ppad_ref[:, 0:W, :],
                                       ppad_ref[:, 1:W + 1, :]),
                           ppad_ref[:, 2:W + 2, :])           # (H+2, W, Cin)
        return jnp.maximum(jnp.maximum(wmax[0:H], wmax[1:H + 1]),
                           wmax[2:H + 2])                     # (H, W, Cin)

    x_c = xc_ref[0, 0]                                        # (H, W, Cin)

    # ---- per-sequence init: zero padded scratches once, prime the ring -----
    # (runs at t == 0 of every clip on every core, so it is megacore-safe; the
    #  pad borders are never overwritten afterwards.)
    @pl.when(t == 0)
    def _():
        ypad_ref[...] = jnp.zeros(ypad_ref.shape, ypad_ref.dtype)
        ppad_ref[...] = jnp.zeros(ppad_ref.shape, ppad_ref.dtype)
        sp_prev_ref[...] = jnp.zeros(sp_prev_ref.shape, sp_prev_ref.dtype)
        sp_curr_ref[...] = spatial_max(x_c)

    # ---- Stage 1: fused 1x1x1 convs (b0 | b1a | b2a): one (H*W, Cin) matmul -
    x2d = x_c.reshape(H * W, cin)
    pw = jnp.dot(x2d.astype(jnp.bfloat16), wpw_ref[...],
                 preferred_element_type=jnp.float32)          # (H*W, Cpw)
    pw = jnp.maximum(pw + bpw_ref[...], 0.0)
    b0_out = pw[:, :c0]                                       # branch 0, done

    # ---- Stage 2: im2col 1x3x3 conv for b1b | b2b (single MXU pass) ---------
    ypad_ref[1:H + 1, 1:W + 1, :] = pw[:, c0:].reshape(H, W, csp)
    taps = [ypad_ref[dh:dh + H, dw:dw + W, :]
            for dh in range(3) for dw in range(3)]            # 9 x (H, W, Csp)
    im2col = jnp.concatenate(taps, axis=2).reshape(H * W, 9 * csp)
    b12 = jnp.dot(im2col.astype(jnp.bfloat16), wsp_ref[...],
                  preferred_element_type=jnp.float32)
    b12 = jnp.maximum(b12 + bsp_ref[...], 0.0)                # (H*W, c2+c4)

    # ---- Stage 3: 3x3x3 max pool (separable; temporal via carried ring) -----
    next_ok = (t < nt - 1).astype(jnp.float32)                # zero plane = pad
    sp_next = spatial_max(xn_ref[0, 0]) * next_ok
    pooled = jnp.maximum(jnp.maximum(sp_prev_ref[...], sp_curr_ref[...]),
                         sp_next)                             # (H, W, Cin)
    b3 = jnp.dot(pooled.reshape(H * W, cin).astype(jnp.bfloat16), w3_ref[...],
                 preferred_element_type=jnp.float32)
    b3 = jnp.maximum(b3 + b3_ref[...], 0.0)                   # (H*W, c5)

    # rotate the spatial-max ring for the next frame
    sp_prev_ref[...] = sp_curr_ref[...]
    sp_curr_ref[...] = sp_next

    # ---- single lane-dense store of all four branches ----------------------
    out = jnp.concatenate([b0_out, b12, b3], axis=1)          # (H*W, Ctot)
    o_ref[0, 0] = out.reshape(H, W, ctot).astype(o_ref.dtype)


# ---------------------------------------------------------------------------
# Wrapper-side parameter fusion: fold BN scales into conv weights, fuse the
# branches, pre-reshape the spatial weights to im2col layout, cast to bf16.
# ---------------------------------------------------------------------------
def _prep_params(params):
    w0, s0, o0 = params["b0"]
    w1a, s1a, o1a = params["b1a"]
    w1b, s1b, o1b = params["b1b"]
    w2a, s2a, o2a = params["b2a"]
    w2b, s2b, o2b = params["b2b"]
    w3b, s3b, o3b = params["b3b"]

    c0, c1, c2 = w0.shape[1], w1a.shape[1], w1b.shape[-1]
    c3, c4, c5 = w2a.shape[1], w2b.shape[-1], w3b.shape[1]
    csp, cout_sp = c1 + c3, c2 + c4

    # Stage-1 fused pointwise weights (scales folded): x @ [w0' | w1a' | w2a'].
    wpw = jnp.concatenate([w0 * s0, w1a * s1a, w2a * s2a],
                          axis=1).astype(jnp.bfloat16)            # (Cin, Cpw)
    bpw = jnp.concatenate([o0, o1a, o2a], axis=1)                 # (1, Cpw)

    # Block-diagonal 1x3x3 weights (c1+c3 -> c2+c4) in im2col layout.
    wsp = jnp.zeros((3, 3, csp, cout_sp), jnp.float32)
    wsp = wsp.at[:, :, 0:c1, 0:c2].set(w1b * s1b)
    wsp = wsp.at[:, :, c1:csp, c2:cout_sp].set(w2b * s2b)
    wsp2d = wsp.reshape(9 * csp, cout_sp).astype(jnp.bfloat16)    # (9*Csp, .)
    bsp = jnp.concatenate([o1b, o2b], axis=1)                     # (1, c2+c4)

    # Pool-branch 1x1 (scale folded).
    w3 = (w3b * s3b).astype(jnp.bfloat16)                         # (Cin, c5)
    b3 = o3b                                                      # (1, c5)

    return (wpw, bpw, wsp2d, bsp, w3, b3), (c0, c1, c2, c3, c4, c5)


# ---------------------------------------------------------------------------
# Channels-last core.  Production callers should stay NTHWC end-to-end; the
# NCTHW wrapper below only exists to match the PyTorch layout.
# ---------------------------------------------------------------------------
@jax.jit
def spatial_inception_forward_ndhwc(x, params):
    """x: (N, T, H, W, Cin) f32, channels-last. Returns (N, T, H, W, Ctot)."""
    N, T, H, W, Cin = x.shape
    (wpw, bpw, wsp2d, bsp, w3, b3), dims = _prep_params(params)
    c0, c1, c2, c3, c4, c5 = dims
    csp = c1 + c3
    ctot = c0 + c2 + c4 + c5

    x_blk = (1, 1, H, W, Cin)
    x_curr_spec = pl.BlockSpec(x_blk, lambda n, t: (n, t, 0, 0, 0))
    x_next_spec = pl.BlockSpec(
        x_blk, lambda n, t: (n, jnp.minimum(t + 1, T - 1), 0, 0, 0))

    out = pl.pallas_call(
        _inception_kernel,
        out_shape=jax.ShapeDtypeStruct((N, T, H, W, ctot), jnp.float32),
        grid_spec=pltpu.PrefetchScalarGridSpec(
            num_scalar_prefetch=0,
            grid=(N, T),
            in_specs=[
                x_curr_spec, x_next_spec,
                pl.BlockSpec(wpw.shape, lambda n, t: (0, 0)),
                pl.BlockSpec(bpw.shape, lambda n, t: (0, 0)),
                pl.BlockSpec(wsp2d.shape, lambda n, t: (0, 0)),
                pl.BlockSpec(bsp.shape, lambda n, t: (0, 0)),
                pl.BlockSpec(w3.shape, lambda n, t: (0, 0)),
                pl.BlockSpec(b3.shape, lambda n, t: (0, 0)),
            ],
            out_specs=pl.BlockSpec((1, 1, H, W, ctot),
                                   lambda n, t: (n, t, 0, 0, 0)),
            scratch_shapes=[
                pltpu.VMEM((H + 2, W + 2, csp), jnp.float32),   # ypad
                pltpu.VMEM((H + 2, W + 2, Cin), jnp.float32),   # ppad
                pltpu.VMEM((H, W, Cin), jnp.float32),           # sp_prev
                pltpu.VMEM((H, W, Cin), jnp.float32),           # sp_curr
            ],
        ),
        compiler_params=pltpu.CompilerParams(
            # T carries the spatial-max ring state -> must stay sequential.
            dimension_semantics=("parallel", "arbitrary"),
            vmem_limit_bytes=64 * 1024 * 1024,
        ),
    )(x, x, wpw, bpw, wsp2d, bsp, w3, b3)
    return out


@jax.jit
def spatial_inception_forward(x_ncthw, params):
    """PyTorch-layout (NCTHW) convenience wrapper around the NTHWC core."""
    x = jnp.transpose(x_ncthw, (0, 2, 3, 4, 1))               # (N, T, H, W, C)
    out = spatial_inception_forward_ndhwc(x, params)
    return jnp.transpose(out, (0, 4, 1, 2, 3))                # (N, Ctot, T, H, W)


# ---------------------------------------------------------------------------
# Parameter init (deterministic): conv weight + BN folded to (scale, bias).
# ---------------------------------------------------------------------------
def _unit_params(key, cin, cout, spatial3):
    kw, kg, kb, km, kv = jax.random.split(key, 5)
    if spatial3:
        w = 0.1 * jax.random.normal(kw, (3, 3, cin, cout), jnp.float32)
    else:
        w = 0.1 * jax.random.normal(kw, (cin, cout), jnp.float32)
    gamma = 1.0 + 0.1 * jax.random.normal(kg, (cout,), jnp.float32)
    beta = 0.1 * jax.random.normal(kb, (cout,), jnp.float32)
    running_mean = 0.1 * jax.random.normal(km, (cout,), jnp.float32)
    running_var = jnp.abs(jax.random.normal(kv, (cout,), jnp.float32)) + 1.0
    eps = 1e-3
    scale = gamma / jnp.sqrt(running_var + eps)
    bias = beta - running_mean * scale
    return w, scale.reshape(1, cout), bias.reshape(1, cout)


def init_inception_params(key, in_channels, out_channels):
    ks = jax.random.split(key, 6)
    return {
        "b0":  _unit_params(ks[0], in_channels,     out_channels[0], False),
        "b1a": _unit_params(ks[1], in_channels,     out_channels[1], False),
        "b1b": _unit_params(ks[2], out_channels[1], out_channels[2], True),
        "b2a": _unit_params(ks[3], in_channels,     out_channels[3], False),
        "b2b": _unit_params(ks[4], out_channels[3], out_channels[4], True),
        "b3b": _unit_params(ks[5], in_channels,     out_channels[5], False),
    }


# ---------------------------------------------------------------------------
# Pure-JAX (XLA) reference at matching precision: operands rounded to bf16
# exactly where the kernel rounds them, f32 accumulation, HIGHEST precision.
# ---------------------------------------------------------------------------
def ref_forward(x, params):
    q = lambda a: a.astype(jnp.bfloat16).astype(jnp.float32)

    def conv1x1(v, w, s, o):
        y = jnp.einsum("ncthw,cd->ndthw", q(v), q(w * s),
                       precision=lax.Precision.HIGHEST)
        return jnp.maximum(y + o.reshape(1, -1, 1, 1, 1), 0.0)

    def conv3x3(v, w, s, o):
        w_oi = jnp.transpose(q(w * s), (3, 2, 0, 1))[:, :, None, :, :]
        y = lax.conv_general_dilated(
            q(v), w_oi, (1, 1, 1), [(0, 0), (1, 1), (1, 1)],
            dimension_numbers=("NCDHW", "OIDHW", "NCDHW"),
            precision=lax.Precision.HIGHEST)
        return jnp.maximum(y + o.reshape(1, -1, 1, 1, 1), 0.0)

    def maxpool(v):  # zero-pad then VALID max == PyTorch F.pad + MaxPool3d
        vp = jnp.pad(v, ((0, 0), (0, 0), (1, 1), (1, 1), (1, 1)))
        return lax.reduce_window(vp, -jnp.inf, lax.max,
                                 (1, 1, 3, 3, 3), (1, 1, 1, 1, 1), "VALID")

    b0 = conv1x1(x, *params["b0"])
    b1 = conv3x3(conv1x1(x, *params["b1a"]), *params["b1b"])
    b2 = conv3x3(conv1x1(x, *params["b2a"]), *params["b2b"])
    b3 = conv1x1(maxpool(x), *params["b3b"])
    return jnp.concatenate([b0, b1, b2, b3], axis=1)


if __name__ == "__main__":
    key = jax.random.PRNGKey(0)
    k_x, k_p = jax.random.split(key)

    N, Cin, T, H, W = 2, 4, 4, 16, 16
    out_channels = [8, 6, 8, 6, 8, 8]   # concat -> 8 + 8 + 8 + 8 = 32 channels

    x = jax.random.normal(k_x, (N, Cin, T, H, W), jnp.float32)
    params = init_inception_params(k_p, Cin, out_channels)

    out = jax.block_until_ready(spatial_inception_forward(x, params))
    ref = jax.block_until_ready(ref_forward(x, params))

    ctot = (out_channels[0] + out_channels[2]
            + out_channels[4] + out_channels[5])
    assert out.shape == (N, ctot, T, H, W), out.shape

    # Kernel and reference both use bf16-rounded MXU operands with f32
    # accumulation, so only summation order differs.
    max_err = float(jnp.max(jnp.abs(out - ref)))
    assert jnp.allclose(out, ref, atol=5e-3, rtol=5e-3), max_err

    print("KERNEL_OK")
</pallas_src>

<mosaic_0001>
module attributes {stable_mosaic.version = 11 : i64} {
  func.func @_inception_kernel(%arg0: i32, %arg1: i32, %arg2: memref<1x1x16x16x4xf32, #tpu.memory_space<vmem>>, %arg3: memref<1x1x16x16x4xf32, #tpu.memory_space<vmem>>, %arg4: memref<4x20xbf16, #tpu.memory_space<vmem>>, %arg5: memref<1x20xf32, #tpu.memory_space<vmem>>, %arg6: memref<108x16xbf16, #tpu.memory_space<vmem>>, %arg7: memref<1x16xf32, #tpu.memory_space<vmem>>, %arg8: memref<4x8xbf16, #tpu.memory_space<vmem>>, %arg9: memref<1x8xf32, #tpu.memory_space<vmem>>, %arg10: memref<1x1x16x16x32xf32, #tpu.memory_space<vmem>>, %arg11: memref<18x18x12xf32, #tpu.memory_space<vmem>>, %arg12: memref<18x18x4xf32, #tpu.memory_space<vmem>>, %arg13: memref<16x16x4xf32, #tpu.memory_space<vmem>>, %arg14: memref<16x16x4xf32, #tpu.memory_space<vmem>>) attributes {dimension_semantics = [#tpu.dimension_semantics<parallel>, #tpu.dimension_semantics<arbitrary>], iteration_bounds = array<i64: 2, 4>, scalar_prefetch = 0 : i64, scratch_operands = 4 : i64, tpu.core_type = #tpu.core_type<tc>, window_params = [{transform_indices = @transform_0, window_bounds = array<i64: 1, 1, 16, 16, 4>}, {transform_indices = @transform_1, window_bounds = array<i64: 1, 1, 16, 16, 4>}, {pipeline_mode = #tpu.pipeline_mode<synchronous>, transform_indices = @transform_2, window_bounds = array<i64: 4, 20>}, {pipeline_mode = #tpu.pipeline_mode<synchronous>, transform_indices = @transform_3, window_bounds = array<i64: 1, 20>}, {pipeline_mode = #tpu.pipeline_mode<synchronous>, transform_indices = @transform_4, window_bounds = array<i64: 108, 16>}, {pipeline_mode = #tpu.pipeline_mode<synchronous>, transform_indices = @transform_5, window_bounds = array<i64: 1, 16>}, {pipeline_mode = #tpu.pipeline_mode<synchronous>, transform_indices = @transform_6, window_bounds = array<i64: 4, 8>}, {pipeline_mode = #tpu.pipeline_mode<synchronous>, transform_indices = @transform_7, window_bounds = array<i64: 1, 8>}, {transform_indices = @transform_8, window_bounds = array<i64: 1, 1, 16, 16, 32>}]} {
    %c0 = arith.constant 0 : index
    %c0_0 = arith.constant 0 : index
    %c0_1 = arith.constant 0 : index
    %c0_2 = arith.constant 0 : index
    %c0_3 = arith.constant 0 : index
    %0 = vector.load %arg2[%c0, %c0_0, %c0_1, %c0_2, %c0_3] : memref<1x1x16x16x4xf32, #tpu.memory_space<vmem>>, vector<1x1x16x16x4xf32>
    %1 = vector.shape_cast %0 : vector<1x1x16x16x4xf32> to vector<16x16x4xf32>
    %c0_i32 = arith.constant 0 : i32
    %2 = arith.cmpi eq, %arg1, %c0_i32 : i32
    %3 = arith.extui %2 : i1 to i32
    %c0_i32_4 = arith.constant 0 : i32
    %4 = arith.cmpi ne, %3, %c0_i32_4 : i32
    scf.if %4 {
      %cst_87 = arith.constant 0.000000e+00 : f32
      %76 = vector.broadcast %cst_87 : f32 to vector<18x18x12xf32>
      %c0_88 = arith.constant 0 : index
      %c0_89 = arith.constant 0 : index
      %c0_90 = arith.constant 0 : index
      %77 = vector.load %arg11[%c0_88, %c0_89, %c0_90] : memref<18x18x12xf32, #tpu.memory_space<vmem>>, vector<18x18x12xf32>
      tpu.vector_store %arg11[%c0_88, %c0_89, %c0_90], %76 {strides = array<i32>} : memref<18x18x12xf32, #tpu.memory_space<vmem>>, vector<18x18x12xf32>,
      %cst_91 = arith.constant 0.000000e+00 : f32
      %78 = vector.broadcast %cst_91 : f32 to vector<18x18x4xf32>
      %c0_92 = arith.constant 0 : index
      %c0_93 = arith.constant 0 : index
      %c0_94 = arith.constant 0 : index
      %79 = vector.load %arg12[%c0_92, %c0_93, %c0_94] : memref<18x18x4xf32, #tpu.memory_space<vmem>>, vector<18x18x4xf32>
      tpu.vector_store %arg12[%c0_92, %c0_93, %c0_94], %78 {strides = array<i32>} : memref<18x18x4xf32, #tpu.memory_space<vmem>>, vector<18x18x4xf32>,
      %cst_95 = arith.constant 0.000000e+00 : f32
      %80 = vector.broadcast %cst_95 : f32 to vector<16x16x4xf32>
      %c0_96 = arith.constant 0 : index
      %c0_97 = arith.constant 0 : index
      %c0_98 = arith.constant 0 : index
      %81 = vector.load %arg13[%c0_96, %c0_97, %c0_98] : memref<16x16x4xf32, #tpu.memory_space<vmem>>, vector<16x16x4xf32>
      tpu.vector_store %arg13[%c0_96, %c0_97, %c0_98], %80 {strides = array<i32>} : memref<16x16x4xf32, #tpu.memory_space<vmem>>, vector<16x16x4xf32>,
      %c1_99 = arith.constant 1 : index
      %c1_100 = arith.constant 1 : index
      %c0_101 = arith.constant 0 : index
      %82 = vector.load %arg12[%c1_99, %c1_100, %c0_101] : memref<18x18x4xf32, #tpu.memory_space<vmem>>, vector<16x16x4xf32>
      tpu.vector_store %arg12[%c1_99, %c1_100, %c0_101], %1 {strides = array<i32>} : memref<18x18x4xf32, #tpu.memory_space<vmem>>, vector<16x16x4xf32>,
      %c0_102 = arith.constant 0 : index
      %c0_103 = arith.constant 0 : index
      %c0_104 = arith.constant 0 : index
      %83 = vector.load %arg12[%c0_102, %c0_103, %c0_104] : memref<18x18x4xf32, #tpu.memory_space<vmem>>, vector<18x16x4xf32>
      %c0_105 = arith.constant 0 : index
      %c1_106 = arith.constant 1 : index
      %c0_107 = arith.constant 0 : index
      %84 = vector.load %arg12[%c0_105, %c1_106, %c0_107] : memref<18x18x4xf32, #tpu.memory_space<vmem>>, vector<18x16x4xf32>
      %85 = arith.maximumf %83, %84 : vector<18x16x4xf32>
      %c0_108 = arith.constant 0 : index
      %c2_109 = arith.constant 2 : index
      %c0_110 = arith.constant 0 : index
      %86 = vector.load %arg12[%c0_108, %c2_109, %c0_110] : memref<18x18x4xf32, #tpu.memory_space<vmem>>, vector<18x16x4xf32>
      %87 = arith.maximumf %85, %86 : vector<18x16x4xf32>
      %88 = vector.extract_strided_slice %87 {offsets = [0, 0, 0], sizes = [16, 16, 4], strides = [1, 1, 1]} : vector<18x16x4xf32> to vector<16x16x4xf32>
      %89 = vector.extract_strided_slice %87 {offsets = [1, 0, 0], sizes = [16, 16, 4], strides = [1, 1, 1]} : vector<18x16x4xf32> to vector<16x16x4xf32>
      %90 = arith.maximumf %88, %89 : vector<16x16x4xf32>
      %91 = vector.extract_strided_slice %87 {offsets = [2, 0, 0], sizes = [16, 16, 4], strides = [1, 1, 1]} : vector<18x16x4xf32> to vector<16x16x4xf32>
      %92 = arith.maximumf %90, %91 : vector<16x16x4xf32>
      %c0_111 = arith.constant 0 : index
      %c0_112 = arith.constant 0 : index
      %c0_113 = arith.constant 0 : index
      %93 = vector.load %arg14[%c0_111, %c0_112, %c0_113] : memref<16x16x4xf32, #tpu.memory_space<vmem>>, vector<16x16x4xf32>
      tpu.vector_store %arg14[%c0_111, %c0_112, %c0_113], %92 {strides = array<i32>} : memref<16x16x4xf32, #tpu.memory_space<vmem>>, vector<16x16x4xf32>,
    } else {
    }
    %5 = vector.shape_cast %1 : vector<16x16x4xf32> to vector<256x4xf32>
    %6 = arith.truncf %5 : vector<256x4xf32> to vector<256x4xbf16>
    %c0_5 = arith.constant 0 : index
    %c0_6 = arith.constant 0 : index
    %7 = vector.load %arg4[%c0_5, %c0_6] : memref<4x20xbf16, #tpu.memory_space<vmem>>, vector<4x20xbf16>
    %cst = arith.constant dense<0.000000e+00> : vector<256x20xf32>
    %8 = tpu.matmul %6, %7, %cst {dimension_numbers = #tpu.dot_dimension_numbers<[1], [0], [0], [1], [0, 0, 1, 1], [], []>} : vector<256x4xbf16>, vector<4x20xbf16>, vector<256x20xf32> -> vector<256x20xf32>
    %c0_7 = arith.constant 0 : index
    %c0_8 = arith.constant 0 : index
    %9 = vector.load %arg5[%c0_7, %c0_8] : memref<1x20xf32, #tpu.memory_space<vmem>>, vector<1x20xf32>
    %10 = vector.broadcast %9 : vector<1x20xf32> to vector<256x20xf32>
    %11 = arith.addf %8, %10 : vector<256x20xf32>
    %cst_9 = arith.constant 0.000000e+00 : f32
    %12 = vector.broadcast %cst_9 : f32 to vector<256x20xf32>
    %13 = arith.maximumf %11, %12 : vector<256x20xf32>
    %14 = vector.extract_strided_slice %13 {offsets = [0, 0], sizes = [256, 8], strides = [1, 1]} : vector<256x20xf32> to vector<256x8xf32>
    %15 = vector.extract_strided_slice %13 {offsets = [0, 8], sizes = [256, 12], strides = [1, 1]} : vector<256x20xf32> to vector<256x12xf32>
    %16 = vector.shape_cast %15 : vector<256x12xf32> to vector<16x16x12xf32>
    %c1 = arith.constant 1 : index
    %c1_10 = arith.constant 1 : index
    %c0_11 = arith.constant 0 : index
    %17 = vector.load %arg11[%c1, %c1_10, %c0_11] : memref<18x18x12xf32, #tpu.memory_space<vmem>>, vector<16x16x12xf32>
    tpu.vector_store %arg11[%c1, %c1_10, %c0_11], %16 {strides = array<i32>} : memref<18x18x12xf32, #tpu.memory_space<vmem>>, vector<16x16x12xf32>,
    %c0_12 = arith.constant 0 : index
    %c0_13 = arith.constant 0 : index
    %c0_14 = arith.constant 0 : index
    %18 = vector.load %arg11[%c0_12, %c0_13, %c0_14] : memref<18x18x12xf32, #tpu.memory_space<vmem>>, vector<16x16x12xf32>
    %c0_15 = arith.constant 0 : index
    %c1_16 = arith.constant 1 : index
    %c0_17 = arith.constant 0 : index
    %19 = vector.load %arg11[%c0_15, %c1_16, %c0_17] : memref<18x18x12xf32, #tpu.memory_space<vmem>>, vector<16x16x12xf32>
    %c0_18 = arith.constant 0 : index
    %c2 = arith.constant 2 : index
    %c0_19 = arith.constant 0 : index
    %20 = vector.load %arg11[%c0_18, %c2, %c0_19] : memref<18x18x12xf32, #tpu.memory_space<vmem>>, vector<16x16x12xf32>
    %c1_20 = arith.constant 1 : index
    %c0_21 = arith.constant 0 : index
    %c0_22 = arith.constant 0 : index
    %21 = vector.load %arg11[%c1_20, %c0_21, %c0_22] : memref<18x18x12xf32, #tpu.memory_space<vmem>>, vector<16x16x12xf32>
    %c1_23 = arith.constant 1 : index
    %c1_24 = arith.constant 1 : index
    %c0_25 = arith.constant 0 : index
    %22 = vector.load %arg11[%c1_23, %c1_24, %c0_25] : memref<18x18x12xf32, #tpu.memory_space<vmem>>, vector<16x16x12xf32>
    %c1_26 = arith.constant 1 : index
    %c2_27 = arith.constant 2 : index
    %c0_28 = arith.constant 0 : index
    %23 = vector.load %arg11[%c1_26, %c2_27, %c0_28] : memref<18x18x12xf32, #tpu.memory_space<vmem>>, vector<16x16x12xf32>
    %c2_29 = arith.constant 2 : index
    %c0_30 = arith.constant 0 : index
    %c0_31 = arith.constant 0 : index
    %24 = vector.load %arg11[%c2_29, %c0_30, %c0_31] : memref<18x18x12xf32, #tpu.memory_space<vmem>>, vector<16x16x12xf32>
    %c2_32 = arith.constant 2 : index
    %c1_33 = arith.constant 1 : index
    %c0_34 = arith.constant 0 : index
    %25 = vector.load %arg11[%c2_32, %c1_33, %c0_34] : memref<18x18x12xf32, #tpu.memory_space<vmem>>, vector<16x16x12xf32>
    %c2_35 = arith.constant 2 : index
    %c2_36 = arith.constant 2 : index
    %c0_37 = arith.constant 0 : index
    %26 = vector.load %arg11[%c2_35, %c2_36, %c0_37] : memref<18x18x12xf32, #tpu.memory_space<vmem>>, vector<16x16x12xf32>
    %27 = tpu.concatenate %18, %19, %20, %21, %22, %23, %24, %25, %26 in 2 : vector<16x16x12xf32>, vector<16x16x12xf32>, vector<16x16x12xf32>, vector<16x16x12xf32>, vector<16x16x12xf32>, vector<16x16x12xf32>, vector<16x16x12xf32>, vector<16x16x12xf32>, vector<16x16x12xf32> -> vector<16x16x108xf32>
    %28 = vector.shape_cast %27 : vector<16x16x108xf32> to vector<256x108xf32>
    %29 = arith.truncf %28 : vector<256x108xf32> to vector<256x108xbf16>
    %c0_38 = arith.constant 0 : index
    %c0_39 = arith.constant 0 : index
    %30 = vector.load %arg6[%c0_38, %c0_39] : memref<108x16xbf16, #tpu.memory_space<vmem>>, vector<108x16xbf16>
    %cst_40 = arith.constant dense<0.000000e+00> : vector<256x16xf32>
    %31 = tpu.matmul %29, %30, %cst_40 {dimension_numbers = #tpu.dot_dimension_numbers<[1], [0], [0], [1], [0, 0, 1, 1], [], []>} : vector<256x108xbf16>, vector<108x16xbf16>, vector<256x16xf32> -> vector<256x16xf32>
    %c0_41 = arith.constant 0 : index
    %c0_42 = arith.constant 0 : index
    %32 = vector.load %arg7[%c0_41, %c0_42] : memref<1x16xf32, #tpu.memory_space<vmem>>, vector<1x16xf32>
    %33 = vector.broadcast %32 : vector<1x16xf32> to vector<256x16xf32>
    %34 = arith.addf %31, %33 : vector<256x16xf32>
    %cst_43 = arith.constant 0.000000e+00 : f32
    %35 = vector.broadcast %cst_43 : f32 to vector<256x16xf32>
    %36 = arith.maximumf %34, %35 : vector<256x16xf32>
    %c3_i32 = arith.constant 3 : i32
    %37 = arith.cmpi slt, %arg1, %c3_i32 : i32
    %38 = arith.extui %37 : i1 to i32
    %39 = arith.sitofp %38 : i32 to f32
    %c0_44 = arith.constant 0 : index
    %c0_45 = arith.constant 0 : index
    %c0_46 = arith.constant 0 : index
    %c0_47 = arith.constant 0 : index
    %c0_48 = arith.constant 0 : index
    %40 = vector.load %arg3[%c0_44, %c0_45, %c0_46, %c0_47, %c0_48] : memref<1x1x16x16x4xf32, #tpu.memory_space<vmem>>, vector<1x1x16x16x4xf32>
    %41 = vector.shape_cast %40 : vector<1x1x16x16x4xf32> to vector<16x16x4xf32>
    %c1_49 = arith.constant 1 : index
    %c1_50 = arith.constant 1 : index
    %c0_51 = arith.constant 0 : index
    %42 = vector.load %arg12[%c1_49, %c1_50, %c0_51] : memref<18x18x4xf32, #tpu.memory_space<vmem>>, vector<16x16x4xf32>
    tpu.vector_store %arg12[%c1_49, %c1_50, %c0_51], %41 {strides = array<i32>} : memref<18x18x4xf32, #tpu.memory_space<vmem>>, vector<16x16x4xf32>,
    %c0_52 = arith.constant 0 : index
    %c0_53 = arith.constant 0 : index
    %c0_54 = arith.constant 0 : index
    %43 = vector.load %arg12[%c0_52, %c0_53, %c0_54] : memref<18x18x4xf32, #tpu.memory_space<vmem>>, vector<18x16x4xf32>
    %c0_55 = arith.constant 0 : index
    %c1_56 = arith.constant 1 : index
    %c0_57 = arith.constant 0 : index
    %44 = vector.load %arg12[%c0_55, %c1_56, %c0_57] : memref<18x18x4xf32, #tpu.memory_space<vmem>>, vector<18x16x4xf32>
    %45 = arith.maximumf %43, %44 : vector<18x16x4xf32>
    %c0_58 = arith.constant 0 : index
    %c2_59 = arith.constant 2 : index
    %c0_60 = arith.constant 0 : index
    %46 = vector.load %arg12[%c0_58, %c2_59, %c0_60] : memref<18x18x4xf32, #tpu.memory_space<vmem>>, vector<18x16x4xf32>
    %47 = arith.maximumf %45, %46 : vector<18x16x4xf32>
    %48 = vector.extract_strided_slice %47 {offsets = [0, 0, 0], sizes = [16, 16, 4], strides = [1, 1, 1]} : vector<18x16x4xf32> to vector<16x16x4xf32>
    %49 = vector.extract_strided_slice %47 {offsets = [1, 0, 0], sizes = [16, 16, 4], strides = [1, 1, 1]} : vector<18x16x4xf32> to vector<16x16x4xf32>
    %50 = arith.maximumf %48, %49 : vector<16x16x4xf32>
    %51 = vector.extract_strided_slice %47 {offsets = [2, 0, 0], sizes = [16, 16, 4], strides = [1, 1, 1]} : vector<18x16x4xf32> to vector<16x16x4xf32>
    %52 = arith.maximumf %50, %51 : vector<16x16x4xf32>
    %53 = vector.broadcast %39 : f32 to vector<16x16x4xf32>
    %54 = arith.mulf %52, %53 : vector<16x16x4xf32>
    %c0_61 = arith.constant 0 : index
    %c0_62 = arith.constant 0 : index
    %c0_63 = arith.constant 0 : index
    %55 = vector.load %arg13[%c0_61, %c0_62, %c0_63] : memref<16x16x4xf32, #tpu.memory_space<vmem>>, vector<16x16x4xf32>
    %c0_64 = arith.constant 0 : index
    %c0_65 = arith.constant 0 : index
    %c0_66 = arith.constant 0 : index
    %56 = vector.load %arg14[%c0_64, %c0_65, %c0_66] : memref<16x16x4xf32, #tpu.memory_space<vmem>>, vector<16x16x4xf32>
    %57 = arith.maximumf %55, %56 : vector<16x16x4xf32>
    %58 = arith.maximumf %57, %54 : vector<16x16x4xf32>
    %59 = vector.shape_cast %58 : vector<16x16x4xf32> to vector<256x4xf32>
    %60 = arith.truncf %59 : vector<256x4xf32> to vector<256x4xbf16>
    %c0_67 = arith.constant 0 : index
    %c0_68 = arith.constant 0 : index
    %61 = vector.load %arg8[%c0_67, %c0_68] : memref<4x8xbf16, #tpu.memory_space<vmem>>, vector<4x8xbf16>
    %cst_69 = arith.constant dense<0.000000e+00> : vector<256x8xf32>
    %62 = tpu.matmul %60, %61, %cst_69 {dimension_numbers = #tpu.dot_dimension_numbers<[1], [0], [0], [1], [0, 0, 1, 1], [], []>} : vector<256x4xbf16>, vector<4x8xbf16>, vector<256x8xf32> -> vector<256x8xf32>
    %c0_70 = arith.constant 0 : index
    %c0_71 = arith.constant 0 : index
    %63 = vector.load %arg9[%c0_70, %c0_71] : memref<1x8xf32, #tpu.memory_space<vmem>>, vector<1x8xf32>
    %64 = vector.broadcast %63 : vector<1x8xf32> to vector<256x8xf32>
    %65 = arith.addf %62, %64 : vector<256x8xf32>
    %cst_72 = arith.constant 0.000000e+00 : f32
    %66 = vector.broadcast %cst_72 : f32 to vector<256x8xf32>
    %67 = arith.maximumf %65, %66 : vector<256x8xf32>
    %c0_73 = arith.constant 0 : index
    %c0_74 = arith.constant 0 : index
    %c0_75 = arith.constant 0 : index
    %68 = vector.load %arg14[%c0_73, %c0_74, %c0_75] : memref<16x16x4xf32, #tpu.memory_space<vmem>>, vector<16x16x4xf32>
    %c0_76 = arith.constant 0 : index
    %c0_77 = arith.constant 0 : index
    %c0_78 = arith.constant 0 : index
    %69 = vector.load %arg13[%c0_76, %c0_77, %c0_78] : memref<16x16x4xf32, #tpu.memory_space<vmem>>, vector<16x16x4xf32>
    tpu.vector_store %arg13[%c0_76, %c0_77, %c0_78], %68 {strides = array<i32>} : memref<16x16x4xf32, #tpu.memory_space<vmem>>, vector<16x16x4xf32>,
    %c0_79 = arith.constant 0 : index
    %c0_80 = arith.constant 0 : index
    %c0_81 = arith.constant 0 : index
    %70 = vector.load %arg14[%c0_79, %c0_80, %c0_81] : memref<16x16x4xf32, #tpu.memory_space<vmem>>, vector<16x16x4xf32>
    tpu.vector_store %arg14[%c0_79, %c0_80, %c0_81], %54 {strides = array<i32>} : memref<16x16x4xf32, #tpu.memory_space<vmem>>, vector<16x16x4xf32>,
    %71 = tpu.concatenate %14, %36, %67 in 1 : vector<256x8xf32>, vector<256x16xf32>, vector<256x8xf32> -> vector<256x32xf32>
    %72 = vector.shape_cast %71 : vector<256x32xf32> to vector<16x16x32xf32>
    %c0_82 = arith.constant 0 : index
    %c0_83 = arith.constant 0 : index
    %c0_84 = arith.constant 0 : index
    %c0_85 = arith.constant 0 : index
    %c0_86 = arith.constant 0 : index
    %73 = vector.load %arg10[%c0_82, %c0_83, %c0_84, %c0_85, %c0_86] : memref<1x1x16x16x32xf32, #tpu.memory_space<vmem>>, vector<1x1x16x16x32xf32>
    %74 = vector.shape_cast %73 : vector<1x1x16x16x32xf32> to vector<16x16x32xf32>
    %75 = vector.shape_cast %72 : vector<16x16x32xf32> to vector<1x1x16x16x32xf32>
    tpu.vector_store %arg10[%c0_82, %c0_83, %c0_84, %c0_85, %c0_86], %75 {strides = array<i32>} : memref<1x1x16x16x32xf32, #tpu.memory_space<vmem>>, vector<1x1x16x16x32xf32>,
    return
  }
  func.func @transform_0(%arg0: i32, %arg1: i32) -> (i32, i32, i32, i32, i32) {
    %c0_i32 = arith.constant 0 : i32
    %c0_i32_0 = arith.constant 0 : i32
    %c0_i32_1 = arith.constant 0 : i32
    %c0_i32_2 = arith.constant 0 : i32
    return %arg0, %arg1, %c0_i32, %c0_i32_0, %c0_i32_1 : i32, i32, i32, i32, i32
  }
  func.func @transform_1(%arg0: i32, %arg1: i32) -> (i32, i32, i32, i32, i32) {
    %c1_i32 = arith.constant 1 : i32
    %0 = arith.addi %arg1, %c1_i32 : i32
    %c3_i32 = arith.constant 3 : i32
    %1 = arith.minsi %0, %c3_i32 : i32
    %c0_i32 = arith.constant 0 : i32
    %c0_i32_0 = arith.constant 0 : i32
    %c0_i32_1 = arith.constant 0 : i32
    %c0_i32_2 = arith.constant 0 : i32
    return %arg0, %1, %c0_i32, %c0_i32_0, %c0_i32_1 : i32, i32, i32, i32, i32
  }
  func.func @transform_2(%arg0: i32, %arg1: i32) -> (i32, i32) {
    %c0_i32 = arith.constant 0 : i32
    %c0_i32_0 = arith.constant 0 : i32
    %c0_i32_1 = arith.constant 0 : i32
    return %c0_i32, %c0_i32_0 : i32, i32
  }
  func.func @transform_3(%arg0: i32, %arg1: i32) -> (i32, i32) {
    %c0_i32 = arith.constant 0 : i32
    %c0_i32_0 = arith.constant 0 : i32
    %c0_i32_1 = arith.constant 0 : i32
    return %c0_i32, %c0_i32_0 : i32, i32
  }
  func.func @transform_4(%arg0: i32, %arg1: i32) -> (i32, i32) {
    %c0_i32 = arith.constant 0 : i32
    %c0_i32_0 = arith.constant 0 : i32
    %c0_i32_1 = arith.constant 0 : i32
    return %c0_i32, %c0_i32_0 : i32, i32
  }
  func.func @transform_5(%arg0: i32, %arg1: i32) -> (i32, i32) {
    %c0_i32 = arith.constant 0 : i32
    %c0_i32_0 = arith.constant 0 : i32
    %c0_i32_1 = arith.constant 0 : i32
    return %c0_i32, %c0_i32_0 : i32, i32
  }
  func.func @transform_6(%arg0: i32, %arg1: i32) -> (i32, i32) {
    %c0_i32 = arith.constant 0 : i32
    %c0_i32_0 = arith.constant 0 : i32
    %c0_i32_1 = arith.constant 0 : i32
    return %c0_i32, %c0_i32_0 : i32, i32
  }
  func.func @transform_7(%arg0: i32, %arg1: i32) -> (i32, i32) {
    %c0_i32 = arith.constant 0 : i32
    %c0_i32_0 = arith.constant 0 : i32
    %c0_i32_1 = arith.constant 0 : i32
    return %c0_i32, %c0_i32_0 : i32, i32
  }
  func.func @transform_8(%arg0: i32, %arg1: i32) -> (i32, i32, i32, i32, i32) {
    %c0_i32 = arith.constant 0 : i32
    %c0_i32_0 = arith.constant 0 : i32
    %c0_i32_1 = arith.constant 0 : i32
    %c0_i32_2 = arith.constant 0 : i32
    return %arg0, %arg1, %c0_i32, %c0_i32_0, %c0_i32_1 : i32, i32, i32, i32, i32
  }
}

</mosaic_0001>

<bundles_post_ra>
// kernel: spatial_inception_forward_ndhwc.1
= control target key start
LH: loop header
LB: loop body
LE: loop exit
PB: predicated region body
PF: predicated region fallthrough
CT: control target
= control target key end

     0   :  { %s9484_s0 = inlined_call_operand.hbm [shape: f32[2,4,16,16,4], index: 0, kind: input, shape index: {}, may-alias: {0,1}]   ;;  %s9485_s1 = inlined_call_operand.hbm [shape: f32[2,4,16,16,4], index: 1, kind: input, shape index: {}, may-alias: {0,1}]   ;;  %s9486_s2 = inlined_call_operand.hbm [shape: bf16[4,20], index: 2, kind: input, shape index: {}]   ;;  %s9487_s3 = inlined_call_operand.hbm [shape: f32[1,20], index: 3, kind: input, shape index: {}]   ;;  %s9488_s4 = inlined_call_operand.hbm [shape: bf16[108,16], index: 4, kind: input, shape index: {}]   ;;  %s9489_s5 = inlined_call_operand.hbm [shape: f32[1,16], index: 5, kind: input, shape index: {}]   ;;  %s9490_s6 = inlined_call_operand.hbm [shape: bf16[4,8], index: 6, kind: input, shape index: {}]   ;;  %s9491_s7 = inlined_call_operand.hbm [shape: f32[1,8], index: 7, kind: input, shape index: {}]   ;;  %s9492_s8 = inlined_call_operand.hbm [shape: f32[2,4,16,16,32], index: 8, kind: output, shape index: {}]  }
   0x1   :  { %9592 = sst [smem:[#allocation79_spill]] %s9484_s0 }
   0x2   :  { %9593 = sst [smem:[#allocation80_spill]] %s9485_s1 }
   0x3   :  { %9594 = sst [smem:[#allocation81_spill]] %s9486_s2 }
   0x4   :  { %9595 = sst [smem:[#allocation82_spill]] %s9487_s3 }
   0x5   :  { %9596 = sst [smem:[#allocation83_spill]] %s9488_s4 }
   0x6   :  { %9597 = sst [smem:[#allocation84_spill]] %s9489_s5 }
   0x7   :  { %9598 = sst [smem:[#allocation85_spill]] %s9490_s6 }
   0x8   :  { %9599 = sst [smem:[#allocation86_spill]] %s9491_s7 }
   0x9   :  { %9600 = sst [smem:[#allocation87_spill]] %s9492_s8 }
   0xa   :  { %13 = vsyncpa [#allocation7], 0 }
   0xb   :  { %15 = vsyncpa [#allocation7 + $0x1], 0 }
   0xc   :  { %16 = vsyncpa [#allocation10], 0 }
   0xd   :  { %18 = vsyncpa [#allocation10 + $0x1], 0 }
   0xe   :  { %19 = vsyncpa [#allocation13], 0 }
   0xf   :  { %20 = vsyncpa [#allocation16], 0 }
  0x10   :  { %21 = vsyncpa [#allocation19], 0 }
  0x11   :  { %22 = vsyncpa [#allocation8], 0 }
  0x12   :  { %24 = vsyncpa [#allocation8 + $0x1], 0  ;;  %s6198_s27 = smov 0   ;;  %s6200_s28 = smov 0  }
  0x13   :  { %s6202_s29 = smov 0   ;;  %s6204_s30 = smov 0  }
  0x14   :  { %s6206_s9 = smov 0   ;;  %s6208_s10 = smov 0  }
  0x15   :  { %s6210_s11 = smov 0   ;;  %s6212_s12 = smov 0  }
  0x16   :  { %s6214_s13 = smov 0   ;;  %s6216_s14 = smov 0  }
  0x17   :  { %s6218_s15 = smov 0  }
  0x18 LB: > { %9601 = sst [smem:[#allocation28_spill]] %s6110_s11  ;;  %s6254_s16 = sadd.s32 4294967295, %s6126_s15   ;;  %s6126_s15 = sphi %s6218_s15, %s30_s15   ;;  %s6122_s14 = sphi %s6216_s14, %s9817_s14   ;;  %s6118_s13 = sphi %s6214_s13, %s9816_s13   ;;  %s6114_s12 = sphi %s6212_s12, %s9815_s12   ;;  %s6110_s11 = sphi %s6210_s11, %s9806_s11   ;;  %s6106_s10 = sphi %s6208_s10, %s9814_s10   ;;  %s6102_s9 = sphi %s6206_s9, %s9813_s9   ;;  %s6098_s30 = sphi %s6204_s30, %s9812_s30   ;;  %s6094_s29 = sphi %s6202_s29, %s9811_s29   ;;  %s6090_s28 = sphi %s6200_s28, %s9810_s28   ;;  %s6086_s27 = sphi %s6198_s27, %s9809_s27  }
  0x19   : > { %9602 = sst [smem:[#allocation29_spill]] %s6114_s12  ;;  %p4647_p0 = scmp.ge.s32.totalorder %s6126_s15, 1 }
  0x1a   : > { %9603 = sst [smem:[#allocation30_spill]] %s6118_s13  ;;  %p9495_p1 = scmp.eq.s32.totalorder %s6254_s16, 0 }
  0x1b   : > { %p263_p2 = scmp.lt.s32.totalorder %s6126_s15, 9  ;;  %s6128_s18 = smov [#allocation11]  }
  0x1c   : > { %s276_s19 = sshll.u32 %s6128_s18, 4  ;;  %s6129_s20 = smov [#allocation12]   ;;  %s277_s19 = int_to_ptr.vmem [resolvable:$true] %s276_s19 }
  0x1d   : > { %p6259_p3 = pnand %p4647_p0, %p263_p2  ;;  %s287_s21 = sshll.u32 %s6129_s20, 4  ;;  %s6271_s21 = int_to_ptr.vmem [resolvable:$true] %s287_s21 }
  0x1e   : > { %s6130_s23 = smov [#allocation15]   ;;  %s9607_s2 = sld [smem:[#allocation81_spill]] }
  0x1f   : > { %s9604_s17 = scalar_select %p6259_p3, 1, 0 }
  0x20   : > { %p4945_p4 = pneg %p6259_p3  ;;  %s311_s24 = sshll.u32 %s6130_s23, 4  ;;  %s6273_s24 = int_to_ptr.vmem [resolvable:$true] %s311_s24 }
  0x21   : > { %9605 = sst [smem:[#allocation31_spill]] %s9604_s17 }
  0x22   : > { %p6267_p5 = pnand %p4945_p4, %p9495_p1 }
  0x24   : > { %s5756_s18 = scalar_lea.hbm %s9607_s2, 32  ;;  %p6283_p7 = pneg %p6267_p5 }
  0x25   : > { %p5757_p6 = scmp.ne.s32.totalorder %s9607_s2, %s5756_s18  ;;  %p5763_p10 = scmp.lt.u32.totalorder %s5756_s18, %s9607_s2 }
  0x27   : > { %p5759_p8 = pnand %p6283_p7, %p5757_p6 }
  0x29   : > { %p5760_p9 = pneg %p5759_p8 }
  0x2b   : > { %p5765_p11 = pnand %p5763_p10, %p5760_p9 }
  0x2d   : > { %5768 = shalt.err (!%p5765_p11)
}
  0x2e   : > { %s5769_s25 = scalar_lea.vmem %s277_s19, 32  ;;  %p5777_p2 = scmp.lt.s32.totalorder %s277_s19, %s277_s19 }
  0x2f   : > { %p5770_p12 = scmp.ne.s32.totalorder %s277_s19, %s5769_s25  ;;  %p5778_p4 = scmp.lt.s32.totalorder %s5769_s25, %s5769_s25 }
  0x31   : > { %p5772_p13 = pnand %p5770_p12, %p6283_p7  ;;  %p5779_p1 = por %p5778_p4, %p5777_p2 }
  0x33   : > { %p5773_p0 = pneg %p5772_p13 }
  0x35   : > { %p5780_p3 = pnand %p5779_p1, %p5773_p0 }
  0x37   : > { %5783 = shalt.err (!%p5780_p3)
}
  0x38   : > { %4948 = dma.hbm_to_vmem [thread:$0]  (!%p6267_p5), %s9607_s2, 32, %s277_s19, [#allocation10]  }
  0x39   : > { %s9609_s3 = sld [smem:[#allocation82_spill]] }
  0x3f   : > { %s5784_s18 = scalar_lea.hbm %s9609_s3, 16 }
  0x40   : > { %p5785_p6 = scmp.ne.s32.totalorder %s9609_s3, %s5784_s18  ;;  %p5791_p1 = scmp.lt.u32.totalorder %s5784_s18, %s9609_s3 }
  0x42   : > { %p5787_p8 = pnand %p5785_p6, %p6283_p7 }
  0x44   : > { %p5788_p9 = pneg %p5787_p8 }
  0x46   : > { %p5793_p3 = pnand %p5791_p1, %p5788_p9 }
  0x48   : > { %5796 = shalt.err (!%p5793_p3)
}
  0x49   : > { %s5797_s19 = scalar_lea.vmem %s6271_s21, 16  ;;  %s5804_s17 = scalar_lea.vmem %s6271_s21, 32 }
  0x4a   : > { %p5798_p10 = scmp.ne.s32.totalorder %s6271_s21, %s5797_s19  ;;  %p5805_p13 = scmp.lt.s32.totalorder %s6271_s21, %s6271_s21 }
  0x4b   : > { %p5806_p0 = scmp.lt.s32.totalorder %s5804_s17, %s5797_s19 }
  0x4c   : > { %p5800_p11 = pnand %p5798_p10, %p6283_p7 }
  0x4d   : > { %p5807_p2 = por %p5806_p0, %p5805_p13 }
  0x4e   : > { %p5801_p12 = pneg %p5800_p11 }
  0x50   : > { %p5808_p4 = pnand %p5807_p2, %p5801_p12 }
  0x52   : > { %5811 = shalt.err (!%p5808_p4)
}
  0x53   : > { %4951 = dma.hbm_to_vmem [thread:$0]  (!%p6267_p5), %s9609_s3, 16, %s6271_s21, [#allocation13]  }
  0x54   : > { %s9610_s5 = sld [smem:[#allocation84_spill]] }
  0x5a   : > { %s5812_s26 = scalar_lea.hbm %s9610_s5, 16 }
  0x5b   : > { %p5813_p6 = scmp.ne.s32.totalorder %s9610_s5, %s5812_s26  ;;  %p5819_p1 = scmp.lt.u32.totalorder %s5812_s26, %s9610_s5 }
  0x5d   : > { %p5815_p8 = pnand %p5813_p6, %p6283_p7 }
  0x5f   : > { %p5816_p9 = pneg %p5815_p8 }
  0x61   : > { %p5821_p3 = pnand %p5819_p1, %p5816_p9 }
  0x63   : > { %5824 = shalt.err (!%p5821_p3)
}
  0x64   : > { %s5825_s21 = scalar_lea.vmem %s6273_s24, 16  ;;  %s5832_s17 = scalar_lea.vmem %s6273_s24, 32 }
  0x65   : > { %p5826_p10 = scmp.ne.s32.totalorder %s6273_s24, %s5825_s21  ;;  %p5833_p13 = scmp.lt.s32.totalorder %s6273_s24, %s6273_s24 }
  0x66   : > { %p5834_p0 = scmp.lt.s32.totalorder %s5832_s17, %s5825_s21 }
  0x67   : > { %p5828_p11 = pnand %p5826_p10, %p6283_p7 }
  0x68   : > { %p5835_p2 = por %p5834_p0, %p5833_p13 }
  0x69   : > { %p5829_p12 = pneg %p5828_p11 }
  0x6b   : > { %p5836_p4 = pnand %p5835_p2, %p5829_p12 }
  0x6d   : > { %5839 = shalt.err (!%p5836_p4)
}
  0x6e   : > { %4957 = dma.hbm_to_vmem [thread:$0]  (!%p6267_p5), %s9610_s5, 16, %s6273_s24, [#allocation16]  }
  0x6f   : > { %s6131_s12 = smov [#allocation14]   ;;  %s9611_s4 = sld [smem:[#allocation83_spill]] }
  0x70   : > { %s297_s11 = sshll.u32 %s6131_s12, 4  ;;  %s298_s11 = int_to_ptr.vmem [resolvable:$true] %s297_s11 }
  0x75   : > { %s5840_s23 = scalar_lea.hbm %s9611_s4, 896 }
  0x76   : > { %p5841_p6 = scmp.ne.s32.totalorder %s9611_s4, %s5840_s23  ;;  %p5847_p1 = scmp.lt.u32.totalorder %s5840_s23, %s9611_s4 }
  0x78   : > { %p5843_p8 = pnand %p5841_p6, %p6283_p7 }
  0x7a   : > { %p5844_p9 = pneg %p5843_p8 }
  0x7c   : > { %p5849_p3 = pnand %p5847_p1, %p5844_p9 }
  0x7e   : > { %5852 = shalt.err (!%p5849_p3)
}
  0x7f   : > { %s5853_s24 = scalar_lea.vmem %s298_s11, 896  ;;  %p5861_p13 = scmp.lt.s32.totalorder %s298_s11, %s298_s11 }
  0x80   : > { %p5854_p10 = scmp.ne.s32.totalorder %s298_s11, %s5853_s24  ;;  %p5862_p0 = scmp.lt.s32.totalorder %s5853_s24, %s5853_s24 }
  0x82   : > { %p5856_p11 = pnand %p5854_p10, %p6283_p7  ;;  %p5863_p2 = por %p5862_p0, %p5861_p13 }
  0x84   : > { %p5857_p12 = pneg %p5856_p11 }
  0x86   : > { %p5864_p4 = pnand %p5863_p2, %p5857_p12 }
  0x88   : > { %5867 = shalt.err (!%p5864_p4)
}
  0x89   : > { %s6132_s1 = smov 64   ;;  %s6133_s8 = smov 4  }
  0x8a   : > { %4954 = dma.hbm_to_vmem [thread:$0]  (!%p6267_p5), %s9611_s4, 896, %s298_s11, [#allocation13], %s6132_s1, %s6132_s1, %s6133_s8  }
  0x8b   : > { %s6134_s18 = smov [#allocation17]   ;;  %s6135_s25 = smov [#allocation18]  }
  0x8c   : > { %s322_s23 = sshll.u32 %s6134_s18, 4  ;;  %s333_s19 = sshll.u32 %s6135_s25, 4  ;;  %s323_s23 = int_to_ptr.vmem [resolvable:$true] %s322_s23  ;;  %s6365_s19 = int_to_ptr.vmem [resolvable:$true] %s333_s19 }
  0x8d   : > { %s9612_s6 = sld [smem:[#allocation85_spill]] }
  0x93   : > { %s5868_s24 = scalar_lea.hbm %s9612_s6, 32 }
  0x94   : > { %p5869_p6 = scmp.ne.s32.totalorder %s9612_s6, %s5868_s24  ;;  %p5875_p1 = scmp.lt.u32.totalorder %s5868_s24, %s9612_s6 }
  0x96   : > { %p5871_p8 = pnand %p5869_p6, %p6283_p7 }
  0x98   : > { %p5872_p9 = pneg %p5871_p8 }
  0x9a   : > { %p5877_p3 = pnand %p5875_p1, %p5872_p9 }
  0x9c   : > { %5880 = shalt.err (!%p5877_p3)
}
  0x9d   : > { %s5881_s1 = scalar_lea.vmem %s323_s23, 32  ;;  %p5889_p13 = scmp.lt.s32.totalorder %s323_s23, %s323_s23 }
  0x9e   : > { %p5882_p10 = scmp.ne.s32.totalorder %s323_s23, %s5881_s1  ;;  %p5890_p0 = scmp.lt.s32.totalorder %s5881_s1, %s5881_s1 }
  0xa0   : > { %p5884_p11 = pnand %p5882_p10, %p6283_p7  ;;  %p5891_p2 = por %p5890_p0, %p5889_p13 }
  0xa2   : > { %p5885_p12 = pneg %p5884_p11 }
  0xa4   : > { %p5892_p4 = pnand %p5891_p2, %p5885_p12 }
  0xa6   : > { %5895 = shalt.err (!%p5892_p4)
}
  0xa7   : > { %4960 = dma.hbm_to_vmem [thread:$0]  (!%p6267_p5), %s9612_s6, 32, %s323_s23, [#allocation16]  }
  0xa8   : > { %s9613_s7 = sld [smem:[#allocation86_spill]] }
  0xae   : > { %s5896_s18 = scalar_lea.hbm %s9613_s7, 16 }
  0xaf   : > { %p5897_p6 = scmp.ne.s32.totalorder %s9613_s7, %s5896_s18  ;;  %p5903_p1 = scmp.lt.u32.totalorder %s5896_s18, %s9613_s7 }
  0xb1   : > { %p5899_p8 = pnand %p5897_p6, %p6283_p7 }
  0xb3   : > { %p5900_p9 = pneg %p5899_p8 }
  0xb5   : > { %p5905_p3 = pnand %p5903_p1, %p5900_p9 }
  0xb7   : > { %5908 = shalt.err (!%p5905_p3)
}
  0xb8   : > { %s5909_s23 = scalar_lea.vmem %s6365_s19, 16  ;;  %s5916_s12 = scalar_lea.vmem %s6365_s19, 32 }
  0xb9   : > { %p5910_p10 = scmp.ne.s32.totalorder %s6365_s19, %s5909_s23  ;;  %p5917_p13 = scmp.lt.s32.totalorder %s6365_s19, %s6365_s19 }
  0xba   : > { %p5918_p0 = scmp.lt.s32.totalorder %s5916_s12, %s5909_s23 }
  0xbb   : > { %p5912_p11 = pnand %p5910_p10, %p6283_p7 }
  0xbc   : > { %p5919_p2 = por %p5918_p0, %p5917_p13 }
  0xbd   : > { %p5913_p12 = pneg %p5912_p11 }
  0xbf   : > { %p5920_p4 = pnand %p5919_p2, %p5913_p12 }
  0xc1   : > { %5923 = shalt.err (!%p5920_p4)
}
  0xc2   : > { %4963 = dma.hbm_to_vmem [thread:$0]  (!%p6267_p5), %s9613_s7, 16, %s6365_s19, [#allocation19]  }
  0xc3   : > { %s4646_s22 = sadd.s32 4294967294, %s6126_s15   ;;  %s39_s20 = sadd.s32 1, %s6118_s13 }
  0xc4   : > { %p40_p7 = scmp.ge.s32.totalorder %s39_s20, 4  ;;  %s42_s2 = sadd.s32 1, %s6122_s14 }
  0xc5   : > { %s51_s3 = sadd.s32 1, %s6106_s10  ;;  %p58_p6 = scmp.ne.s32.totalorder %s6106_s10, %s6102_s9 }
  0xc6   : > { %s6415_s8 = scalar_select %p40_p7, 0, %s39_s20  }
  0xc7   : > { %s9819_s2 = smov (!%p40_p7, %s42_s2), %s6122_s14  ;;  %p9502_p8 = scmp.eq.s32.totalorder %s6126_s15, 0 }
  0xc8   : > { %9614 = sst [smem:[#allocation32_spill]] %s6415_s8  ;;  %s47_s26 = ssub.s32 %s6118_s13, %s6415_s8 }
  0xc9   : > { %p44_p5 = scmp.ge.s32.totalorder %s9819_s2, 2  ;;  %p64_p9 = scmp.ne.s32.totalorder %s6102_s9, %s6098_s30 }
  0xca   : > { %p6428_p1 = por %p9502_p8, %p58_p6  ;;  %p75_p3 = scmp.lt.s32.totalorder %s39_s20, 3 }
  0xcb   : > { %s9821_s2 = smov (%p44_p5, %s9819_s2), 0  ;;  %p9617_p10 = scmp.eq.s32.totalorder %s6254_s16, 0 }
  0xcc   : > { %9616 = sst [smem:[#allocation33_spill]] %s9821_s2  ;;  %s77_s25 = sadd.s32 1, %s6415_s8 }
  0xcd   : > { %p6439_p11 = por %p9617_p10, %p64_p9  ;;  %s46_s21 = ssub.s32 %s6122_s14, %s9821_s2 }
  0xce   : > { %p78_p12 = scmp.lt.s32.totalorder %s77_s25, 3  ;;  %s48_s17 = sor.u32 %s47_s26, %s46_s21 }
  0xcf   : > { %p250_p13 = scmp.eq.s32.totalorder %s6254_s16, 7  ;;  %p49_p0 = scmp.eq.s32.totalorder %s48_s17, 0 }
  0xd0   : > { %p256_p2 = scmp.eq.s32.totalorder %s4646_s22, 7  ;;  %s9823_s20 = smov (!%p75_p3, %s39_s20), 3 }
  0xd1   : > { %s6450_s24 = scalar_select %p49_p0, %s6106_s10, %s51_s3  }
  0xd2   : > { %s9825_s25 = smov (!%p78_p12, %s77_s25), 3  ;;  %p6455_p4 = por %p250_p13, %p58_p6 }
  0xd3   : > { %p6462_p7 = por %p256_p2, %p64_p9  ;;  %s81_s11 = ssub.s32 %s9823_s20, %s9825_s25 }
  0xd4   : > { %s9619_s23 = scalar_select %p6455_p4, 1, 0 }
  0xd5   : > { %s9620_s12 = scalar_select %p6462_p7, 1, 0 }
  0xd6   : > { %p9501_p5 = scmp.lt.s32.totalorder %s6126_s15, 8  ;;  %s6468_s1 = sor.u32 %s81_s11, %s46_s21 }
  0xd7   : > { %s344_s22 = sand.u32 1, %s6106_s10   ;;  %s4656_s26 = sshll.u32 %s6118_s13, 5 }
  0xd8   : > { %s4655_s3 = sshll.u32 %s344_s22, 8  ;;  %s4657_s17 = sshll.u32 %s6122_s14, 7 }
  0xd9   : > { %s354_s4 = sadd.s32 %s4657_s17, %s4656_s26  ;;  %s348_s5 = scalar_lea.vmem [#allocation6], %s4655_s3 }
  0xda   : > { %s357_s6 = sshll.u32 %s348_s5, 4  ;;  %s4658_s7 = sshll.u32 %s354_s4, 7  ;;  %s6476_s6 = int_to_ptr.vmem [resolvable:$true] %s357_s6 }
  0xdb   : > { %s9621_s0 = sld [smem:[#allocation79_spill]]  ;;  %p6487_p6 = pnand %p9501_p5, %p6428_p1 }
  0xdc   : > { %s4660_s4 = sshll.u32 %s9823_s20, 5  ;;  %s6492_s5 = scalar_lea.sflag [#allocation7], %s344_s22 }
  0xdd   : > { %p5926_p10 = pneg %p6487_p6 }
  0xe1   : > { %s6481_s25 = scalar_lea.hbm %s9621_s0, %s4658_s7  ;;  %s5929_s8 = scalar_lea.hbm %s9621_s0, 32768 }
  0xe2   : > { %s5924_s11 = scalar_lea.hbm %s6481_s25, 4096  ;;  %p5930_p1 = scmp.lt.u32.totalorder %s6481_s25, %s9621_s0 }
  0xe3   : > { %p5925_p9 = scmp.ne.s32.totalorder %s6481_s25, %s5924_s11  ;;  %p5931_p0 = scmp.lt.u32.totalorder %s5929_s8, %s5924_s11 }
  0xe4   : > { %p5933_p5 = scmp.lt.u32.totalorder %s5924_s11, %s6481_s25 }
  0xe5   : > { %p5927_p12 = pnand %p5926_p10, %p5925_p9  ;;  %p5932_p2 = por %p5931_p0, %p5930_p1 }
  0xe7   : > { %p5928_p13 = pneg %p5927_p12  ;;  %p5934_p8 = por %p5933_p5, %p5932_p2 }
  0xe9   : > { %p5935_p3 = pnand %p5934_p8, %p5928_p13 }
  0xeb   : > { %5938 = shalt.err (!%p5935_p3)
}
  0xec   : > { %s5939_s22 = scalar_lea.vmem %s6476_s6, 4096  ;;  %s6136_s26 = smov [#allocation6]  }
  0xed   : > { %p5940_p9 = scmp.ne.s32.totalorder %s6476_s6, %s5939_s22  ;;  %s5944_s7 = sshll.u32 %s6136_s26, 4  ;;  %s5945_s7 = int_to_ptr.vmem [resolvable:$false] %s5944_s7 }
  0xee   : > { %s5946_s2 = scalar_lea.vmem %s5945_s7, 8192  ;;  %p5947_p4 = scmp.lt.s32.totalorder %s6476_s6, %s5945_s7 }
  0xef   : > { %p5942_p12 = pnand %p5940_p9, %p5926_p10  ;;  %p5948_p1 = scmp.lt.s32.totalorder %s5946_s2, %s5939_s22 }
  0xf1   : > { %p5943_p7 = pneg %p5942_p12  ;;  %p5949_p0 = por %p5948_p1, %p5947_p4 }
  0xf3   : > { %p5950_p5 = pnand %p5949_p0, %p5943_p7 }
  0xf5   : > { %5953 = shalt.err (!%p5950_p5)
}
  0xf6   : > { %s6137_s11 = smov 128   ;;  %s6138_s8 = smov 8  }
  0xf7   : > { %4967 = dma.hbm_to_vmem [thread:$0]  (!%p6487_p6), %s6481_s25, 4096, %s6476_s6, %s6492_s5, %s6137_s11, %s6137_s11, %s6138_s8  }
  0xf8   : > { %s380_s19 = sadd.s32 %s4660_s4, %s4657_s17  ;;  %s9623_s7 = sld [smem:[#allocation80_spill]] }
  0xf9   : > { %s4662_s3 = sshll.u32 %s380_s19, 7  ;;  %s85_s0 = sadd.s32 1, %s6094_s29 }
  0xfa   : > { %p9624_p8 = scmp.eq.s32.totalorder %s6468_s1, 0  ;;  %p92_p4 = scmp.ne.s32.totalorder %s6094_s29, %s6090_s28 }
  0xfb   : > { %p98_p7 = scmp.ne.s32.totalorder %s6090_s28, %s6086_s27  ;;  %s367_s21 = sand.u32 1, %s6126_s15  }
  0xfc   : > { %s6536_s13 = scalar_select %p9624_p8, %s6094_s29, %s85_s0  }
  0xfd   : > { %s369_s6 = sand.u32 1, %s6094_s29   ;;  %p9625_p3 = scmp.eq.s32.totalorder %s6126_s15, 0 }
  0xfe   : > { %s6530_s2 = scalar_lea.hbm %s9623_s7, %s4662_s3  ;;  %p9626_p10 = scmp.eq.s32.totalorder %s6254_s16, 0 }
  0xff   : > { %p94_p6 = por %p92_p4, %p9625_p3  ;;  %s4659_s17 = sshll.u32 %s369_s6, 8 }
 0x100   : > { %p6548_p13 = por %p98_p7, %p9626_p10  ;;  %p9628_p2 = scmp.lt.s32.totalorder %s6126_s15, 8 }
 0x101   : > { %s371_s0 = scalar_lea.vmem [#allocation9], %s4659_s17  ;;  %s6560_s1 = scalar_lea.sflag [#allocation10], %s367_s21 }
 0x102   : > { %s9627_s20 = scalar_select %p6548_p13, 1, 0 }
 0x103   : > { %p6554_p9 = pnand %p9628_p2, %p94_p6  ;;  %s383_s27 = sshll.u32 %s371_s0, 4  ;;  %s6558_s27 = int_to_ptr.vmem [resolvable:$true] %s383_s27 }
 0x104   : > { %s5954_s4 = scalar_lea.hbm %s6530_s2, 4096  ;;  %s5959_s3 = scalar_lea.hbm %s9623_s7, 32768 }
 0x105   : > { %p5955_p12 = scmp.ne.s32.totalorder %s6530_s2, %s5954_s4  ;;  %p5956_p1 = pneg %p6554_p9 }
 0x106   : > { %p5960_p8 = scmp.lt.u32.totalorder %s6530_s2, %s9623_s7  ;;  %p5961_p4 = scmp.lt.u32.totalorder %s5959_s3, %s5954_s4 }
 0x107   : > { %p5957_p0 = pnand %p5956_p1, %p5955_p12  ;;  %p5963_p3 = scmp.lt.u32.totalorder %s5954_s4, %s6530_s2 }
 0x108   : > { %p5962_p7 = por %p5961_p4, %p5960_p8 }
 0x109   : > { %p5958_p5 = pneg %p5957_p0 }
 0x10a   : > { %p5964_p6 = por %p5963_p3, %p5962_p7 }
 0x10c   : > { %p5965_p10 = pnand %p5964_p6, %p5958_p5 }
 0x10e   : > { %5968 = shalt.err (!%p5965_p10)
}
 0x10f   : > { %s5969_s21 = scalar_lea.vmem %s6558_s27, 4096  ;;  %s6139_s6 = smov [#allocation9]  }
 0x110   : > { %p5970_p2 = scmp.ne.s32.totalorder %s6558_s27, %s5969_s21  ;;  %s5974_s17 = sshll.u32 %s6139_s6, 4  ;;  %s5975_s17 = int_to_ptr.vmem [resolvable:$false] %s5974_s17 }
 0x111   : > { %s5976_s0 = scalar_lea.vmem %s5975_s17, 8192  ;;  %p5977_p13 = scmp.lt.s32.totalorder %s6558_s27, %s5975_s17 }
 0x112   : > { %p5972_p12 = pnand %p5970_p2, %p5956_p1  ;;  %p5978_p8 = scmp.lt.s32.totalorder %s5976_s0, %s5969_s21 }
 0x114   : > { %p5973_p0 = pneg %p5972_p12  ;;  %p5979_p4 = por %p5978_p8, %p5977_p13 }
 0x116   : > { %p5980_p7 = pnand %p5979_p4, %p5973_p0 }
 0x118   : > { %5983 = shalt.err (!%p5980_p7)
}
 0x119   : > { %4970 = dma.hbm_to_vmem [thread:$0]  (!%p6554_p9), %s6530_s2, 4096, %s6558_s27, %s6560_s1, %s6137_s11, %s6137_s11, %s6138_s8  }
 0x11a   : > { %s9630_s4 = sld [smem:[#allocation31_spill]] }
 0x120   : > { %p9631_p1 = scmp.ne.s32.totalorder %s9630_s4, 0 }
 0x122   : > { %395 = sbr.rel (%p9631_p1) target bundleno = 1542 (0x606), region = 52 }
 0x129   : > { %s6594_s5 = sand.u32 1, %s6102_s9  }
 0x12a   : > { %s4664_s19 = sshll.u32 %s6594_s5, 8  ;;  %s398_s3 = scalar_lea.sflag [#allocation7], %s6594_s5 }
 0x12b   : > { %s6600_s25 = scalar_lea.vmem [#allocation6], %s4664_s19 }
 0x12c   : > { %6057 = dma.done.wait (%p6439_p11), %s398_s3, 4096  }
 0x12d   : > { %6059 = vsyncadd (%p6439_p11), %s398_s3, 4294963200  ;;  %s406_s11 = sand.u32 1, %s6254_s16   ;;  %s408_s8 = sand.u32 1, %s6090_s28  }
 0x12e   : > { %s4665_s2 = sshll.u32 %s408_s8, 8  ;;  %s407_s27 = scalar_lea.sflag [#allocation10], %s406_s11 }
 0x12f   : > { %s6608_s1 = scalar_lea.vmem [#allocation9], %s4665_s2  ;;  %p9632_p13 = scmp.ne.s32.totalorder %s9627_s20, 0 }
 0x131   : > { %6061 = dma.done.wait (%p9632_p13), %s407_s27, 4096  }
 0x132   : > { %6063 = vsyncadd (%p9632_p13), %s407_s27, 4294963200  ;;  %p9633_p9 = scmp.eq.s32.totalorder %s6254_s16, 0 }
 0x134   : > { %6065 = dma.done.wait (%p9633_p9), [#allocation10], 32   ;;  %p9634_p5 = pmov %p9633_p9 }
 0x136   : > { %6067 = vsyncadd (%p9634_p5), [#allocation10], 4294967264  ;;  %p9635_p11 = pmov %p9634_p5 }
 0x137   : > { %p9636_p3 = pmov %p9634_p5 }
 0x138   : > { %6069 = dma.done.wait (%p9635_p11), [#allocation13], 912  }
 0x139   : > { %6071 = vsyncadd (%p9636_p3), [#allocation13], 4294966384  ;;  %p9637_p6 = pmov %p9636_p3 }
 0x13a   : > { %p9638_p10 = pmov %p9636_p3 }
 0x13b   : > { %6073 = dma.done.wait (%p9637_p6), [#allocation16], 48  }
 0x13c   : > { %6075 = vsyncadd (%p9638_p10), [#allocation16], 4294967248  ;;  %p9639_p2 = pmov %p9636_p3 }
 0x13e   : > { %6077 = dma.done.wait (%p9639_p2), [#allocation19], 16   ;;  %p9640_p12 = pmov %p9639_p2 }
 0x13f   : > { %v6631_v0 = vld [vmem:[%s6600_s25] sm:$0xff]  ;;  %v6634_v1 = vld [vmem:[%s6600_s25 + $0x8] sm:$0xff]  ;;  %v6637_v2 = vld [vmem:[%s6600_s25 + $0x10] sm:$0xff]  ;;  %s6728_s16 = scalar_lea.vmem [#allocation20], %s4664_s19  ;;  %s9642_s18 = sld [smem:[#allocation28_spill]] }
 0x140   : > { %6079 = vsyncadd (%p9640_p12), [#allocation19], 4294967280  ;;  %v6640_v3 = vld [vmem:[%s6600_s25 + $0x18] sm:$0xff]  ;;  %v6643_v4 = vld [vmem:[%s6600_s25 + $0x20] sm:$0xff] }
 0x141   : > { %v6646_v5 = vld [vmem:[%s6600_s25 + $0x28] sm:$0xff]  ;;  %v6649_v6 = vld [vmem:[%s6600_s25 + $0x30] sm:$0xff]  ;;  %v6652_v7 = vld [vmem:[%s6600_s25 + $0x38] sm:$0xff] }
 0x142   : > { %v6655_v8 = vld [vmem:[%s6600_s25 + $0x40] sm:$0xff]  ;;  %v6658_v9 = vld [vmem:[%s6600_s25 + $0x48] sm:$0xff]  ;;  %v6661_v10 = vld [vmem:[%s6600_s25 + $0x50] sm:$0xff] }
 0x143   : > { %v6664_v11 = vld [vmem:[%s6600_s25 + $0x58] sm:$0xff]  ;;  %v6667_v12 = vld [vmem:[%s6600_s25 + $0x60] sm:$0xff]  ;;  %v6670_v13 = vld [vmem:[%s6600_s25 + $0x68] sm:$0xff] }
 0x144   : > { %v6673_v14 = vld [vmem:[%s6600_s25 + $0x70] sm:$0xff]  ;;  %v6676_v15 = vld [vmem:[%s6600_s25 + $0x78] sm:$0xff]  ;;  %v6679_v16 = vld [vmem:[%s6600_s25 + $0x80] sm:$0xff] }
 0x145   : > { %v6682_v17 = vld [vmem:[%s6600_s25 + $0x88] sm:$0xff]  ;;  %v6685_v18 = vld [vmem:[%s6600_s25 + $0x90] sm:$0xff]  ;;  %v6688_v19 = vld [vmem:[%s6600_s25 + $0x98] sm:$0xff]  ;;  %p4673_p0 = scmp.ne.s32.totalorder %s9642_s18, 0 }
 0x146   : > { %v6691_v20 = vld [vmem:[%s6600_s25 + $0xa0] sm:$0xff]  ;;  %v6694_v21 = vld [vmem:[%s6600_s25 + $0xa8] sm:$0xff]  ;;  %v6697_v22 = vld [vmem:[%s6600_s25 + $0xb0] sm:$0xff]  ;;  %vm568_vm0 = vcmask (!%p4673_p0), 31744   ;;  %vm571_vm1 = vcmask (!%p4673_p0), 25600   ;;  %vm512_vm2 = vcmask (!%p4673_p0), 97280  }
 0x147   : > { %v6700_v23 = vld [vmem:[%s6600_s25 + $0xb8] sm:$0xff]  ;;  %v6703_v24 = vld [vmem:[%s6600_s25 + $0xc0] sm:$0xff]  ;;  %v6706_v25 = vld [vmem:[%s6600_s25 + $0xc8] sm:$0xff]  ;;  %511 = sbr.rel (%p4673_p0) target bundleno = 450 (0x1c2), region = 88  ;;  %v6140_v32 = vmov (!%p4673_p0), 0.0   ;;  %vm515_vm3 = vcmask (!%p4673_p0), 91136  }
 0x148   : > { %v6709_v26 = vld [vmem:[%s6600_s25 + $0xd0] sm:$0xff]  ;;  %v6712_v27 = vld [vmem:[%s6600_s25 + $0xd8] sm:$0xff]  ;;  %v6715_v28 = vld [vmem:[%s6600_s25 + $0xe0] sm:$0xff]  ;;  %569 = vst.msk [vmem:[#allocation3] sm:$0xff] (!%p4673_p0), %vm568_vm0, %v6140_v32 }
 0x149   : > { %v6718_v29 = vld [vmem:[%s6600_s25 + $0xe8] sm:$0xff]  ;;  %v6721_v30 = vld [vmem:[%s6600_s25 + $0xf0] sm:$0xff]  ;;  %v6724_v31 = vld [vmem:[%s6600_s25 + $0xf8] sm:$0xff]  ;;  %570 = vst.msk [vmem:[#allocation3 + $0x8] sm:$0xff] (!%p4673_p0), %vm568_vm0, %v6140_v32 }
 0x14a   : > { %9641 = vst [vmem:[#allocation34_spill] sm:$0xff] %v6724_v31  ;;  %573 = vst.msk [vmem:[#allocation3 + $0x18] sm:$0xff] (!%p4673_p0), %vm568_vm0, %v6140_v32 }
 0x14b   : > { %574 = vst.msk [vmem:[#allocation3 + $0x20] sm:$0xff] (!%p4673_p0), %vm568_vm0, %v6140_v32  ;;  %576 = vst.msk [vmem:[#allocation3 + $0x30] sm:$0xff] (!%p4673_p0), %vm568_vm0, %v6140_v32 }
 0x14c   : > { %577 = vst.msk [vmem:[#allocation3 + $0x38] sm:$0xff] (!%p4673_p0), %vm568_vm0, %v6140_v32  ;;  %579 = vst.msk [vmem:[#allocation3 + $0x48] sm:$0xff] (!%p4673_p0), %vm568_vm0, %v6140_v32 }
 0x14d   : > { %580 = vst.msk [vmem:[#allocation3 + $0x50] sm:$0xff] (!%p4673_p0), %vm568_vm0, %v6140_v32  ;;  %582 = vst.msk [vmem:[#allocation3 + $0x60] sm:$0xff] (!%p4673_p0), %vm568_vm0, %v6140_v32 }
 0x14e   : > { %583 = vst.msk [vmem:[#allocation3 + $0x68] sm:$0xff] %vm568_vm0, %v6140_v32  ;;  %585 = vst.msk [vmem:[#allocation3 + $0x78] sm:$0xff] %vm568_vm0, %v6140_v32 }
 0x14f   : > { %586 = vst.msk [vmem:[#allocation3 + $0x80] sm:$0xff] %vm568_vm0, %v6140_v32  ;;  %588 = vst.msk [vmem:[#allocation3 + $0x90] sm:$0xff] %vm568_vm0, %v6140_v32  ;;  %v689_v33 = vld [vmem:[#allocation3] sm:$0xff] }
 0x150   : > { %589 = vst.msk [vmem:[#allocation3 + $0x98] sm:$0xff] %vm568_vm0, %v6140_v32  ;;  %591 = vst.msk [vmem:[#allocation3 + $0xa8] sm:$0xff] %vm568_vm0, %v6140_v32  ;;  %v725_v34 = vld [vmem:[#allocation3 + $0x1] sm:$0xff] }
 0x151   : > { %592 = vst.msk [vmem:[#allocation3 + $0xb0] sm:$0xff] %vm568_vm0, %v6140_v32  ;;  %594 = vst.msk [vmem:[#allocation3 + $0xc0] sm:$0xff] %vm568_vm0, %v6140_v32  ;;  %v797_v35 = vld [vmem:[#allocation3 + $0x2] sm:$0xff]  ;;  %v761_v39 = vmax.f32 %v689_v33, %v725_v34 }
 0x152   : > { %595 = vst.msk [vmem:[#allocation3 + $0xc8] sm:$0xff] %vm568_vm0, %v6140_v32  ;;  %597 = vst.msk [vmem:[#allocation3 + $0xd8] sm:$0xff] %vm568_vm0, %v6140_v32  ;;  %v690_v46 = vld [vmem:[#allocation3 + $0x8] sm:$0xff] }
 0x153   : > { %598 = vst.msk [vmem:[#allocation3 + $0xe0] sm:$0xff] %vm568_vm0, %v6140_v32  ;;  %600 = vst.msk [vmem:[#allocation3 + $0xf0] sm:$0xff] %vm568_vm0, %v6140_v32  ;;  %v833_v45 = vmax.f32 %v761_v39, %v797_v35 }
 0x154   : > { %601 = vst.msk [vmem:[#allocation3 + $0xf8] sm:$0xff] %vm568_vm0, %v6140_v32  ;;  %603 = vst.msk [vmem:[#allocation3 + $0x108] sm:$0xff] %vm568_vm0, %v6140_v32 }
 0x155   : > { %604 = vst.msk [vmem:[#allocation3 + $0x110] sm:$0xff] %vm568_vm0, %v6140_v32  ;;  %606 = vst.msk [vmem:[#allocation3 + $0x120] sm:$0xff] %vm568_vm0, %v6140_v32 }
 0x156   : > { %607 = vst.msk [vmem:[#allocation3 + $0x128] sm:$0xff] %vm568_vm0, %v6140_v32  ;;  %609 = vst.msk [vmem:[#allocation3 + $0x138] sm:$0xff] %vm568_vm0, %v6140_v32 }
 0x157   : > { %610 = vst.msk [vmem:[#allocation3 + $0x140] sm:$0xff] %vm568_vm0, %v6140_v32  ;;  %612 = vst.msk [vmem:[#allocation3 + $0x150] sm:$0xff] %vm568_vm0, %v6140_v32 }
 0x158   : > { %613 = vst.msk [vmem:[#allocation3 + $0x158] sm:$0xff] %vm568_vm0, %v6140_v32  ;;  %615 = vst.msk [vmem:[#allocation3 + $0x168] sm:$0xff] %vm568_vm0, %v6140_v32 }
 0x159   : > { %616 = vst.msk [vmem:[#allocation3 + $0x170] sm:$0xff] %vm568_vm0, %v6140_v32  ;;  %618 = vst.msk [vmem:[#allocation3 + $0x180] sm:$0xff] %vm568_vm0, %v6140_v32 }
 0x15a   : > { %619 = vst.msk [vmem:[#allocation3 + $0x188] sm:$0xff] %vm568_vm0, %v6140_v32  ;;  %621 = vst.msk [vmem:[#allocation3 + $0x198] sm:$0xff] %vm568_vm0, %v6140_v32 }
 0x15b   : > { %622 = vst.msk [vmem:[#allocation3 + $0x1a0] sm:$0xff] %vm568_vm0, %v6140_v32  ;;  %624 = vst.msk [vmem:[#allocation4] sm:$0xff] %vm568_vm0, %v6140_v32 }
 0x15c   : > { %625 = vst.msk [vmem:[#allocation4 + $0x8] sm:$0xff] %vm568_vm0, %v6140_v32  ;;  %626 = vst.msk [vmem:[#allocation4 + $0x10] sm:$0xff] %vm568_vm0, %v6140_v32 }
 0x15d   : > { %627 = vst.msk [vmem:[#allocation4 + $0x18] sm:$0xff] %vm568_vm0, %v6140_v32  ;;  %628 = vst.msk [vmem:[#allocation4 + $0x20] sm:$0xff] %vm568_vm0, %v6140_v32 }
 0x15e   : > { %629 = vst.msk [vmem:[#allocation4 + $0x28] sm:$0xff] %vm568_vm0, %v6140_v32  ;;  %630 = vst.msk [vmem:[#allocation4 + $0x30] sm:$0xff] %vm568_vm0, %v6140_v32 }
 0x15f   : > { %631 = vst.msk [vmem:[#allocation4 + $0x38] sm:$0xff] %vm568_vm0, %v6140_v32  ;;  %632 = vst.msk [vmem:[#allocation4 + $0x40] sm:$0xff] %vm568_vm0, %v6140_v32 }
 0x160   : > { %633 = vst.msk [vmem:[#allocation4 + $0x48] sm:$0xff] %vm568_vm0, %v6140_v32  ;;  %634 = vst.msk [vmem:[#allocation4 + $0x50] sm:$0xff] %vm568_vm0, %v6140_v32 }
 0x161   : > { %635 = vst.msk [vmem:[#allocation4 + $0x58] sm:$0xff] %vm568_vm0, %v6140_v32  ;;  %636 = vst.msk [vmem:[#allocation4 + $0x60] sm:$0xff] %vm568_vm0, %v6140_v32 }
 0x162   : > { %637 = vst.msk [vmem:[#allocation4 + $0x68] sm:$0xff] %vm568_vm0, %v6140_v32  ;;  %638 = vst.msk [vmem:[#allocation4 + $0x70] sm:$0xff] %vm568_vm0, %v6140_v32 }
 0x163   : > { %639 = vst.msk [vmem:[#allocation4 + $0x78] sm:$0xff] %vm568_vm0, %v6140_v32  ;;  %640 = vst.msk [vmem:[#allocation4 + $0x80] sm:$0xff] %vm568_vm0, %v6140_v32 }
 0x164   : > { %641 = vst.msk [vmem:[#allocation4 + $0x88] sm:$0xff] %vm568_vm0, %v6140_v32  ;;  %642 = vst.msk [vmem:[#allocation4 + $0x90] sm:$0xff] %vm568_vm0, %v6140_v32 }
 0x165   : > { %643 = vst.msk [vmem:[#allocation4 + $0x98] sm:$0xff] %vm568_vm0, %v6140_v32  ;;  %644 = vst.msk [vmem:[#allocation4 + $0xa0] sm:$0xff] %vm568_vm0, %v6140_v32 }
 0x166   : > { %645 = vst.msk [vmem:[#allocation4 + $0xa8] sm:$0xff] %vm568_vm0, %v6140_v32  ;;  %646 = vst.msk [vmem:[#allocation4 + $0xb0] sm:$0xff] %vm568_vm0, %v6140_v32 }
 0x167   : > { %647 = vst.msk [vmem:[#allocation4 + $0xb8] sm:$0xff] %vm568_vm0, %v6140_v32  ;;  %648 = vst.msk [vmem:[#allocation4 + $0xc0] sm:$0xff] %vm568_vm0, %v6140_v32 }
 0x168   : > { %649 = vst.msk [vmem:[#allocation4 + $0xc8] sm:$0xff] %vm568_vm0, %v6140_v32  ;;  %650 = vst.msk [vmem:[#allocation4 + $0xd0] sm:$0xff] %vm568_vm0, %v6140_v32 }
 0x169   : > { %651 = vst.msk [vmem:[#allocation4 + $0xd8] sm:$0xff] %vm568_vm0, %v6140_v32  ;;  %652 = vst.msk [vmem:[#allocation4 + $0xe0] sm:$0xff] %vm568_vm0, %v6140_v32 }
 0x16a   : > { %653 = vst.msk [vmem:[#allocation4 + $0xe8] sm:$0xff] %vm568_vm0, %v6140_v32  ;;  %654 = vst.msk [vmem:[#allocation4 + $0xf0] sm:$0xff] %vm568_vm0, %v6140_v32 }
 0x16b   : > { %655 = vst.msk [vmem:[#allocation4 + $0xf8] sm:$0xff] %vm568_vm0, %v6140_v32  ;;  %657 = vst.msk [vmem:[#allocation3 + $0x19] sm:$0xff] %vm568_vm0, %v6631_v0 }
 0x16c   : > { %572 = vst.msk [vmem:[#allocation3 + $0x10] sm:$0x3] %vm571_vm1, %v6140_v32  ;;  %575 = vst.msk [vmem:[#allocation3 + $0x28] sm:$0x3] %vm571_vm1, %v6140_v32 }
 0x16d   : > { %578 = vst.msk [vmem:[#allocation3 + $0x40] sm:$0x3] %vm571_vm1, %v6140_v32  ;;  %581 = vst.msk [vmem:[#allocation3 + $0x58] sm:$0x3] %vm571_vm1, %v6140_v32 }
 0x16e   : > { %584 = vst.msk [vmem:[#allocation3 + $0x70] sm:$0x3] %vm571_vm1, %v6140_v32  ;;  %587 = vst.msk [vmem:[#allocation3 + $0x88] sm:$0x3] %vm571_vm1, %v6140_v32 }
 0x16f   : > { %590 = vst.msk [vmem:[#allocation3 + $0xa0] sm:$0x3] %vm571_vm1, %v6140_v32  ;;  %593 = vst.msk [vmem:[#allocation3 + $0xb8] sm:$0x3] %vm571_vm1, %v6140_v32 }
 0x170   : > { %596 = vst.msk [vmem:[#allocation3 + $0xd0] sm:$0x3] %vm571_vm1, %v6140_v32  ;;  %599 = vst.msk [vmem:[#allocation3 + $0xe8] sm:$0x3] %vm571_vm1, %v6140_v32 }
 0x171   : > { %602 = vst.msk [vmem:[#allocation3 + $0x100] sm:$0x3] %vm571_vm1, %v6140_v32  ;;  %605 = vst.msk [vmem:[#allocation3 + $0x118] sm:$0x3] %vm571_vm1, %v6140_v32 }
 0x172   : > { %608 = vst.msk [vmem:[#allocation3 + $0x130] sm:$0x3] %vm571_vm1, %v6140_v32  ;;  %611 = vst.msk [vmem:[#allocation3 + $0x148] sm:$0x3] %vm571_vm1, %v6140_v32  ;;  %v691_v36 = vld [vmem:[#allocation3 + $0x18] sm:$0xff] }
 0x173   : > { %614 = vst.msk [vmem:[#allocation3 + $0x160] sm:$0x3] %vm571_vm1, %v6140_v32  ;;  %617 = vst.msk [vmem:[#allocation3 + $0x178] sm:$0x3] %vm571_vm1, %v6140_v32  ;;  %v727_v38 = vld [vmem:[#allocation3 + $0x19] sm:$0xff]  ;;  %v726_v50 = vld [vmem:[#allocation3 + $0x9] sm:$0xff] }
 0x174   : > { %620 = vst.msk [vmem:[#allocation3 + $0x190] sm:$0x3] %vm571_vm1, %v6140_v32  ;;  %623 = vst.msk [vmem:[#allocation3 + $0x1a8] sm:$0x3] %vm571_vm1, %v6140_v32  ;;  %v763_v41 = vmax.f32 %v691_v36, %v727_v38  ;;  %v762_v54 = vmax.f32 %v690_v46, %v726_v50  ;;  %v798_v57 = vld [vmem:[#allocation3 + $0xa] sm:$0xff] }
 0x175   : > { %513 = vst.msk [vmem:[#allocation2] sm:$0xff] %vm512_vm2, %v6140_v32  ;;  %514 = vst.msk [vmem:[#allocation2 + $0x8] sm:$0xff] %vm512_vm2, %v6140_v32 }
 0x176   : > { %517 = vst.msk [vmem:[#allocation2 + $0x18] sm:$0xff] %vm512_vm2, %v6140_v32  ;;  %518 = vst.msk [vmem:[#allocation2 + $0x20] sm:$0xff] %vm512_vm2, %v6140_v32  ;;  %v834_v63 = vmax.f32 %v762_v54, %v798_v57 }
 0x177   : > { %520 = vst.msk [vmem:[#allocation2 + $0x30] sm:$0xff] %vm512_vm2, %v6140_v32  ;;  %521 = vst.msk [vmem:[#allocation2 + $0x38] sm:$0xff] %vm512_vm2, %v6140_v32 }
 0x178   : > { %523 = vst.msk [vmem:[#allocation2 + $0x48] sm:$0xff] %vm512_vm2, %v6140_v32  ;;  %524 = vst.msk [vmem:[#allocation2 + $0x50] sm:$0xff] %vm512_vm2, %v6140_v32 }
 0x179   : > { %526 = vst.msk [vmem:[#allocation2 + $0x60] sm:$0xff] %vm512_vm2, %v6140_v32  ;;  %527 = vst.msk [vmem:[#allocation2 + $0x68] sm:$0xff] %vm512_vm2, %v6140_v32 }
 0x17a   : > { %529 = vst.msk [vmem:[#allocation2 + $0x78] sm:$0xff] %vm512_vm2, %v6140_v32  ;;  %530 = vst.msk [vmem:[#allocation2 + $0x80] sm:$0xff] %vm512_vm2, %v6140_v32 }
 0x17b   : > { %532 = vst.msk [vmem:[#allocation2 + $0x90] sm:$0xff] %vm512_vm2, %v6140_v32  ;;  %533 = vst.msk [vmem:[#allocation2 + $0x98] sm:$0xff] %vm512_vm2, %v6140_v32 }
 0x17c   : > { %535 = vst.msk [vmem:[#allocation2 + $0xa8] sm:$0xff] %vm512_vm2, %v6140_v32  ;;  %536 = vst.msk [vmem:[#allocation2 + $0xb0] sm:$0xff] %vm512_vm2, %v6140_v32 }
 0x17d   : > { %538 = vst.msk [vmem:[#allocation2 + $0xc0] sm:$0xff] %vm512_vm2, %v6140_v32  ;;  %539 = vst.msk [vmem:[#allocation2 + $0xc8] sm:$0xff] %vm512_vm2, %v6140_v32 }
 0x17e   : > { %541 = vst.msk [vmem:[#allocation2 + $0xd8] sm:$0xff] %vm512_vm2, %v6140_v32  ;;  %542 = vst.msk [vmem:[#allocation2 + $0xe0] sm:$0xff] %vm512_vm2, %v6140_v32 }
 0x17f   : > { %544 = vst.msk [vmem:[#allocation2 + $0xf0] sm:$0xff] %vm512_vm2, %v6140_v32  ;;  %545 = vst.msk [vmem:[#allocation2 + $0xf8] sm:$0xff] %vm512_vm2, %v6140_v32 }
 0x180   : > { %547 = vst.msk [vmem:[#allocation2 + $0x108] sm:$0xff] %vm512_vm2, %v6140_v32  ;;  %548 = vst.msk [vmem:[#allocation2 + $0x110] sm:$0xff] %vm512_vm2, %v6140_v32 }
 0x181   : > { %550 = vst.msk [vmem:[#allocation2 + $0x120] sm:$0xff] %vm512_vm2, %v6140_v32  ;;  %551 = vst.msk [vmem:[#allocation2 + $0x128] sm:$0xff] %vm512_vm2, %v6140_v32 }
 0x182   : > { %553 = vst.msk [vmem:[#allocation2 + $0x138] sm:$0xff] %vm512_vm2, %v6140_v32  ;;  %554 = vst.msk [vmem:[#allocation2 + $0x140] sm:$0xff] %vm512_vm2, %v6140_v32 }
 0x183   : > { %556 = vst.msk [vmem:[#allocation2 + $0x150] sm:$0xff] %vm512_vm2, %v6140_v32  ;;  %557 = vst.msk [vmem:[#allocation2 + $0x158] sm:$0xff] %vm512_vm2, %v6140_v32 }
 0x184   : > { %559 = vst.msk [vmem:[#allocation2 + $0x168] sm:$0xff] %vm512_vm2, %v6140_v32  ;;  %560 = vst.msk [vmem:[#allocation2 + $0x170] sm:$0xff] %vm512_vm2, %v6140_v32 }
 0x185   : > { %562 = vst.msk [vmem:[#allocation2 + $0x180] sm:$0xff] %vm512_vm2, %v6140_v32  ;;  %563 = vst.msk [vmem:[#allocation2 + $0x188] sm:$0xff] %vm512_vm2, %v6140_v32 }
 0x186   : > { %565 = vst.msk [vmem:[#allocation2 + $0x198] sm:$0xff] %vm512_vm2, %v6140_v32  ;;  %566 = vst.msk [vmem:[#allocation2 + $0x1a0] sm:$0xff] %vm512_vm2, %v6140_v32 }
 0x187   : > { %659 = vst.msk [vmem:[#allocation3 + $0x31] sm:$0xff] %vm568_vm0, %v6637_v2  ;;  %661 = vst.msk [vmem:[#allocation3 + $0x49] sm:$0xff] %vm568_vm0, %v6643_v4 }
 0x188   : > { %663 = vst.msk [vmem:[#allocation3 + $0x61] sm:$0xff] %vm568_vm0, %v6649_v6  ;;  %665 = vst.msk [vmem:[#allocation3 + $0x79] sm:$0xff] %vm568_vm0, %v6655_v8 }
 0x189   : > { %667 = vst.msk [vmem:[#allocation3 + $0x91] sm:$0xff] %vm568_vm0, %v6661_v10  ;;  %669 = vst.msk [vmem:[#allocation3 + $0xa9] sm:$0xff] %vm568_vm0, %v6667_v12 }
 0x18a   : > { %671 = vst.msk [vmem:[#allocation3 + $0xc1] sm:$0xff] %vm568_vm0, %v6673_v14  ;;  %673 = vst.msk [vmem:[#allocation3 + $0xd9] sm:$0xff] %vm568_vm0, %v6679_v16 }
 0x18b   : > { %675 = vst.msk [vmem:[#allocation3 + $0xf1] sm:$0xff] %vm568_vm0, %v6685_v18  ;;  %677 = vst.msk [vmem:[#allocation3 + $0x109] sm:$0xff] %vm568_vm0, %v6691_v20 }
 0x18c   : > { %679 = vst.msk [vmem:[#allocation3 + $0x121] sm:$0xff] %vm568_vm0, %v6697_v22  ;;  %681 = vst.msk [vmem:[#allocation3 + $0x139] sm:$0xff] %vm568_vm0, %v6703_v24 }
 0x18d   : > { %683 = vst.msk [vmem:[#allocation3 + $0x151] sm:$0xff] %vm568_vm0, %v6709_v26  ;;  %685 = vst.msk [vmem:[#allocation3 + $0x169] sm:$0xff] %vm568_vm0, %v6715_v28 }
 0x18e   : > { %687 = vst.msk [vmem:[#allocation3 + $0x181] sm:$0xff] %vm568_vm0, %v6721_v30  ;;  %658 = vst.msk [vmem:[#allocation3 + $0x21] sm:$0xff] %vm568_vm0, %v6634_v1  ;;  %v693_v37 = vld [vmem:[#allocation3 + $0x30] sm:$0xff]  ;;  %v695_v61 = vld [vmem:[#allocation3 + $0x48] sm:$0xff] }
 0x18f   : > { %660 = vst.msk [vmem:[#allocation3 + $0x39] sm:$0xff] %vm568_vm0, %v6640_v3  ;;  %662 = vst.msk [vmem:[#allocation3 + $0x51] sm:$0xff] %vm568_vm0, %v6646_v5  ;;  %v729_v40 = vld [vmem:[#allocation3 + $0x31] sm:$0xff]  ;;  %v731_v62 = vld [vmem:[#allocation3 + $0x49] sm:$0xff] }
 0x190   : > { %664 = vst.msk [vmem:[#allocation3 + $0x69] sm:$0xff] %vm568_vm0, %v6652_v7  ;;  %666 = vst.msk [vmem:[#allocation3 + $0x81] sm:$0xff] %vm568_vm0, %v6658_v9  ;;  %v765_v44 = vmax.f32 %v693_v37, %v729_v40  ;;  %v767_v34 = vmax.f32 %v695_v61, %v731_v62  ;;  %v735_v57 = vld [vmem:[#allocation3 + $0x79] sm:$0xff] }
 0x191   : > { %668 = vst.msk [vmem:[#allocation3 + $0x99] sm:$0xff] %vm568_vm0, %v6664_v11  ;;  %670 = vst.msk [vmem:[#allocation3 + $0xb1] sm:$0xff] %vm568_vm0, %v6670_v13 }
 0x192   : > { %672 = vst.msk [vmem:[#allocation3 + $0xc9] sm:$0xff] %vm568_vm0, %v6676_v15  ;;  %674 = vst.msk [vmem:[#allocation3 + $0xe1] sm:$0xff] %vm568_vm0, %v6682_v17 }
 0x193   : > { %676 = vst.msk [vmem:[#allocation3 + $0xf9] sm:$0xff] %vm568_vm0, %v6688_v19  ;;  %678 = vst.msk [vmem:[#allocation3 + $0x111] sm:$0xff] %vm568_vm0, %v6694_v21 }
 0x194   : > { %680 = vst.msk [vmem:[#allocation3 + $0x129] sm:$0xff] %vm568_vm0, %v6700_v23  ;;  %682 = vst.msk [vmem:[#allocation3 + $0x141] sm:$0xff] %vm568_vm0, %v6706_v25 }
 0x195   : > { %684 = vst.msk [vmem:[#allocation3 + $0x159] sm:$0xff] %vm568_vm0, %v6712_v27  ;;  %686 = vst.msk [vmem:[#allocation3 + $0x171] sm:$0xff] %vm568_vm0, %v6718_v29  ;;  %v799_v42 = vld [vmem:[#allocation3 + $0x1a] sm:$0xff]  ;;  %v800_v58 = vld [vmem:[#allocation3 + $0x22] sm:$0xff] }
 0x196   : > { %688 = vst.msk [vmem:[#allocation3 + $0x189] sm:$0xff] %vm568_vm0, %v6724_v31  ;;  %v801_v43 = vld [vmem:[#allocation3 + $0x32] sm:$0xff]  ;;  %v692_v47 = vld [vmem:[#allocation3 + $0x20] sm:$0xff]  ;;  %v835_v49 = vmax.f32 %v763_v41, %v799_v42  ;;  %v803_v35 = vld [vmem:[#allocation3 + $0x4a] sm:$0xff] }
 0x197   : > { %516 = vst.msk [vmem:[#allocation2 + $0x10] sm:$0x3] %vm515_vm3, %v6140_v32  ;;  %519 = vst.msk [vmem:[#allocation2 + $0x28] sm:$0x3] %vm515_vm3, %v6140_v32  ;;  %v694_v48 = vld [vmem:[#allocation3 + $0x38] sm:$0xff]  ;;  %v728_v51 = vld [vmem:[#allocation3 + $0x21] sm:$0xff]  ;;  %v837_v53 = vmax.f32 %v765_v44, %v801_v43  ;;  %v839_v46 = vmax.f32 %v767_v34, %v803_v35 }
 0x198   : > { %522 = vst.msk [vmem:[#allocation2 + $0x40] sm:$0x3] %vm515_vm3, %v6140_v32  ;;  %525 = vst.msk [vmem:[#allocation2 + $0x58] sm:$0x3] %vm515_vm3, %v6140_v32  ;;  %v730_v52 = vld [vmem:[#allocation3 + $0x39] sm:$0xff]  ;;  %v764_v55 = vmax.f32 %v692_v47, %v728_v51  ;;  %v869_v59 = vmax.f32 %v833_v45, %v835_v49  ;;  %v696_v36 = vld [vmem:[#allocation3 + $0x50] sm:$0xff] }
 0x199   : > { %528 = vst.msk [vmem:[#allocation2 + $0x70] sm:$0x3] %vm515_vm3, %v6140_v32  ;;  %531 = vst.msk [vmem:[#allocation2 + $0x88] sm:$0x3] %vm515_vm3, %v6140_v32  ;;  %v766_v56 = vmax.f32 %v694_v48, %v730_v52  ;;  %v802_v60 = vld [vmem:[#allocation3 + $0x3a] sm:$0xff]  ;;  %v732_v37 = vld [vmem:[#allocation3 + $0x51] sm:$0xff]  ;;  %v871_v39 = vmax.f32 %v835_v49, %v837_v53 }
 0x19a   : > { %534 = vst.msk [vmem:[#allocation2 + $0xa0] sm:$0x3] %vm515_vm3, %v6140_v32  ;;  %537 = vst.msk [vmem:[#allocation2 + $0xb8] sm:$0x3] %vm515_vm3, %v6140_v32  ;;  %v901_v38 = vmax.f32 %v869_v59, %v837_v53  ;;  %v768_v40 = vmax.f32 %v696_v36, %v732_v37  ;;  %v804_v41 = vld [vmem:[#allocation3 + $0x52] sm:$0xff]  ;;  %v697_v42 = vld [vmem:[#allocation3 + $0x60] sm:$0xff] }
 0x19b   : > { %540 = vst.msk [vmem:[#allocation2 + $0xd0] sm:$0x3] %vm515_vm3, %v6140_v32  ;;  %543 = vst.msk [vmem:[#allocation2 + $0xe8] sm:$0x3] %vm515_vm3, %v6140_v32  ;;  %v838_v33 = vmax.f32 %v766_v56, %v802_v60  ;;  %v733_v43 = vld [vmem:[#allocation3 + $0x61] sm:$0xff]  ;;  %v734_v51 = vld [vmem:[#allocation3 + $0x69] sm:$0xff]  ;;  %v903_v49 = vmax.f32 %v871_v39, %v839_v46  ;;  %v873_v60 = vmax.f32 %v837_v53, %v839_v46 }
 0x19c   : > { %546 = vst.msk [vmem:[#allocation2 + $0x100] sm:$0x3] %vm515_vm3, %v6140_v32  ;;  %549 = vst.msk [vmem:[#allocation2 + $0x118] sm:$0x3] %vm515_vm3, %v6140_v32  ;;  %v769_v45 = vmax.f32 %v697_v42, %v733_v43  ;;  %v805_v48 = vld [vmem:[#allocation3 + $0x62] sm:$0xff]  ;;  %v840_v52 = vmax.f32 %v768_v40, %v804_v41  ;;  %v699_v56 = vld [vmem:[#allocation3 + $0x78] sm:$0xff] }
 0x19d   : > { %552 = vst.msk [vmem:[#allocation2 + $0x130] sm:$0x3] %vm515_vm3, %v6140_v32  ;;  %555 = vst.msk [vmem:[#allocation2 + $0x148] sm:$0x3] %vm515_vm3, %v6140_v32  ;;  %v698_v50 = vld [vmem:[#allocation3 + $0x68] sm:$0xff]  ;;  %v807_v61 = vld [vmem:[#allocation3 + $0x7a] sm:$0xff]  ;;  %v771_v36 = vmax.f32 %v699_v56, %v735_v57 }
 0x19e   : > { %558 = vst.msk [vmem:[#allocation2 + $0x160] sm:$0x3] %vm515_vm3, %v6140_v32  ;;  %561 = vst.msk [vmem:[#allocation2 + $0x178] sm:$0x3] %vm515_vm3, %v6140_v32  ;;  %v770_v54 = vmax.f32 %v698_v50, %v734_v51  ;;  %v841_v59 = vmax.f32 %v769_v45, %v805_v48  ;;  %v700_v62 = vld [vmem:[#allocation3 + $0x80] sm:$0xff]  ;;  %v874_v35 = vmax.f32 %v838_v33, %v840_v52  ;;  %v701_v42 = vld [vmem:[#allocation3 + $0x90] sm:$0xff] }
 0x19f   : > { %564 = vst.msk [vmem:[#allocation2 + $0x190] sm:$0x3] %vm515_vm3, %v6140_v32  ;;  %567 = vst.msk [vmem:[#allocation2 + $0x1a8] sm:$0x3] %vm515_vm3, %v6140_v32  ;;  %v836_v32 = vmax.f32 %v764_v55, %v800_v58  ;;  %v806_v55 = vld [vmem:[#allocation3 + $0x6a] sm:$0xff]  ;;  %v808_v37 = vld [vmem:[#allocation3 + $0x82] sm:$0xff]  ;;  %v843_v48 = vmax.f32 %v771_v36, %v807_v61 }
 0x1a0   : > { %933 = vst.msk [vmem:[#allocation5] sm:$0xff] %vm568_vm0, %v901_v38  ;;  %v737_v43 = vld [vmem:[#allocation3 + $0x91] sm:$0xff]  ;;  %935 = vst.msk [vmem:[#allocation5 + $0x10] sm:$0xff] %vm568_vm0, %v903_v49  ;;  %v905_v38 = vmax.f32 %v873_v60, %v841_v59  ;;  %v875_v40 = vmax.f32 %v839_v46, %v841_v59  ;;  %v738_v45 = vld [vmem:[#allocation3 + $0x99] sm:$0xff] }
 0x1a1   : > { %v870_v44 = vmax.f32 %v834_v63, %v836_v32  ;;  %v872_v47 = vmax.f32 %v836_v32, %v838_v33  ;;  %v736_v63 = vld [vmem:[#allocation3 + $0x81] sm:$0xff]  ;;  %v842_v32 = vmax.f32 %v770_v54, %v806_v55  ;;  %v773_v39 = vmax.f32 %v701_v42, %v737_v43  ;;  %v702_v53 = vld [vmem:[#allocation3 + $0x98] sm:$0xff]  ;;  %v739_v55 = vld [vmem:[#allocation3 + $0xa9] sm:$0xff] }
 0x1a2   : > { %v772_v41 = vmax.f32 %v700_v62, %v736_v63  ;;  %v774_v50 = vmax.f32 %v702_v53, %v738_v45  ;;  %v810_v51 = vld [vmem:[#allocation3 + $0x9a] sm:$0xff]  ;;  %v703_v54 = vld [vmem:[#allocation3 + $0xa8] sm:$0xff]  ;;  %937 = vst.msk [vmem:[#allocation5 + $0x20] sm:$0xff] %vm568_vm0, %v905_v38  ;;  %v704_v49 = vld [vmem:[#allocation3 + $0xb0] sm:$0xff]  ;;  %v907_v62 = vmax.f32 %v875_v40, %v843_v48  ;;  %v877_v63 = vmax.f32 %v841_v59, %v843_v48 }
 0x1a3   : > { %v902_v58 = vmax.f32 %v870_v44, %v838_v33  ;;  %v904_v34 = vmax.f32 %v872_v47, %v840_v52  ;;  %v809_v44 = vld [vmem:[#allocation3 + $0x92] sm:$0xff]  ;;  %v906_v47 = vmax.f32 %v874_v35, %v842_v32  ;;  %v876_v33 = vmax.f32 %v840_v52, %v842_v32  ;;  %v811_v46 = vld [vmem:[#allocation3 + $0xaa] sm:$0xff]  ;;  %v705_v52 = vld [vmem:[#allocation3 + $0xc0] sm:$0xff] }
 0x1a4   : > { %v844_v56 = vmax.f32 %v772_v41, %v808_v37  ;;  %v845_v57 = vmax.f32 %v773_v39, %v809_v44  ;;  %v740_v60 = vld [vmem:[#allocation3 + $0xb1] sm:$0xff]  ;;  %v741_v36 = vld [vmem:[#allocation3 + $0xc1] sm:$0xff]  ;;  %v742_v41 = vld [vmem:[#allocation3 + $0xc9] sm:$0xff]  ;;  %939 = vst.msk [vmem:[#allocation5 + $0x30] sm:$0xff] %vm568_vm0, %v907_v62 }
 0x1a5   : > { %934 = vst.msk [vmem:[#allocation5 + $0x8] sm:$0xff] %vm568_vm0, %v902_v58  ;;  %936 = vst.msk [vmem:[#allocation5 + $0x18] sm:$0xff] %vm568_vm0, %v904_v34  ;;  %v775_v58 = vmax.f32 %v703_v54, %v739_v55  ;;  %v846_v34 = vmax.f32 %v774_v50, %v810_v51  ;;  %v776_v35 = vmax.f32 %v704_v49, %v740_v60  ;;  %v812_v61 = vld [vmem:[#allocation3 + $0xb2] sm:$0xff]  ;;  %v813_v38 = vld [vmem:[#allocation3 + $0xc2] sm:$0xff] }
 0x1a6   : > { %938 = vst.msk [vmem:[#allocation5 + $0x28] sm:$0xff] %vm568_vm0, %v906_v47  ;;  %v908_v42 = vmax.f32 %v876_v33, %v844_v56  ;;  %v878_v43 = vmax.f32 %v842_v32, %v844_v56  ;;  %v879_v45 = vmax.f32 %v843_v48, %v845_v57  ;;  %v706_v37 = vld [vmem:[#allocation3 + $0xc8] sm:$0xff]  ;;  %v909_v39 = vmax.f32 %v877_v63, %v845_v57  ;;  %v707_v59 = vld [vmem:[#allocation3 + $0xd8] sm:$0xff]  ;;  %v708_v48 = vld [vmem:[#allocation3 + $0xe0] sm:$0xff] }
 0x1a7   : > { %v847_v53 = vmax.f32 %v775_v58, %v811_v46  ;;  %v848_v44 = vmax.f32 %v776_v35, %v812_v61  ;;  %v880_v54 = vmax.f32 %v844_v56, %v846_v34  ;;  %v777_v47 = vmax.f32 %v705_v52, %v741_v36  ;;  %v814_v40 = vld [vmem:[#allocation3 + $0xca] sm:$0xff]  ;;  %v743_v50 = vld [vmem:[#allocation3 + $0xd9] sm:$0xff]  ;;  %v744_v46 = vld [vmem:[#allocation3 + $0xe1] sm:$0xff] }
 0x1a8   : > { %940 = vst.msk [vmem:[#allocation5 + $0x38] sm:$0xff] %vm568_vm0, %v908_v42  ;;  %v910_v51 = vmax.f32 %v878_v43, %v846_v34  ;;  %v778_v32 = vmax.f32 %v706_v37, %v742_v41  ;;  %v815_v58 = vld [vmem:[#allocation3 + $0xda] sm:$0xff]  ;;  %941 = vst.msk [vmem:[#allocation5 + $0x40] sm:$0xff] %vm568_vm0, %v909_v39  ;;  %v779_v63 = vmax.f32 %v707_v59, %v743_v50  ;;  %v816_v56 = vld [vmem:[#allocation3 + $0xe2] sm:$0xff] }
 0x1a9   : > { %v911_v55 = vmax.f32 %v879_v45, %v847_v53  ;;  %v881_v33 = vmax.f32 %v845_v57, %v847_v53  ;;  %v912_v49 = vmax.f32 %v880_v54, %v848_v44  ;;  %v849_v60 = vmax.f32 %v777_v47, %v813_v38  ;;  %v709_v35 = vld [vmem:[#allocation3 + $0xf0] sm:$0xff]  ;;  %v710_v43 = vld [vmem:[#allocation3 + $0xf8] sm:$0xff]  ;;  %v711_v54 = vld [vmem:[#allocation3 + $0x108] sm:$0xff] }
 0x1aa   : > { %v882_v62 = vmax.f32 %v846_v34, %v848_v44  ;;  %v745_v61 = vld [vmem:[#allocation3 + $0xf1] sm:$0xff]  ;;  %942 = vst.msk [vmem:[#allocation5 + $0x48] sm:$0xff] %vm568_vm0, %v910_v51  ;;  %v850_v52 = vmax.f32 %v778_v32, %v814_v40  ;;  %v780_v36 = vmax.f32 %v708_v48, %v744_v46  ;;  %v746_v45 = vld [vmem:[#allocation3 + $0xf9] sm:$0xff]  ;;  %v851_v41 = vmax.f32 %v779_v63, %v815_v58  ;;  %v747_v47 = vld [vmem:[#allocation3 + $0x109] sm:$0xff] }
 0x1ab   : > { %943 = vst.msk [vmem:[#allocation5 + $0x50] sm:$0xff] %vm568_vm0, %v911_v55  ;;  %v781_v57 = vmax.f32 %v709_v35, %v745_v61  ;;  %v817_v42 = vld [vmem:[#allocation3 + $0xf2] sm:$0xff]  ;;  %944 = vst.msk [vmem:[#allocation5 + $0x58] sm:$0xff] %vm568_vm0, %v912_v49  ;;  %v913_v37 = vmax.f32 %v881_v33, %v849_v60  ;;  %v883_v38 = vmax.f32 %v847_v53, %v849_v60  ;;  %v818_v39 = vld [vmem:[#allocation3 + $0xfa] sm:$0xff] }
 0x1ac   : > { %v782_v34 = vmax.f32 %v710_v43, %v746_v45  ;;  %v914_v59 = vmax.f32 %v882_v62, %v850_v52  ;;  %v852_v50 = vmax.f32 %v780_v36, %v816_v56  ;;  %v884_v51 = vmax.f32 %v848_v44, %v850_v52  ;;  %v819_v55 = vld [vmem:[#allocation3 + $0x10a] sm:$0xff]  ;;  %v820_v33 = vld [vmem:[#allocation3 + $0x112] sm:$0xff]  ;;  %v713_v58 = vld [vmem:[#allocation3 + $0x120] sm:$0xff] }
 0x1ad   : > { %v853_v31 = vmax.f32 %v781_v57, %v817_v42  ;;  %v712_v40 = vld [vmem:[#allocation3 + $0x110] sm:$0xff]  ;;  %945 = vst.msk [vmem:[#allocation5 + $0x60] sm:$0xff] %vm568_vm0, %v913_v37  ;;  %v915_v48 = vmax.f32 %v883_v38, %v851_v41  ;;  %v885_v46 = vmax.f32 %v849_v60, %v851_v41  ;;  %v783_v49 = vmax.f32 %v711_v54, %v747_v47  ;;  %v749_v53 = vld [vmem:[#allocation3 + $0x121] sm:$0xff]  ;;  %v715_v38 = vld [vmem:[#allocation3 + $0x138] sm:$0xff] }
 0x1ae   : > { %v748_v32 = vld [vmem:[#allocation3 + $0x111] sm:$0xff]  ;;  %v854_v35 = vmax.f32 %v782_v34, %v818_v39  ;;  %946 = vst.msk [vmem:[#allocation5 + $0x68] sm:$0xff] %vm568_vm0, %v914_v59  ;;  %v916_v63 = vmax.f32 %v884_v51, %v852_v50  ;;  %v886_v61 = vmax.f32 %v850_v52, %v852_v50  ;;  %v821_v44 = vld [vmem:[#allocation3 + $0x122] sm:$0xff]  ;;  %v785_v60 = vmax.f32 %v713_v58, %v749_v53  ;;  %v751_v34 = vld [vmem:[#allocation3 + $0x139] sm:$0xff] }
 0x1af   : > { %v887_v62 = vmax.f32 %v851_v41, %v853_v31  ;;  %v784_v56 = vmax.f32 %v712_v40, %v748_v32  ;;  %v714_v36 = vld [vmem:[#allocation3 + $0x128] sm:$0xff]  ;;  %947 = vst.msk [vmem:[#allocation5 + $0x70] sm:$0xff] %vm568_vm0, %v915_v48  ;;  %v917_v42 = vmax.f32 %v885_v46, %v853_v31  ;;  %v855_v43 = vmax.f32 %v783_v49, %v819_v55  ;;  %v823_v41 = vld [vmem:[#allocation3 + $0x13a] sm:$0xff]  ;;  %v717_v46 = vld [vmem:[#allocation3 + $0x150] sm:$0xff] }
 0x1b0   : > { %v750_v57 = vld [vmem:[#allocation3 + $0x129] sm:$0xff]  ;;  %v888_v45 = vmax.f32 %v852_v50, %v854_v35  ;;  %948 = vst.msk [vmem:[#allocation5 + $0x78] sm:$0xff] %vm568_vm0, %v916_v63  ;;  %v918_v39 = vmax.f32 %v886_v61, %v854_v35  ;;  %v787_v52 = vmax.f32 %v715_v38, %v751_v34  ;;  %v716_v59 = vld [vmem:[#allocation3 + $0x140] sm:$0xff]  ;;  %v857_v32 = vmax.f32 %v785_v60, %v821_v44  ;;  %v753_v49 = vld [vmem:[#allocation3 + $0x151] sm:$0xff] }
 0x1b1   : > { %v822_v37 = vld [vmem:[#allocation3 + $0x12a] sm:$0xff]  ;;  %v856_v54 = vmax.f32 %v784_v56, %v820_v33  ;;  %v786_v47 = vmax.f32 %v714_v36, %v750_v57  ;;  %v752_v51 = vld [vmem:[#allocation3 + $0x141] sm:$0xff]  ;;  %949 = vst.msk [vmem:[#allocation5 + $0x80] sm:$0xff] %vm568_vm0, %v917_v42  ;;  %v919_v40 = vmax.f32 %v887_v62, %v855_v43  ;;  %v889_v48 = vmax.f32 %v853_v31, %v855_v43  ;;  %v825_v61 = vld [vmem:[#allocation3 + $0x152] sm:$0xff] }
 0x1b2   : > { %v788_v55 = vmax.f32 %v716_v59, %v752_v51  ;;  %v824_v50 = vld [vmem:[#allocation3 + $0x142] sm:$0xff]  ;;  %950 = vst.msk [vmem:[#allocation5 + $0x88] sm:$0xff] %vm568_vm0, %v918_v39  ;;  %v859_v33 = vmax.f32 %v787_v52, %v823_v41  ;;  %v718_v56 = vld [vmem:[#allocation3 + $0x158] sm:$0xff]  ;;  %v891_v42 = vmax.f32 %v855_v43, %v857_v32  ;;  %v789_v44 = vmax.f32 %v717_v46, %v753_v49 }
 0x1b3   : > { %v920_v58 = vmax.f32 %v888_v45, %v856_v54  ;;  %v858_v53 = vmax.f32 %v786_v47, %v822_v37  ;;  %v890_v63 = vmax.f32 %v854_v35, %v856_v54  ;;  %v754_v36 = vld [vmem:[#allocation3 + $0x159] sm:$0xff]  ;;  %951 = vst.msk [vmem:[#allocation5 + $0x90] sm:$0xff] %vm568_vm0, %v919_v40  ;;  %v921_v57 = vmax.f32 %v889_v48, %v857_v32  ;;  %v719_v60 = vld [vmem:[#allocation3 + $0x168] sm:$0xff]  ;;  %v720_v47 = vld [vmem:[#allocation3 + $0x170] sm:$0xff] }
 0x1b4   : > { %v860_v62 = vmax.f32 %v788_v55, %v824_v50  ;;  %v826_v31 = vld [vmem:[#allocation3 + $0x15a] sm:$0xff]  ;;  %v755_v38 = vld [vmem:[#allocation3 + $0x169] sm:$0xff]  ;;  %v893_v45 = vmax.f32 %v857_v32, %v859_v33  ;;  %v790_v37 = vmax.f32 %v718_v56, %v754_v36  ;;  %v756_v52 = vld [vmem:[#allocation3 + $0x171] sm:$0xff]  ;;  %v923_v41 = vmax.f32 %v891_v42, %v859_v33 }
 0x1b5   : > { %952 = vst.msk [vmem:[#allocation5 + $0x98] sm:$0xff] %vm568_vm0, %v920_v58  ;;  %v922_v34 = vmax.f32 %v890_v63, %v858_v53  ;;  %v892_v39 = vmax.f32 %v856_v54, %v858_v53  ;;  %v827_v35 = vld [vmem:[#allocation3 + $0x16a] sm:$0xff]  ;;  %953 = vst.msk [vmem:[#allocation5 + $0xa0] sm:$0xff] %vm568_vm0, %v921_v57  ;;  %v861_v59 = vmax.f32 %v789_v44, %v825_v61  ;;  %v828_v40 = vld [vmem:[#allocation3 + $0x172] sm:$0xff] }
 0x1b6   : > { %v894_v51 = vmax.f32 %v858_v53, %v860_v62  ;;  %v791_v43 = vmax.f32 %v719_v60, %v755_v38  ;;  %v721_v48 = vld [vmem:[#allocation3 + $0x180] sm:$0xff]  ;;  %v862_v46 = vmax.f32 %v790_v37, %v826_v31  ;;  %v792_v49 = vmax.f32 %v720_v47, %v756_v52  ;;  %v722_v58 = vld [vmem:[#allocation3 + $0x188] sm:$0xff]  ;;  %955 = vst.msk [vmem:[#allocation5 + $0xb0] sm:$0xff] %vm568_vm0, %v923_v41  ;;  %v723_v42 = vld [vmem:[#allocation3 + $0x198] sm:$0xff] }
 0x1b7   : > { %v757_v55 = vld [vmem:[#allocation3 + $0x181] sm:$0xff]  ;;  %954 = vst.msk [vmem:[#allocation5 + $0xa8] sm:$0xff] %vm568_vm0, %v922_v34  ;;  %v924_v50 = vmax.f32 %v892_v39, %v860_v62  ;;  %v758_v63 = vld [vmem:[#allocation3 + $0x189] sm:$0xff]  ;;  %v925_v56 = vmax.f32 %v893_v45, %v861_v59  ;;  %v895_v57 = vmax.f32 %v859_v33, %v861_v59  ;;  %v759_v44 = vld [vmem:[#allocation3 + $0x199] sm:$0xff] }
 0x1b8   : > { %v793_v54 = vmax.f32 %v721_v48, %v757_v55  ;;  %v829_v32 = vld [vmem:[#allocation3 + $0x182] sm:$0xff]  ;;  %v863_v36 = vmax.f32 %v791_v43, %v827_v35  ;;  %v794_v61 = vmax.f32 %v722_v58, %v758_v63  ;;  %v830_v53 = vld [vmem:[#allocation3 + $0x18a] sm:$0xff]  ;;  %v926_v60 = vmax.f32 %v894_v51, %v862_v46  ;;  %v831_v39 = vld [vmem:[#allocation3 + $0x19a] sm:$0xff] }
 0x1b9   : > { %956 = vst.msk [vmem:[#allocation5 + $0xb8] sm:$0xff] %vm568_vm0, %v924_v50  ;;  %v864_v38 = vmax.f32 %v792_v49, %v828_v40  ;;  %v896_v34 = vmax.f32 %v860_v62, %v862_v46  ;;  %v724_v37 = vld [vmem:[#allocation3 + $0x1a0] sm:$0xff]  ;;  %957 = vst.msk [vmem:[#allocation5 + $0xc0] sm:$0xff] %vm568_vm0, %v925_v56  ;;  %v795_v35 = vmax.f32 %v723_v42, %v759_v44 }
 0x1ba   : > { %v865_v31 = vmax.f32 %v793_v54, %v829_v32  ;;  %v760_v47 = vld [vmem:[#allocation3 + $0x1a1] sm:$0xff]  ;;  %v927_v52 = vmax.f32 %v895_v57, %v863_v36  ;;  %v897_v41 = vmax.f32 %v861_v59, %v863_v36  ;;  %v866_v45 = vmax.f32 %v794_v61, %v830_v53  ;;  %958 = vst.msk [vmem:[#allocation5 + $0xc8] sm:$0xff] %vm568_vm0, %v926_v60 }
 0x1bb   : > { %v832_v33 = vld [vmem:[#allocation3 + $0x1a2] sm:$0xff]  ;;  %v928_v43 = vmax.f32 %v896_v34, %v864_v38  ;;  %v898_v48 = vmax.f32 %v862_v46, %v864_v38  ;;  %v796_v50 = vmax.f32 %v724_v37, %v760_v47  ;;  %v867_v51 = vmax.f32 %v795_v35, %v831_v39 }
 0x1bc   : > { %v899_v55 = vmax.f32 %v863_v36, %v865_v31  ;;  %959 = vst.msk [vmem:[#allocation5 + $0xd0] sm:$0xff] %vm568_vm0, %v927_v52  ;;  %v929_v62 = vmax.f32 %v897_v41, %v865_v31  ;;  %v900_v40 = vmax.f32 %v864_v38, %v866_v45 }
 0x1bd   : > { %960 = vst.msk [vmem:[#allocation5 + $0xd8] sm:$0xff] %vm568_vm0, %v928_v43  ;;  %v930_v49 = vmax.f32 %v898_v48, %v866_v45  ;;  %v868_v54 = vmax.f32 %v796_v50, %v832_v33 }
 0x1be   : > { %961 = vst.msk [vmem:[#allocation5 + $0xe0] sm:$0xff] %vm568_vm0, %v929_v62  ;;  %v931_v59 = vmax.f32 %v899_v55, %v867_v51 }
 0x1bf   : > { %962 = vst.msk [vmem:[#allocation5 + $0xe8] sm:$0xff] %vm568_vm0, %v930_v49  ;;  %v932_v32 = vmax.f32 %v900_v40, %v868_v54 }
 0x1c0   : > { %963 = vst.msk [vmem:[#allocation5 + $0xf0] sm:$0xff] %vm568_vm0, %v931_v59 }
 0x1c1   : > { %964 = vst.msk [vmem:[#allocation5 + $0xf8] sm:$0xff] %vm568_vm0, %v932_v32 }
 0x1c2 PF: > { %v981_v46 = vld [vmem:[#allocation11] sm:$0x3]  ;;  %vm1038_vm4 = vcmask 1041408   ;;  %v965_v58 = vpack.c.bf16 %v6634_v1, %v6631_v0  ;;  %vm989_vm5 = vcmask 31744   ;;  %v973_v63 = vpack.c.bf16 %v6682_v17, %v6679_v16  ;;  %v1430_v36 = vld [vmem:[#allocation2 + $0x9] sm:$0xff]  ;;  %s6141_s20 = smov 12  }
 0x1c3   : > { %v1429_v56 = vld [vmem:[#allocation2 + $0x1] sm:$0xff]  ;;  %4911 = vmatprep.subr.msk.bf16.mxu0 %vm1038_vm4, %v981_v46  ;;  %4912 = vmatprep.subr.msk.bf16.mxu1 %vm1038_vm4, %v981_v46  ;;  %v1040_v57 = vsel %vm1038_vm4, %v981_v46, 0  ;;  %v966_v61 = vpack.c.bf16 %v6640_v3, %v6637_v2  ;;  %v974_v53 = vpack.c.bf16 %v6688_v19, %v6685_v18  ;;  %v967_v0 = vpack.c.bf16 %v6646_v5, %v6643_v4  ;;  %s6142_s22 = smov 24   ;;  %s6143_s26 = smov 120  }
 0x1c4   : > { %4796 = vmatpush3.bf16.msra.mxu0 %v1040_v57  ;;  %4910 = vmatpush3.bf16.msra.mxu1 %v1040_v57  ;;  %v975_v1 = vpack.c.bf16 %v6694_v21, %v6691_v20  ;;  %v5099_v2 = vpack.i.bf16 %v1430_v36, %v1429_v56  ;;  %v968_v3 = vpack.c.bf16 %v6652_v7, %v6649_v6  ;;  %v7160_v19 = vld [vmem:[#allocation12] ss:$0 sm:$0xff]  ;;  %vm1364_vm6 = vcmask 97280   ;;  %s6144_s21 = smov 36   ;;  %s6145_s6 = smov 48  }
 0x1c5   : > { %4797 = vmatprep.mubr.msk.bf16.mxu0 %vm989_vm5, %v965_v58  ;;  %4813 = vmatprep.mubr.msk.bf16.mxu1 %vm989_vm5, %v973_v63  ;;  %v976_v4 = vpack.c.bf16 %v6700_v23, %v6697_v22  ;;  %v969_v5 = vpack.c.bf16 %v6658_v9, %v6655_v8  ;;  %v977_v16 = vpack.c.bf16 %v6706_v25, %v6703_v24  ;;  %s6146_s17 = smov 60   ;;  %s6147_s0 = smov 72   ;;  %vm3100_vm7 = vcmask 1045504  }
 0x1c6   : > { %5100 = vrot.lane.b32.xlu0 %v5099_v2, %s6141_s20  ;;  %v970_v6 = vpack.c.bf16 %v6664_v11, %v6661_v10  ;;  %v978_v7 = vpack.c.bf16 %v6712_v27, %v6709_v26  ;;  %v971_v8 = vpack.c.bf16 %v6670_v13, %v6667_v12  ;;  %v979_v9 = vpack.c.bf16 %v6718_v29, %v6715_v28  ;;  %v9643_v11 = vld [vmem:[#allocation34_spill] sm:$0xff]  ;;  %v1462_v13 = vld [vmem:[#allocation2 + $0xa] sm:$0xff]  ;;  %s9676_s4 = sld [smem:[#allocation28_spill]]  ;;  %s6148_s19 = smov 84  }
 0x1c7   : > { %4798 = vmatmul.mubr.msk.bf16.vlgmr.msra.gmra.mrb[0].mxu0 %vm989_vm5, %v966_v61  ;;  %4814 = vmatmul.mubr.msk.bf16.vlgmr.msra.gmra.mrb[0].mxu1 %vm989_vm5, %v974_v53  ;;  %v972_v10 = vpack.c.bf16 %v6676_v15, %v6673_v14  ;;  %v980_v17 = vpack.c.bf16 %v9643_v11, %v6721_v30  ;;  %v1461_v12 = vld [vmem:[#allocation2 + $0x2] sm:$0xff]  ;;  %s6149_s3 = smov 96   ;;  %vm2742_vm8 = vcmask 195584   ;;  %vm2775_vm9 = vcmask 293888   ;;  %s6150_s8 = smov 8  }
 0x1c8   : > { %4801 = vmatprep.mubr.msk.bf16.mxu0 %vm989_vm5, %v967_v0  ;;  %4817 = vmatprep.mubr.msk.bf16.mxu1 %vm989_vm5, %v975_v1  ;;  %v5104_v18 = vpack.i.bf16 %v1462_v13, %v1461_v12  ;;  %vm2808_vm10 = vcmask 392192   ;;  %vm2841_vm11 = vcmask 490496   ;;  %vm2874_vm12 = vcmask 588800   ;;  %s9788_s2 = sld [smem:[#allocation29_spill]]  ;;  %p9804_p7 = scmp.ne.s32.totalorder %s9619_s23, 0 }
 0x1c9   : > { %vm2907_vm13 = vcmask 687104   ;;  %vm2940_vm14 = vcmask 785408   ;;  %vm3051_vm15 = vcmask 883712   ;;  %vm4358_vm0 = vcmask 64512  }
 0x1ca   : > { %5105 = vrot.lane.b32.xlu0 %v5104_v18, %s6142_s22  ;;  %vm4423_vm1 = vcmask 261120  }
 0x1cc   : > { %p3297_p8 = scmp.lt.s32.totalorder %s9676_s4, 3  ;;  %s4733_s27 = sshll.u32 %s9676_s4, 5 }
 0x1ce   : > { %s7459_s25 = scalar_select %p3297_p8, 1, 0 }
 0x1cf   : > { %4802 = vmatmul.mubr.msk.bf16.gmra.mrb[4].mxu0 %vm989_vm5, %v968_v3  ;;  %4818 = vmatmul.mubr.msk.bf16.gmra.mrb[4].mxu1 %vm989_vm5, %v976_v4 }
 0x1d0   : > { %4805 = vmatprep.mubr.msk.bf16.mxu0 %vm989_vm5, %v969_v5  ;;  %4821 = vmatprep.mubr.msk.bf16.mxu1 %vm989_vm5, %v977_v16  ;;  %s3299_s11 = scvt.s32.f32 %s7459_s25 }
 0x1d7   : > { %4806 = vmatmul.mubr.msk.bf16.gmra.mrb[8].mxu0 %vm989_vm5, %v970_v6  ;;  %4822 = vmatmul.mubr.msk.bf16.gmra.mrb[8].mxu1 %vm989_vm5, %v978_v7 }
 0x1d8   : > { %4809 = vmatprep.mubr.msk.bf16.mxu0 %vm989_vm5, %v971_v8  ;;  %4825 = vmatprep.mubr.msk.bf16.mxu1 %vm989_vm5, %v979_v9 }
 0x1df   : > { %4810 = vmatmul.mubr.msk.bf16.gmra.mrb[12].mxu0 %vm989_vm5, %v972_v10  ;;  %4826 = vmatmul.mubr.msk.bf16.gmra.mrb[12].mxu1 %vm989_vm5, %v980_v17 }
 0x29a   : > { %v4799_v20 = vpop.f32.mrb[0].mxu0  ;;  %v4815_v21 = vpop.f32.mrb[0].mxu1 }
 0x29b   : > { %v7163_v22 = vadd.f32 %v4799_v20, %v7160_v19  ;;  %v7166_v14 = vadd.f32 %v4815_v21, %v7160_v19  ;;  %v1076_v15 = vpop.f32.mrb[1].mxu0  ;;  %v1140_v23 = vpop.f32.mrb[1].mxu1 }
 0x29c   : > { %v4800_v24 = vpop.f32.mrb[2].mxu0  ;;  %v4816_v25 = vpop.f32.mrb[2].mxu1  ;;  %v7171_v28 = vadd.f32 %v7160_v19, %v1076_v15  ;;  %v7185_v38 = vadd.f32 %v7160_v19, %v1140_v23 }
 0x29d   : > { %9644 = vst [vmem:[#allocation34_spill] sm:$0xff] %v7163_v22  ;;  %9645 = vst [vmem:[#allocation35_spill] sm:$0xff] %v7166_v14  ;;  %v9538_v26 = vmax.f32 %v7163_v22, 0.0  ;;  %v9522_v27 = vmax.f32 %v7166_v14, 0.0  ;;  %v7174_v29 = vadd.f32 %v4800_v24, %v7160_v19  ;;  %v1079_v30 = vpop.f32.mrb[3].mxu0  ;;  %v1143_v42 = vpop.f32.mrb[3].mxu1  ;;  %v7188_v34 = vadd.f32 %v4816_v25, %v7160_v19 }
 0x29e   : > { %9646 = vst [vmem:[#allocation36_spill] sm:$0xff] %v7171_v28  ;;  %v9536_v44 = vmax.f32 %v7171_v28, 0.0  ;;  %9648 = vst [vmem:[#allocation38_spill] sm:$0xff] %v7185_v38  ;;  %v7197_v45 = vadd.f32 %v7160_v19, %v1079_v30  ;;  %v9520_v35 = vmax.f32 %v7185_v38, 0.0  ;;  %v7202_v43 = vadd.f32 %v7160_v19, %v1143_v42 }
 0x29f   : > { %9647 = vst [vmem:[#allocation37_spill] sm:$0xff] %v7174_v29  ;;  %1303 = vrot.lane.b32.xlu0 %v9522_v27, %s6143_s26  ;;  %1271 = vrot.lane.b32.xlu1 %v9538_v26, %s6143_s26  ;;  %v9537_v60 = vmax.f32 %v7174_v29, 0.0  ;;  %9649 = vst [vmem:[#allocation39_spill] sm:$0xff] %v7188_v34  ;;  %v9521_v33 = vmax.f32 %v7188_v34, 0.0 }
 0x2a0   : > { %9650 = vst [vmem:[#allocation40_spill] sm:$0xff] %v7197_v45  ;;  %9651 = vst [vmem:[#allocation41_spill] sm:$0xff] %v7202_v43  ;;  %v9535_v51 = vmax.f32 %v7197_v45, 0.0  ;;  %v9519_v40 = vmax.f32 %v7202_v43, 0.0 }
 0x2a2   : > { %v4803_v31 = vpop.f32.mrb[4].mxu0  ;;  %v4819_v39 = vpop.f32.mrb[4].mxu1 }
 0x2a3   : > { %1273 = vrot.lane.b32.xlu1 %v9537_v60, %s6143_s26  ;;  %1267 = vrot.lane.b32.xlu0 %v9536_v44, %s6143_s26  ;;  %v1092_v37 = vpop.f32.mrb[5].mxu0  ;;  %v1156_v47 = vpop.f32.mrb[5].mxu1  ;;  %v7211_v50 = vadd.f32 %v4803_v31, %v7160_v19  ;;  %v7227_v46 = vadd.f32 %v4819_v39, %v7160_v19  ;;  %v3473_v60 = vld [vmem:[#allocation3 + $0x2] sm:$0xff] }
 0x2a4   : > { %v4804_v52 = vpop.f32.mrb[6].mxu0  ;;  %v4820_v41 = vpop.f32.mrb[6].mxu1  ;;  %v7233_v0 = vadd.f32 %v7160_v19, %v1092_v37  ;;  %v7248_v6 = vadd.f32 %v7160_v19, %v1156_v47 }
 0x2a5   : > { %v1095_v48 = vpop.f32.mrb[7].mxu0  ;;  %v1159_v55 = vpop.f32.mrb[7].mxu1  ;;  %9652 = vst [vmem:[#allocation42_spill] sm:$0xff] %v7211_v50  ;;  %v7214_v62 = vadd.f32 %v4804_v52, %v7160_v19  ;;  %v9534_v59 = vmax.f32 %v7211_v50, 0.0  ;;  %9654 = vst [vmem:[#allocation44_spill] sm:$0xff] %v7227_v46  ;;  %v7230_v58 = vadd.f32 %v4820_v41, %v7160_v19  ;;  %v9518_v1 = vmax.f32 %v7227_v46, 0.0 }
 0x2a6   : > { %9656 = vst [vmem:[#allocation46_spill] sm:$0xff] %v7233_v0  ;;  %v7244_v3 = vadd.f32 %v7160_v19, %v1095_v48  ;;  %v9532_v16 = vmax.f32 %v7233_v0, 0.0  ;;  %9658 = vst [vmem:[#allocation48_spill] sm:$0xff] %v7248_v6  ;;  %v7258_v8 = vadd.f32 %v7160_v19, %v1159_v55  ;;  %v9516_v18 = vmax.f32 %v7248_v6, 0.0 }
 0x2a7   : > { %1305 = vrot.lane.b32.xlu1 %v9521_v33, %s6143_s26  ;;  %1299 = vrot.lane.b32.xlu0 %v9520_v35, %s6143_s26  ;;  %9653 = vst [vmem:[#allocation43_spill] sm:$0xff] %v7214_v62  ;;  %v9533_v32 = vmax.f32 %v7214_v62, 0.0  ;;  %9655 = vst [vmem:[#allocation45_spill] sm:$0xff] %v7230_v58  ;;  %v9517_v2 = vmax.f32 %v7230_v58, 0.0 }
 0x2a8   : > { %9657 = vst [vmem:[#allocation47_spill] sm:$0xff] %v7244_v3  ;;  %v9531_v7 = vmax.f32 %v7244_v3, 0.0  ;;  %9659 = vst [vmem:[#allocation49_spill] sm:$0xff] %v7258_v8  ;;  %v9514_v20 = vmax.f32 %v7258_v8, 0.0 }
 0x2aa   : > { %v4807_v49 = vpop.f32.mrb[8].mxu0  ;;  %v4823_v54 = vpop.f32.mrb[8].mxu1 }
 0x2ab   : > { %1301 = vrot.lane.b32.xlu1 %v9519_v40, %s6143_s26  ;;  %1269 = vrot.lane.b32.xlu0 %v9535_v51, %s6143_s26  ;;  %v1108_v63 = vpop.f32.mrb[9].mxu0  ;;  %v1172_v56 = vpop.f32.mrb[9].mxu1  ;;  %v7269_v21 = vadd.f32 %v4807_v49, %v7160_v19  ;;  %v7283_v25 = vadd.f32 %v4823_v54, %v7160_v19 }
 0x2ac   : > { %v4808_v36 = vpop.f32.mrb[10].mxu0  ;;  %v4824_v57 = vpop.f32.mrb[10].mxu1  ;;  %v7289_v42 = vadd.f32 %v7160_v19, %v1108_v63  ;;  %v7304_v52 = vadd.f32 %v7160_v19, %v1172_v56 }
 0x2ad   : > { %v1111_v61 = vpop.f32.mrb[11].mxu0  ;;  %v1175_v53 = vpop.f32.mrb[11].mxu1  ;;  %9660 = vst [vmem:[#allocation50_spill] sm:$0xff] %v7269_v21  ;;  %v7272_v15 = vadd.f32 %v4808_v36, %v7160_v19  ;;  %v9530_v23 = vmax.f32 %v7269_v21, 0.0  ;;  %9662 = vst [vmem:[#allocation52_spill] sm:$0xff] %v7283_v25  ;;  %v7286_v30 = vadd.f32 %v4824_v57, %v7160_v19  ;;  %v9512_v31 = vmax.f32 %v7283_v25, 0.0 }
 0x2ae   : > { %9664 = vst [vmem:[#allocation54_spill] sm:$0xff] %v7289_v42  ;;  %v7300_v37 = vadd.f32 %v7160_v19, %v1111_v61  ;;  %v9528_v47 = vmax.f32 %v7289_v42, 0.0  ;;  %9666 = vst [vmem:[#allocation56_spill] sm:$0xff] %v7304_v52  ;;  %v7314_v48 = vadd.f32 %v7160_v19, %v1175_v53  ;;  %v9508_v55 = vmax.f32 %v7304_v52, 0.0  ;;  %v3312_v52 = vld [vmem:[%s6608_s1 + $0x60] sm:$0xff] }
 0x2af   : > { %1281 = vrot.lane.b32.xlu1 %v9533_v32, %s6143_s26  ;;  %1279 = vrot.lane.b32.xlu0 %v9534_v59, %s6143_s26  ;;  %9661 = vst [vmem:[#allocation51_spill] sm:$0xff] %v7272_v15  ;;  %v9529_v24 = vmax.f32 %v7272_v15, 0.0  ;;  %9663 = vst [vmem:[#allocation53_spill] sm:$0xff] %v7286_v30  ;;  %v9509_v39 = vmax.f32 %v7286_v30, 0.0 }
 0x2b0   : > { %9665 = vst [vmem:[#allocation55_spill] sm:$0xff] %v7300_v37  ;;  %v9527_v41 = vmax.f32 %v7300_v37, 0.0  ;;  %9667 = vst [vmem:[#allocation57_spill] sm:$0xff] %v7314_v48  ;;  %v9507_v49 = vmax.f32 %v7314_v48, 0.0 }
 0x2b1   : > { %3345 = vst.msk [vmem:[#allocation3 + $0xa9] sm:$0xff] %vm989_vm5, %v3312_v52 }
 0x2b2   : > { %v4811_v4 = vpop.f32.mrb[12].mxu0  ;;  %v4827_v5 = vpop.f32.mrb[12].mxu1 }
 0x2b3   : > { %1313 = vrot.lane.b32.xlu1 %v9517_v2, %s6143_s26  ;;  %1311 = vrot.lane.b32.xlu0 %v9518_v1, %s6143_s26  ;;  %v1124_v9 = vpop.f32.mrb[13].mxu0  ;;  %v1188_v10 = vpop.f32.mrb[13].mxu1  ;;  %v7325_v54 = vadd.f32 %v4811_v4, %v7160_v19  ;;  %v7339_v57 = vadd.f32 %v4827_v5, %v7160_v19 }
 0x2b4   : > { %v4812_v11 = vpop.f32.mrb[14].mxu0  ;;  %v4828_v17 = vpop.f32.mrb[14].mxu1  ;;  %v7345_v53 = vadd.f32 %v7160_v19, %v1124_v9  ;;  %v7360_v9 = vadd.f32 %v7160_v19, %v1188_v10 }
 0x2b5   : > { %v1127_v12 = vpop.f32.mrb[15].mxu0  ;;  %v1191_v13 = vpop.f32.mrb[15].mxu1  ;;  %9668 = vst [vmem:[#allocation58_spill] sm:$0xff] %v7325_v54  ;;  %v7328_v63 = vadd.f32 %v4812_v11, %v7160_v19  ;;  %v9526_v56 = vmax.f32 %v7325_v54, 0.0  ;;  %9670 = vst [vmem:[#allocation60_spill] sm:$0xff] %v7339_v57  ;;  %v7342_v61 = vadd.f32 %v4828_v17, %v7160_v19  ;;  %v9511_v4 = vmax.f32 %v7339_v57, 0.0 }
 0x2b6   : > { %9672 = vst [vmem:[#allocation62_spill] sm:$0xff] %v7345_v53  ;;  %v7356_v5 = vadd.f32 %v7160_v19, %v1127_v12  ;;  %v9524_v17 = vmax.f32 %v7345_v53, 0.0  ;;  %9674 = vst [vmem:[#allocation64_spill] sm:$0xff] %v7360_v9  ;;  %v9515_v12 = vmax.f32 %v7360_v9, 0.0 }
 0x2b7   : > { %1277 = vrot.lane.b32.xlu1 %v9531_v7, %s6143_s26  ;;  %1275 = vrot.lane.b32.xlu0 %v9532_v16, %s6143_s26  ;;  %9669 = vst [vmem:[#allocation59_spill] sm:$0xff] %v7328_v63  ;;  %v9525_v36 = vmax.f32 %v7328_v63, 0.0  ;;  %9671 = vst [vmem:[#allocation61_spill] sm:$0xff] %v7342_v61  ;;  %v9510_v11 = vmax.f32 %v7342_v61, 0.0 }
 0x2b8   : > { %9673 = vst [vmem:[#allocation63_spill] sm:$0xff] %v7356_v5  ;;  %v3379_v46 = vld [vmem:[#allocation3 + $0xa8] sm:$0xff] }
 0x2bb   : > { %1309 = vrot.lane.b32.xlu1 %v9514_v20, %s6143_s26  ;;  %1307 = vrot.lane.b32.xlu0 %v9516_v18, %s6143_s26 }
 0x2bf   : > { %1289 = vrot.lane.b32.xlu1 %v9529_v24, %s6143_s26  ;;  %1287 = vrot.lane.b32.xlu0 %v9530_v23, %s6143_s26 }
 0x2c3   : > { %1321 = vrot.lane.b32.xlu1 %v9509_v39, %s6143_s26  ;;  %1319 = vrot.lane.b32.xlu0 %v9512_v31, %s6143_s26 }
 0x2c7   : > { %1285 = vrot.lane.b32.xlu1 %v9527_v41, %s6143_s26  ;;  %1283 = vrot.lane.b32.xlu0 %v9528_v47, %s6143_s26 }
 0x2cb   : > { %1317 = vrot.lane.b32.xlu1 %v9507_v49, %s6143_s26  ;;  %1315 = vrot.lane.b32.xlu0 %v9508_v55, %s6143_s26  ;;  %v9523_v49 = vmax.f32 %v7356_v5, 0.0  ;;  %v7370_v55 = vadd.f32 %v7160_v19, %v1191_v13  ;;  %v7386_v19 = vpop.permute.xlu0 %5100 }
 0x2cd   : > { %9675 = vst [vmem:[#allocation65_spill] sm:$0xff] %v7370_v55  ;;  %v9513_v39 = vmax.f32 %v7370_v55, 0.0 }
 0x2cf   : > { %1297 = vrot.lane.b32.xlu1 %v9525_v36, %s6143_s26  ;;  %1295 = vrot.lane.b32.xlu0 %v9526_v56, %s6143_s26  ;;  %v7388_v10 = vpop.permute.xlu0 %5105 }
 0x2d3   : > { %1329 = vrot.lane.b32.xlu1 %v9510_v11, %s6143_s26  ;;  %1327 = vrot.lane.b32.xlu0 %v9511_v4, %s6143_s26 }
 0x2d7   : > { %1293 = vrot.lane.b32.xlu1 %v9523_v49, %s6143_s26  ;;  %1291 = vrot.lane.b32.xlu0 %v9524_v17, %s6143_s26 }
 0x2db   : > { %1325 = vrot.lane.b32.xlu1 %v9513_v39, %s6143_s26  ;;  %1323 = vrot.lane.b32.xlu0 %v9515_v12, %s6143_s26 }
 0x311   : > { %v1304_v13 = vpop.permute.xlu0 %1303  ;;  %v1272_v11 = vpop.permute.xlu1 %1271 }
 0x312   : > { %1383 = vst.msk [vmem:[#allocation2 + $0xf1] sm:$0xff] %vm1364_vm6, %v1304_v13  ;;  %1367 = vst.msk [vmem:[#allocation2 + $0x31] sm:$0xff] %vm1364_vm6, %v1272_v11 }
 0x315   : > { %v1274_v4 = vpop.permute.xlu1 %1273  ;;  %v1268_v31 = vpop.permute.xlu0 %1267 }
 0x316   : > { %1368 = vst.msk [vmem:[#allocation2 + $0x39] sm:$0xff] %vm1364_vm6, %v1274_v4  ;;  %1365 = vst.msk [vmem:[#allocation2 + $0x19] sm:$0xff] %vm1364_vm6, %v1268_v31 }
 0x319   : > { %v1306_v39 = vpop.permute.xlu1 %1305  ;;  %v1300_v20 = vpop.permute.xlu0 %1299  ;;  %v1495_v12 = vld [vmem:[#allocation2 + $0x30] sm:$0xff] }
 0x31a   : > { %1384 = vst.msk [vmem:[#allocation2 + $0xf9] sm:$0xff] %vm1364_vm6, %v1306_v39  ;;  %1381 = vst.msk [vmem:[#allocation2 + $0xd9] sm:$0xff] %vm1364_vm6, %v1300_v20  ;;  %v1433_v40 = vld [vmem:[#allocation2 + $0x31] sm:$0xff] }
 0x31b   : > { %v1511_v31 = vld [vmem:[#allocation2 + $0xf0] sm:$0xff] }
 0x31c   : > { %v1449_v20 = vld [vmem:[#allocation2 + $0xf1] sm:$0xff] }
 0x31d   : > { %v1302_v18 = vpop.permute.xlu1 %1301  ;;  %v1270_v2 = vpop.permute.xlu0 %1269  ;;  %v1496_v1 = vld [vmem:[#allocation2 + $0x38] sm:$0xff] }
 0x31e   : > { %v1434_v13 = vld [vmem:[#allocation2 + $0x39] sm:$0xff]  ;;  %1382 = vst.msk [vmem:[#allocation2 + $0xe1] sm:$0xff] %vm1364_vm6, %v1302_v18  ;;  %1366 = vst.msk [vmem:[#allocation2 + $0x21] sm:$0xff] %vm1364_vm6, %v1270_v2  ;;  %v5129_v11 = vpack.i.bf16 %v1496_v1, %v1495_v12 }
 0x31f   : > { %v5109_v4 = vpack.i.bf16 %v1434_v13, %v1433_v40  ;;  %v1465_v40 = vld [vmem:[#allocation2 + $0x32] sm:$0xff]  ;;  %v1466_v1 = vld [vmem:[#allocation2 + $0x3a] sm:$0xff] }
 0x320   : > { %5130 = vrot.lane.b32.xlu1 %v5129_v11, %s6144_s21  ;;  %v5119_v12 = vpack.i.bf16 %v1466_v1, %v1465_v40  ;;  %v3302_v40 = vld [vmem:[%s6608_s1 + $0x10] sm:$0xff]  ;;  %v3303_v1 = vld [vmem:[%s6608_s1 + $0x18] sm:$0xff] }
 0x321   : > { %5110 = vrot.lane.b32.xlu0 %v5109_v4, %s6141_s20  ;;  %v1512_v39 = vld [vmem:[#allocation2 + $0xf8] sm:$0xff]  ;;  %v1282_v33 = vpop.permute.xlu1 %1281  ;;  %v1280_v27 = vpop.permute.xlu0 %1279  ;;  %3335 = vst.msk [vmem:[#allocation3 + $0x31] sm:$0xff] %vm989_vm5, %v3302_v40  ;;  %3336 = vst.msk [vmem:[#allocation3 + $0x39] sm:$0xff] %vm989_vm5, %v3303_v1 }
 0x322   : > { %v1450_v35 = vld [vmem:[#allocation2 + $0xf9] sm:$0xff]  ;;  %v7400_v49 = vpack.i.bf16 %v1512_v39, %v1511_v31  ;;  %1372 = vst.msk [vmem:[#allocation2 + $0x69] sm:$0xff] %vm1364_vm6, %v1282_v33  ;;  %1371 = vst.msk [vmem:[#allocation2 + $0x61] sm:$0xff] %vm1364_vm6, %v1280_v27 }
 0x323   : > { %v7402_v17 = vpack.i.bf16 %v1450_v35, %v1449_v20  ;;  %v1481_v27 = vld [vmem:[#allocation2 + $0xf2] sm:$0xff]  ;;  %v1482_v35 = vld [vmem:[#allocation2 + $0xfa] sm:$0xff]  ;;  %v3301_v20 = vld [vmem:[%s6608_s1 + $0x8] sm:$0xff] }
 0x324   : > { %5135 = vrot.lane.b32.xlu1 %v7400_v49, %s6144_s21  ;;  %v7414_v31 = vpack.i.bf16 %v1482_v35, %v1481_v27  ;;  %v3300_v39 = vld [vmem:[%s6608_s1] sm:$0xff]  ;;  %3334 = vst.msk [vmem:[#allocation3 + $0x21] sm:$0xff] %vm989_vm5, %v3301_v20  ;;  %v3305_v35 = vld [vmem:[%s6608_s1 + $0x28] sm:$0xff] }
 0x325   : > { %5115 = vrot.lane.b32.xlu0 %v7402_v17, %s6141_s20  ;;  %v1314_v2 = vpop.permute.xlu1 %1313  ;;  %v1312_v18 = vpop.permute.xlu0 %1311  ;;  %3333 = vst.msk [vmem:[#allocation3 + $0x19] sm:$0xff] %vm989_vm5, %v3300_v39  ;;  %3338 = vst.msk [vmem:[#allocation3 + $0x51] sm:$0xff] %vm989_vm5, %v3305_v35  ;;  %v1432_v39 = vld [vmem:[#allocation2 + $0x21] sm:$0xff]  ;;  %v1431_v20 = vld [vmem:[#allocation2 + $0x19] sm:$0xff] }
 0x326   : > { %1388 = vst.msk [vmem:[#allocation2 + $0x129] sm:$0xff] %vm1364_vm6, %v1314_v2  ;;  %1387 = vst.msk [vmem:[#allocation2 + $0x121] sm:$0xff] %vm1364_vm6, %v1312_v18  ;;  %v3304_v2 = vld [vmem:[%s6608_s1 + $0x20] sm:$0xff]  ;;  %v3366_v35 = vld [vmem:[#allocation3 + $0x8] sm:$0xff] }
 0x327   : > { %3337 = vst.msk [vmem:[#allocation3 + $0x49] sm:$0xff] %vm989_vm5, %v3304_v2  ;;  %v1448_v2 = vld [vmem:[#allocation2 + $0xe1] sm:$0xff] }
 0x328   : > { %5140 = vrot.lane.b32.xlu1 %v5109_v4, %s6145_s6  ;;  %v1464_v36 = vld [vmem:[#allocation2 + $0x22] sm:$0xff]  ;;  %v1479_v9 = vld [vmem:[#allocation2 + $0xda] sm:$0xff] }
 0x329   : > { %5120 = vrot.lane.b32.xlu0 %v5119_v12, %s6142_s22  ;;  %v1278_v33 = vpop.permute.xlu1 %1277  ;;  %v1276_v13 = vpop.permute.xlu0 %1275  ;;  %v3405_v32 = vld [vmem:[#allocation3 + $0x31] sm:$0xff]  ;;  %v3406_v59 = vld [vmem:[#allocation3 + $0x39] sm:$0xff] }
 0x32a   : > { %1370 = vst.msk [vmem:[#allocation2 + $0x51] sm:$0xff] %vm1364_vm6, %v1278_v33  ;;  %1369 = vst.msk [vmem:[#allocation2 + $0x49] sm:$0xff] %vm1364_vm6, %v1276_v13  ;;  %v1480_v48 = vld [vmem:[#allocation2 + $0xe2] sm:$0xff] }
 0x32b   : > { %v3404_v47 = vld [vmem:[#allocation3 + $0x21] sm:$0xff] }
 0x32c   : > { %5145 = vrot.lane.b32.xlu1 %v7402_v17, %s6145_s6  ;;  %v3403_v41 = vld [vmem:[#allocation3 + $0x19] sm:$0xff] }
 0x32d   : > { %5125 = vrot.lane.b32.xlu0 %v7414_v31, %s6142_s22  ;;  %v1310_v18 = vpop.permute.xlu1 %1309  ;;  %v1308_v27 = vpop.permute.xlu0 %1307 }
 0x32e   : > { %1386 = vst.msk [vmem:[#allocation2 + $0x111] sm:$0xff] %vm1364_vm6, %v1310_v18  ;;  %1385 = vst.msk [vmem:[#allocation2 + $0x109] sm:$0xff] %vm1364_vm6, %v1308_v27  ;;  %v1447_v18 = vld [vmem:[#allocation2 + $0xd9] sm:$0xff]  ;;  %v3365_v27 = vld [vmem:[#allocation3] sm:$0xff] }
 0x32f   : > { %v7451_v24 = vpack.i.bf16 %v1448_v2, %v1447_v18  ;;  %v3371_v23 = vld [vmem:[#allocation3 + $0x48] sm:$0xff]  ;;  %v7455_v7 = vld [vmem:[#allocation3 + $0x50] sm:$0xff] }
 0x330   : > { %5150 = vrot.lane.b32.xlu1 %v5119_v12, %s6146_s17  ;;  %v3407_v51 = vld [vmem:[#allocation3 + $0x49] sm:$0xff]  ;;  %v3408_v18 = vld [vmem:[#allocation3 + $0x51] sm:$0xff] }
 0x331   : > { %5155 = vrot.lane.b32.xlu0 %v5129_v11, %s6147_s0  ;;  %v1290_v33 = vpop.permute.xlu1 %1289  ;;  %v1288_v13 = vpop.permute.xlu0 %1287  ;;  %v7443_v11 = vpack.i.bf16 %v1432_v39, %v1431_v20  ;;  %v3369_v39 = vld [vmem:[#allocation3 + $0x30] sm:$0xff]  ;;  %v3786_v2 = vld [vmem:[#allocation17] sm:$0x3]  ;;  %v3443_v55 = vmax.f32 %v3371_v23, %v3407_v51  ;;  %v1468_v34 = vld [vmem:[#allocation2 + $0x52] sm:$0xff] }
 0x332   : > { %1376 = vst.msk [vmem:[#allocation2 + $0x99] sm:$0xff] %vm1364_vm6, %v1290_v33  ;;  %1375 = vst.msk [vmem:[#allocation2 + $0x91] sm:$0xff] %vm1364_vm6, %v1288_v13  ;;  %v3401_v33 = vld [vmem:[#allocation3 + $0x1] sm:$0xff]  ;;  %v1463_v20 = vld [vmem:[#allocation2 + $0x1a] sm:$0xff]  ;;  %4914 = vmatprep.subr.msk.bf16.mxu0 %vm1038_vm4, %v3786_v2  ;;  %v3843_v26 = vsel %vm1038_vm4, %v3786_v2, 0  ;;  %v3441_v61 = vmax.f32 %v3369_v39, %v3405_v32 }
 0x333   : > { %v3368_v13 = vld [vmem:[#allocation3 + $0x20] sm:$0xff]  ;;  %v3437_v16 = vmax.f32 %v3365_v27, %v3401_v33  ;;  %4876 = vmatpush3.bf16.msra.mxu0 %v3843_v26  ;;  %v3477_v51 = vld [vmem:[#allocation3 + $0x32] sm:$0xff]  ;;  %v3479_v32 = vld [vmem:[#allocation3 + $0x4a] sm:$0xff] }
 0x334   : > { %5170 = vrot.lane.b32.xlu1 %v7414_v31, %s6146_s17  ;;  %v3440_v44 = vmax.f32 %v3368_v13, %v3404_v47  ;;  %v3476_v13 = vld [vmem:[#allocation3 + $0x22] sm:$0xff]  ;;  %v1605_v2 = vld [vmem:[#allocation2 + $0xe0] sm:$0xff] }
 0x335   : > { %5160 = vrot.lane.b32.xlu0 %v5109_v4, %s6148_s19  ;;  %v1322_v40 = vpop.permute.xlu1 %1321  ;;  %v1320_v1 = vpop.permute.xlu0 %1319  ;;  %v3367_v4 = vld [vmem:[#allocation3 + $0x18] sm:$0xff]  ;;  %v3509_v47 = vmax.f32 %v3437_v16, %v3473_v60  ;;  %v7477_v16 = vmax.f32 %v3441_v61, %v3477_v51  ;;  %v1604_v51 = vld [vmem:[#allocation2 + $0xd8] sm:$0xff] }
 0x336   : > { %1392 = vst.msk [vmem:[#allocation2 + $0x159] sm:$0xff] %vm1364_vm6, %v1322_v40  ;;  %1391 = vst.msk [vmem:[#allocation2 + $0x151] sm:$0xff] %vm1364_vm6, %v1320_v1  ;;  %v3402_v1 = vld [vmem:[#allocation3 + $0x9] sm:$0xff]  ;;  %v3512_v39 = vmax.f32 %v3440_v44, %v3476_v13  ;;  %v3480_v44 = vld [vmem:[#allocation3 + $0x52] sm:$0xff] }
 0x338   : > { %5190 = vrot.lane.b32.xlu1 %v7443_v11, %s6141_s20 }
 0x339   : > { %5165 = vrot.lane.b32.xlu0 %v5119_v12, %s6149_s3  ;;  %v1286_v40 = vpop.permute.xlu1 %1285  ;;  %v1284_v56 = vpop.permute.xlu0 %1283  ;;  %v3370_v12 = vld [vmem:[#allocation3 + $0x38] sm:$0xff] }
 0x33a   : > { %1374 = vst.msk [vmem:[#allocation2 + $0x81] sm:$0xff] %vm1364_vm6, %v1286_v40  ;;  %1373 = vst.msk [vmem:[#allocation2 + $0x79] sm:$0xff] %vm1364_vm6, %v1284_v56  ;;  %v3438_v56 = vmax.f32 %v3366_v35, %v3402_v1  ;;  %v3439_v40 = vmax.f32 %v3367_v4, %v3403_v41  ;;  %v3442_v57 = vmax.f32 %v3370_v12, %v3406_v59  ;;  %v3474_v35 = vld [vmem:[#allocation3 + $0xa] sm:$0xff]  ;;  %v3475_v4 = vld [vmem:[#allocation3 + $0x1a] sm:$0xff] }
 0x33b   : > { %v3444_v41 = vmax.f32 %v7455_v7, %v3408_v18  ;;  %v3478_v59 = vld [vmem:[#allocation3 + $0x3a] sm:$0xff]  ;;  %v7483_v1 = vpack.i.bf16 %v1480_v48, %v1479_v9  ;;  %v1494_v12 = vld [vmem:[#allocation2 + $0x20] sm:$0xff] }
 0x33c   : > { %5195 = vrot.lane.b32.xlu1 %v7451_v24, %s6141_s20  ;;  %v3510_v23 = vmax.f32 %v3438_v56, %v3474_v35  ;;  %v7479_v7 = vmax.f32 %v3442_v57, %v3478_v59  ;;  %v7489_v57 = vstv %s3299_s11  ;;  %v3675_v35 = vld [vmem:[#allocation5 + $0x8] sm:$0xff] }
 0x33d   : > { %5175 = vrot.lane.b32.xlu0 %v7400_v49, %s6147_s0  ;;  %v1318_v27 = vpop.permute.xlu1 %1317  ;;  %v1316_v33 = vpop.permute.xlu0 %1315  ;;  %v7467_v49 = vpack.i.bf16 %v1464_v36, %v1463_v20  ;;  %v3511_v36 = vmax.f32 %v3439_v40, %v3475_v4  ;;  %v7481_v20 = vmax.f32 %v3443_v55, %v3479_v32  ;;  %v3642_v55 = vld [vmem:[#allocation4] sm:$0xff]  ;;  %v7495_v48 = vmax.f32 %v3444_v41, %v3480_v44  ;;  %v3644_v4 = vld [vmem:[#allocation4 + $0x10] sm:$0xff]  ;;  %v8283_v45 = vld [vmem:[#allocation2 + $0x158] sm:$0xff] }
 0x33e   : > { %1390 = vst.msk [vmem:[#allocation2 + $0x141] sm:$0xff] %vm1364_vm6, %v1318_v27  ;;  %1389 = vst.msk [vmem:[#allocation2 + $0x139] sm:$0xff] %vm1364_vm6, %v1316_v33  ;;  %v3546_v56 = vmax.f32 %v3510_v23, %v3512_v39  ;;  %v3548_v61 = vmax.f32 %v3512_v39, %v7479_v7  ;;  %v3643_v27 = vld [vmem:[#allocation4 + $0x8] sm:$0xff]  ;;  %v5234_v41 = vpack.i.bf16 %v1605_v2, %v1604_v51  ;;  %v7524_v51 = vld [vmem:[#allocation5 + $0x20] sm:$0xff] }
 0x33f   : > { %v3545_v18 = vmax.f32 %v3509_v47, %v3511_v36  ;;  %v3547_v40 = vmax.f32 %v3511_v36, %v7477_v16  ;;  %v3674_v47 = vld [vmem:[#allocation5] sm:$0xff]  ;;  %4039 = vst.msk [vmem:[#allocation4 + $0x8] sm:$0xff] %vm989_vm5, %v3675_v35  ;;  %9691 = vst [vmem:[#allocation75_spill] sm:$0xff] %v8283_v45 }
 0x340   : > { %5200 = vrot.lane.b32.xlu1 %v7467_v49, %s6142_s22  ;;  %v3578_v33 = vmax.f32 %v3546_v56, %v7479_v7  ;;  %v3706_v36 = vmax.f32 %v3642_v55, %v3674_v47  ;;  %4038 = vst.msk [vmem:[#allocation4] sm:$0xff] %vm989_vm5, %v3674_v47  ;;  %v3580_v39 = vmax.f32 %v3548_v61, %v7495_v48  ;;  %v3677_v56 = vld [vmem:[#allocation5 + $0x18] sm:$0xff]  ;;  %v3306_v55 = vld [vmem:[%s6608_s1 + $0x30] sm:$0xff] }
 0x341   : > { %5180 = vrot.lane.b32.xlu0 %v7402_v17, %s6148_s19  ;;  %v1298_v26 = vpop.permute.xlu1 %1297  ;;  %v1296_v60 = vpop.permute.xlu0 %1295  ;;  %v1493_v17 = vld [vmem:[#allocation2 + $0x18] sm:$0xff]  ;;  %v3577_v9 = vmax.f32 %v3545_v18, %v7477_v16  ;;  %v3579_v23 = vmax.f32 %v3547_v40, %v7481_v20  ;;  %3339 = vst.msk [vmem:[#allocation3 + $0x61] sm:$0xff] %vm989_vm5, %v3306_v55 }
 0x342   : > { %1380 = vst.msk [vmem:[#allocation2 + $0xc9] sm:$0xff] %vm1364_vm6, %v1298_v26  ;;  %1379 = vst.msk [vmem:[#allocation2 + $0xc1] sm:$0xff] %vm1364_vm6, %v1296_v60  ;;  %v5209_v13 = vpack.i.bf16 %v1494_v12, %v1493_v17  ;;  %v3611_v60 = vmul.f32 %v7489_v57, %v3578_v33  ;;  %v3645_v17 = vld [vmem:[#allocation4 + $0x18] sm:$0xff]  ;;  %v3676_v12 = vld [vmem:[#allocation5 + $0x10] sm:$0xff]  ;;  %v3613_v61 = vmul.f32 %v7489_v57, %v3580_v39 }
 0x343   : > { %v3610_v26 = vmul.f32 %v7489_v57, %v3577_v9  ;;  %v3612_v18 = vmul.f32 %v7489_v57, %v3579_v23  ;;  %v3708_v44 = vmax.f32 %v3644_v4, %v3676_v12  ;;  %4040 = vst.msk [vmem:[#allocation4 + $0x10] sm:$0xff] %vm989_vm5, %v3676_v12  ;;  %4041 = vst.msk [vmem:[#allocation4 + $0x18] sm:$0xff] %vm989_vm5, %v3677_v56  ;;  %v7517_v9 = vld [vmem:[#allocation4 + $0x20] sm:$0xff] }
 0x344   : > { %5205 = vrot.lane.b32.xlu1 %v7483_v1, %s6142_s22  ;;  %4071 = vst.msk [vmem:[#allocation5 + $0x8] sm:$0xff] %vm989_vm5, %v3611_v60  ;;  %4073 = vst.msk [vmem:[#allocation5 + $0x18] sm:$0xff] %vm989_vm5, %v3613_v61  ;;  %v3308_v23 = vld [vmem:[%s6608_s1 + $0x40] sm:$0xff] }
 0x345   : > { %5185 = vrot.lane.b32.xlu0 %v7414_v31, %s6149_s3  ;;  %v1330_v59 = vpop.permute.xlu1 %1329  ;;  %v1328_v32 = vpop.permute.xlu0 %1327  ;;  %v3707_v31 = vmax.f32 %v3643_v27, %v3675_v35  ;;  %v3738_v2 = vmax.f32 %v3706_v36, %v3610_v26  ;;  %4070 = vst.msk [vmem:[#allocation5] sm:$0xff] %vm989_vm5, %v3610_v26  ;;  %v3307_v27 = vld [vmem:[%s6608_s1 + $0x38] sm:$0xff]  ;;  %v3709_v35 = vmax.f32 %v3645_v17, %v3677_v56  ;;  %4072 = vst.msk [vmem:[#allocation5 + $0x10] sm:$0xff] %vm989_vm5, %v3612_v18  ;;  %v3309_v36 = vld [vmem:[%s6608_s1 + $0x48] sm:$0xff] }
 0x346   : > { %1396 = vst.msk [vmem:[#allocation2 + $0x189] sm:$0xff] %vm1364_vm6, %v1330_v59  ;;  %1395 = vst.msk [vmem:[#allocation2 + $0x181] sm:$0xff] %vm1364_vm6, %v1328_v32  ;;  %v3740_v4 = vmax.f32 %v3708_v44, %v3612_v18  ;;  %v7526_v59 = vld [vmem:[#allocation5 + $0x28] sm:$0xff]  ;;  %v1499_v39 = vld [vmem:[#allocation2 + $0x60] sm:$0xff] }
 0x347   : > { %v3739_v40 = vmax.f32 %v3707_v31, %v3611_v60  ;;  %3340 = vst.msk [vmem:[#allocation3 + $0x69] sm:$0xff] %vm989_vm5, %v3307_v27  ;;  %4042 = vst.msk [vmem:[#allocation4 + $0x20] sm:$0xff] %vm989_vm5, %v7524_v51  ;;  %v7537_v31 = vld [vmem:[#allocation4 + $0x30] sm:$0xff]  ;;  %v1500_v26 = vld [vmem:[#allocation2 + $0x68] sm:$0xff]  ;;  %v3741_v12 = vmax.f32 %v3709_v35, %v3613_v61 }
 0x348   : > { %5235 = vrot.lane.b32.xlu1 %v5234_v41, %s6147_s0  ;;  %v1531_v60 = vld [vmem:[#allocation2 + $0x61] sm:$0xff]  ;;  %v1532_v17 = vld [vmem:[#allocation2 + $0x69] sm:$0xff]  ;;  %3341 = vst.msk [vmem:[#allocation3 + $0x79] sm:$0xff] %vm989_vm5, %v3308_v23  ;;  %3342 = vst.msk [vmem:[#allocation3 + $0x81] sm:$0xff] %vm989_vm5, %v3309_v36 }
 0x349   : > { %5210 = vrot.lane.b32.xlu0 %v5209_v13, %s6144_s21  ;;  %v1294_v33 = vpop.permute.xlu1 %1293  ;;  %v1292_v47 = vpop.permute.xlu0 %1291  ;;  %v7522_v13 = vld [vmem:[#allocation4 + $0x28] sm:$0xff]  ;;  %v3770_v32 = vpack.c.bf16 %v3739_v40, %v3738_v2  ;;  %v7541_v18 = vld [vmem:[#allocation4 + $0x38] sm:$0xff]  ;;  %v7543_v56 = vld [vmem:[#allocation5 + $0x30] sm:$0xff] }
 0x34a   : > { %1378 = vst.msk [vmem:[#allocation2 + $0xb1] sm:$0xff] %vm1364_vm6, %v1294_v33  ;;  %1377 = vst.msk [vmem:[#allocation2 + $0xa9] sm:$0xff] %vm1364_vm6, %v1292_v47  ;;  %v7545_v44 = vld [vmem:[#allocation5 + $0x38] sm:$0xff]  ;;  %v1515_v2 = vld [vmem:[#allocation2 + $0x120] sm:$0xff]  ;;  %v3771_v33 = vpack.c.bf16 %v3741_v12, %v3740_v4  ;;  %v7583_v12 = vpack.i.bf16 %v1532_v17, %v1531_v60  ;;  %v3710_v60 = vmax.f32 %v7517_v9, %v7524_v51 }
 0x34b   : > { %4043 = vst.msk [vmem:[#allocation4 + $0x28] sm:$0xff] %vm989_vm5, %v7526_v59  ;;  %v1516_v40 = vld [vmem:[#allocation2 + $0x128] sm:$0xff]  ;;  %4044 = vst.msk [vmem:[#allocation4 + $0x30] sm:$0xff] %vm989_vm5, %v7543_v56  ;;  %v3310_v61 = vld [vmem:[%s6608_s1 + $0x50] sm:$0xff]  ;;  %4877 = vmatprep.mubr.msk.bf16.mxu0 %vm989_vm5, %v3770_v32  ;;  %v7581_v32 = vpack.i.bf16 %v1500_v26, %v1499_v39  ;;  %v3550_v39 = vmax.f32 %v7479_v7, %v7495_v48  ;;  %v3711_v17 = vmax.f32 %v7522_v13, %v7526_v59 }
 0x34c   : > { %5240 = vrot.lane.b32.xlu1 %v7451_v24, %s6148_s19  ;;  %4045 = vst.msk [vmem:[#allocation4 + $0x38] sm:$0xff] %vm989_vm5, %v7545_v44  ;;  %3343 = vst.msk [vmem:[#allocation3 + $0x91] sm:$0xff] %vm989_vm5, %v3310_v61  ;;  %v7558_v47 = vld [vmem:[#allocation4 + $0x40] sm:$0xff]  ;;  %v7560_v35 = vld [vmem:[#allocation4 + $0x48] sm:$0xff]  ;;  %4878 = vmatmul.mubr.msk.bf16.vlgmr.msra.gmra.mrb[16].mxu0 %vm989_vm5, %v3771_v33  ;;  %v7586_v33 = vpack.i.bf16 %v1516_v40, %v1515_v2 }
 0x34d   : > { %5215 = vrot.lane.b32.xlu0 %v5234_v41, %s6144_s21  ;;  %v1326_v55 = vpop.permute.xlu1 %1325  ;;  %v1324_v27 = vpop.permute.xlu0 %1323  ;;  %v3311_v41 = vld [vmem:[%s6608_s1 + $0x58] sm:$0xff]  ;;  %v7565_v23 = vld [vmem:[#allocation5 + $0x40] sm:$0xff]  ;;  %v7567_v36 = vld [vmem:[#allocation5 + $0x48] sm:$0xff] }
 0x34e   : > { %1394 = vst.msk [vmem:[#allocation2 + $0x171] sm:$0xff] %vm1364_vm6, %v1326_v55  ;;  %1393 = vst.msk [vmem:[#allocation2 + $0x169] sm:$0xff] %vm1364_vm6, %v1324_v27  ;;  %v3313_v4 = vld [vmem:[%s6608_s1 + $0x68] sm:$0xff]  ;;  %v3373_v61 = vld [vmem:[#allocation3 + $0x60] sm:$0xff] }
 0x34f   : > { %3344 = vst.msk [vmem:[#allocation3 + $0x99] sm:$0xff] %vm989_vm5, %v3311_v41  ;;  %4046 = vst.msk [vmem:[#allocation4 + $0x40] sm:$0xff] %vm989_vm5, %v7565_v23  ;;  %v3374_v55 = vld [vmem:[#allocation3 + $0x68] sm:$0xff]  ;;  %v3376_v2 = vld [vmem:[#allocation3 + $0x80] sm:$0xff] }
 0x350   : > { %4047 = vst.msk [vmem:[#allocation4 + $0x48] sm:$0xff] %vm989_vm5, %v7567_v36  ;;  %5245 = vrot.lane.b32.xlu1 %v7483_v1, %s6149_s3  ;;  %v3409_v27 = vld [vmem:[#allocation3 + $0x61] sm:$0xff]  ;;  %3346 = vst.msk [vmem:[#allocation3 + $0xb1] sm:$0xff] %vm989_vm5, %v3313_v4  ;;  %v3410_v41 = vld [vmem:[#allocation3 + $0x69] sm:$0xff] }
 0x351   : > { %5220 = vrot.lane.b32.xlu0 %v7443_v11, %s6145_s6  ;;  %v3445_v30 = vmax.f32 %v3373_v61, %v3409_v27  ;;  %v3481_v52 = vld [vmem:[#allocation3 + $0x62] sm:$0xff]  ;;  %v3482_v25 = vld [vmem:[#allocation3 + $0x6a] sm:$0xff]  ;;  %v3549_v11 = vmax.f32 %v7477_v16, %v7481_v20  ;;  %v3446_v26 = vmax.f32 %v3374_v55, %v3410_v41  ;;  %v3375_v4 = vld [vmem:[#allocation3 + $0x78] sm:$0xff]  ;;  %v3712_v61 = vmax.f32 %v7537_v31, %v7543_v56 }
 0x352   : > { %v3411_v40 = vld [vmem:[#allocation3 + $0x79] sm:$0xff]  ;;  %v3412_v16 = vld [vmem:[#allocation3 + $0x81] sm:$0xff]  ;;  %v1581_v62 = vld [vmem:[#allocation2 + $0x13a] sm:$0xff] }
 0x353   : > { %v7598_v27 = vld [vmem:[#allocation4 + $0x50] sm:$0xff]  ;;  %v3517_v8 = vmax.f32 %v3445_v30, %v3481_v52  ;;  %v3447_v6 = vmax.f32 %v3375_v4, %v3411_v40  ;;  %v3518_v13 = vmax.f32 %v3446_v26, %v3482_v25  ;;  %v3448_v51 = vmax.f32 %v3376_v2, %v3412_v16  ;;  %v3377_v59 = vld [vmem:[#allocation3 + $0x90] sm:$0xff] }
 0x354   : > { %v3483_v58 = vld [vmem:[#allocation3 + $0x7a] sm:$0xff]  ;;  %v3484_v7 = vld [vmem:[#allocation3 + $0x82] sm:$0xff]  ;;  %5275 = vrot.lane.b32.xlu1 %v7581_v32, %s6144_s21  ;;  %v3413_v30 = vld [vmem:[#allocation3 + $0x91] sm:$0xff] }
 0x355   : > { %5225 = vrot.lane.b32.xlu0 %v7451_v24, %s6145_s6  ;;  %v7610_v56 = vld [vmem:[#allocation5 + $0x50] sm:$0xff]  ;;  %v3581_v41 = vmax.f32 %v3549_v11, %v3517_v8  ;;  %v7612_v52 = vmax.f32 %v3447_v6, %v3483_v58  ;;  %v3551_v4 = vmax.f32 %v7481_v20, %v3517_v8  ;;  %v3449_v24 = vmax.f32 %v3377_v59, %v3413_v30  ;;  %v3415_v30 = vld [vmem:[#allocation3 + $0xa9] sm:$0xff] }
 0x356   : > { %v3378_v40 = vld [vmem:[#allocation3 + $0x98] sm:$0xff]  ;;  %4048 = vst.msk [vmem:[#allocation4 + $0x50] sm:$0xff] %vm989_vm5, %v7610_v56  ;;  %v3582_v25 = vmax.f32 %v3550_v39, %v3518_v13  ;;  %v7617_v26 = vmax.f32 %v3448_v51, %v3484_v7  ;;  %v3552_v2 = vmax.f32 %v7495_v48, %v3518_v13 }
 0x357   : > { %v3414_v9 = vld [vmem:[#allocation3 + $0x99] sm:$0xff]  ;;  %v3614_v58 = vmul.f32 %v7489_v57, %v3581_v41  ;;  %v3583_v6 = vmax.f32 %v3551_v4, %v7612_v52  ;;  %v3553_v11 = vmax.f32 %v3517_v8, %v7612_v52  ;;  %v3380_v59 = vld [vmem:[#allocation3 + $0xb0] sm:$0xff] }
 0x358   : > { %v3485_v55 = vld [vmem:[#allocation3 + $0x92] sm:$0xff]  ;;  %v3450_v16 = vmax.f32 %v3378_v40, %v3414_v9  ;;  %v3486_v31 = vld [vmem:[#allocation3 + $0x9a] sm:$0xff]  ;;  %5280 = vrot.lane.b32.xlu1 %v7586_v33, %s6144_s21  ;;  %v3615_v48 = vmul.f32 %v7489_v57, %v3582_v25  ;;  %v3584_v39 = vmax.f32 %v3552_v2, %v7617_v26  ;;  %v7633_v9 = vld [vmem:[#allocation4 + $0x58] sm:$0xff]  ;;  %v3554_v41 = vmax.f32 %v3518_v13, %v7617_v26 }
 0x359   : > { %v7622_v20 = vmax.f32 %v3449_v24, %v3485_v55  ;;  %v3416_v43 = vld [vmem:[#allocation3 + $0xb1] sm:$0xff]  ;;  %5230 = vrot.lane.b32.xlu0 %v7467_v49, %s6146_s17  ;;  %v7635_v55 = vld [vmem:[#allocation5 + $0x58] sm:$0xff]  ;;  %v3742_v51 = vmax.f32 %v3710_v60, %v3614_v58  ;;  %4074 = vst.msk [vmem:[#allocation5 + $0x20] sm:$0xff] %vm989_vm5, %v3614_v58  ;;  %v3616_v49 = vmul.f32 %v7489_v57, %v3583_v6  ;;  %v3314_v58 = vld [vmem:[%s6608_s1 + $0x70] sm:$0xff] }
 0x35a   : > { %v7631_v7 = vmax.f32 %v3450_v16, %v3486_v31  ;;  %v1547_v8 = vld [vmem:[#allocation2 + $0x121] sm:$0xff]  ;;  %4049 = vst.msk [vmem:[#allocation4 + $0x58] sm:$0xff] %vm989_vm5, %v7635_v55  ;;  %v1548_v31 = vld [vmem:[#allocation2 + $0x129] sm:$0xff]  ;;  %v3743_v24 = vmax.f32 %v3711_v17, %v3615_v48  ;;  %4075 = vst.msk [vmem:[#allocation5 + $0x28] sm:$0xff] %vm989_vm5, %v3615_v48  ;;  %v3617_v25 = vmul.f32 %v7489_v57, %v3584_v39 }
 0x35b   : > { %v3585_v4 = vmax.f32 %v3553_v11, %v7622_v20  ;;  %v3487_v40 = vld [vmem:[#allocation3 + $0xaa] sm:$0xff]  ;;  %v3451_v60 = vmax.f32 %v3379_v46, %v3415_v30  ;;  %v3452_v2 = vmax.f32 %v3380_v59, %v3416_v43  ;;  %v3488_v16 = vld [vmem:[#allocation3 + $0xb2] sm:$0xff]  ;;  %v3744_v6 = vmax.f32 %v3712_v61, %v3616_v49  ;;  %4076 = vst.msk [vmem:[#allocation5 + $0x30] sm:$0xff] %vm989_vm5, %v3616_v49 }
 0x35c   : > { %v3586_v13 = vmax.f32 %v3554_v41, %v7631_v7  ;;  %v3555_v38 = vmax.f32 %v7612_v52, %v7622_v20  ;;  %v3315_v17 = vld [vmem:[%s6608_s1 + $0x78] sm:$0xff]  ;;  %3347 = vst.msk [vmem:[#allocation3 + $0xc1] sm:$0xff] %vm989_vm5, %v3314_v58  ;;  %v7653_v48 = vld [vmem:[#allocation4 + $0x60] sm:$0xff]  ;;  %v7655_v46 = vld [vmem:[#allocation4 + $0x68] sm:$0xff]  ;;  %5285 = vrot.lane.b32.xlu1 %v7583_v12, %s6145_s6  ;;  %v3772_v43 = vpack.c.bf16 %v3743_v24, %v3742_v51 }
 0x35d   : > { %v3618_v11 = vmul.f32 %v7489_v57, %v3585_v4  ;;  %5250 = vrot.lane.b32.xlu0 %v7483_v1, %s6146_s17  ;;  %v9677_v61 = vmax.f32 %v7541_v18, %v7545_v44  ;;  %4077 = vst.msk [vmem:[#allocation5 + $0x38] sm:$0xff] %vm989_vm5, %v3617_v25  ;;  %v7665_v52 = vmax.f32 %v3451_v60, %v3487_v40  ;;  %3348 = vst.msk [vmem:[#allocation3 + $0xc9] sm:$0xff] %vm989_vm5, %v3315_v17  ;;  %v7668_v30 = vld [vmem:[#allocation5 + $0x60] sm:$0xff]  ;;  %v7670_v39 = vld [vmem:[#allocation5 + $0x68] sm:$0xff] }
 0x35e   : > { %v3316_v1 = vld [vmem:[%s6608_s1 + $0x80] sm:$0xff]  ;;  %v1564_v41 = vld [vmem:[#allocation2 + $0x6a] sm:$0xff]  ;;  %v3619_v18 = vmul.f32 %v7489_v57, %v3586_v13  ;;  %v9678_v44 = vmax.f32 %v7558_v47, %v7565_v23  ;;  %v3556_v60 = vmax.f32 %v7617_v26, %v7631_v7  ;;  %4050 = vst.msk [vmem:[#allocation4 + $0x60] sm:$0xff] %vm989_vm5, %v7668_v30  ;;  %4051 = vst.msk [vmem:[#allocation4 + $0x68] sm:$0xff] %vm989_vm5, %v7670_v39  ;;  %4881 = vmatprep.mubr.msk.bf16.mxu0 %vm989_vm5, %v3772_v43 }
 0x35f   : > { %v3745_v59 = vmax.f32 %v9677_v61, %v3617_v25  ;;  %v1563_v49 = vld [vmem:[#allocation2 + $0x62] sm:$0xff]  ;;  %v1580_v51 = vld [vmem:[#allocation2 + $0x12a] sm:$0xff]  ;;  %4078 = vst.msk [vmem:[#allocation5 + $0x40] sm:$0xff] %vm989_vm5, %v3618_v11  ;;  %v7678_v25 = vmax.f32 %v3452_v2, %v3488_v16  ;;  %3349 = vst.msk [vmem:[#allocation3 + $0xd9] sm:$0xff] %vm989_vm5, %v3316_v1  ;;  %v7690_v47 = vpack.i.bf16 %v1548_v31, %v1547_v8 }
 0x360   : > { %v1579_v4 = vld [vmem:[#allocation2 + $0x122] sm:$0xff]  ;;  %v3746_v40 = vmax.f32 %v9678_v44, %v3618_v11  ;;  %v7688_v13 = vld [vmem:[#allocation4 + $0x70] sm:$0xff]  ;;  %v3587_v26 = vmax.f32 %v3555_v38, %v7665_v52  ;;  %v3716_v2 = vmax.f32 %v7598_v27, %v7610_v56  ;;  %v7697_v16 = vld [vmem:[#allocation4 + $0x78] sm:$0xff]  ;;  %v9679_v31 = vmax.f32 %v7560_v35, %v7567_v36  ;;  %4079 = vst.msk [vmem:[#allocation5 + $0x48] sm:$0xff] %vm989_vm5, %v3619_v18 }
 0x361   : > { %v1435_v24 = vld [vmem:[#allocation2 + $0x49] sm:$0xff]  ;;  %v3773_v23 = vpack.c.bf16 %v3745_v59, %v3744_v6  ;;  %v7701_v17 = vld [vmem:[#allocation5 + $0x78] sm:$0xff]  ;;  %v3588_v38 = vmax.f32 %v3556_v60, %v7678_v25  ;;  %v3717_v27 = vmax.f32 %v7633_v9, %v7635_v55  ;;  %5255 = vrot.lane.b32.xlu0 %v7583_v12, %s6141_s20  ;;  %5290 = vrot.lane.b32.xlu1 %v7690_v47, %s6145_s6  ;;  %v7723_v36 = vld [vmem:[#allocation4 + $0x80] sm:$0xff] }
 0x362   : > { %v3317_v58 = vld [vmem:[%s6608_s1 + $0x88] sm:$0xff]  ;;  %v7699_v11 = vld [vmem:[#allocation5 + $0x70] sm:$0xff]  ;;  %v3747_v43 = vmax.f32 %v9679_v31, %v3619_v18  ;;  %4053 = vst.msk [vmem:[#allocation4 + $0x78] sm:$0xff] %vm989_vm5, %v7701_v17  ;;  %v3319_v6 = vld [vmem:[%s6608_s1 + $0x98] sm:$0xff]  ;;  %v3620_v35 = vmul.f32 %v7489_v57, %v3587_v26  ;;  %v7735_v18 = vpack.i.bf16 %v1564_v41, %v1563_v49  ;;  %v7737_v44 = vpack.i.bf16 %v1580_v51, %v1579_v4 }
 0x363   : > { %3350 = vst.msk [vmem:[#allocation3 + $0xe1] sm:$0xff] %vm989_vm5, %v3317_v58  ;;  %v1436_v8 = vld [vmem:[#allocation2 + $0x51] sm:$0xff]  ;;  %4052 = vst.msk [vmem:[#allocation4 + $0x70] sm:$0xff] %vm989_vm5, %v7699_v11  ;;  %v7725_v9 = vld [vmem:[#allocation5 + $0x80] sm:$0xff]  ;;  %4882 = vmatmul.mubr.msk.bf16.gmra.mrb[20].mxu0 %vm989_vm5, %v3773_v23  ;;  %v3621_v61 = vmul.f32 %v7489_v57, %v3588_v38  ;;  %v3718_v38 = vmax.f32 %v7653_v48, %v7668_v30  ;;  %v3721_v48 = vmax.f32 %v7697_v16, %v7701_v17 }
 0x364   : > { %v3318_v56 = vld [vmem:[%s6608_s1 + $0x90] sm:$0xff]  ;;  %3352 = vst.msk [vmem:[#allocation3 + $0xf9] sm:$0xff] %vm989_vm5, %v3319_v6  ;;  %v3774_v55 = vpack.c.bf16 %v3747_v43, %v3746_v40  ;;  %v7729_v59 = vld [vmem:[#allocation4 + $0x88] sm:$0xff]  ;;  %4054 = vst.msk [vmem:[#allocation4 + $0x80] sm:$0xff] %vm989_vm5, %v7725_v9  ;;  %v7739_v60 = vpack.i.bf16 %v1436_v8, %v1435_v24  ;;  %v3748_v58 = vmax.f32 %v3716_v2, %v3620_v35 }
 0x365   : > { %3351 = vst.msk [vmem:[#allocation3 + $0xf1] sm:$0xff] %vm989_vm5, %v3318_v56  ;;  %v7731_v1 = vld [vmem:[#allocation5 + $0x88] sm:$0xff]  ;;  %4080 = vst.msk [vmem:[#allocation5 + $0x50] sm:$0xff] %vm989_vm5, %v3620_v35  ;;  %v3381_v23 = vld [vmem:[#allocation3 + $0xc0] sm:$0xff]  ;;  %v3749_v31 = vmax.f32 %v3717_v27, %v3621_v61  ;;  %v3557_v24 = vmax.f32 %v7622_v20, %v7665_v52  ;;  %v3558_v2 = vmax.f32 %v7631_v7, %v7678_v25  ;;  %5295 = vrot.lane.b32.xlu1 %v7735_v18, %s6146_s17 }
 0x366   : > { %v3417_v40 = vld [vmem:[#allocation3 + $0xc1] sm:$0xff]  ;;  %4055 = vst.msk [vmem:[#allocation4 + $0x88] sm:$0xff] %vm989_vm5, %v7731_v1  ;;  %v3320_v26 = vld [vmem:[%s6608_s1 + $0xa0] sm:$0xff]  ;;  %4885 = vmatprep.mubr.msk.bf16.mxu0 %vm989_vm5, %v3774_v55  ;;  %4081 = vst.msk [vmem:[#allocation5 + $0x58] sm:$0xff] %vm989_vm5, %v3621_v61  ;;  %5260 = vrot.lane.b32.xlu0 %v7690_v47, %s6141_s20  ;;  %v3719_v20 = vmax.f32 %v7655_v46, %v7670_v39 }
 0x367   : > { %v3382_v49 = vld [vmem:[#allocation3 + $0xc8] sm:$0xff]  ;;  %v3453_v4 = vmax.f32 %v3381_v23, %v3417_v40  ;;  %3353 = vst.msk [vmem:[#allocation3 + $0x109] sm:$0xff] %vm989_vm5, %v3320_v26  ;;  %v3383_v27 = vld [vmem:[#allocation3 + $0xd8] sm:$0xff]  ;;  %v3775_v7 = vpack.c.bf16 %v3749_v31, %v3748_v58  ;;  %v3720_v40 = vmax.f32 %v7688_v13, %v7699_v11  ;;  %v7777_v16 = vld [vmem:[#allocation4 + $0x90] sm:$0xff] }
 0x368   : > { %v3418_v41 = vld [vmem:[#allocation3 + $0xc9] sm:$0xff]  ;;  %v3419_v56 = vld [vmem:[#allocation3 + $0xd9] sm:$0xff] }
 0x369   : > { %v3489_v51 = vld [vmem:[#allocation3 + $0xc2] sm:$0xff]  ;;  %v3454_v8 = vmax.f32 %v3382_v49, %v3418_v41  ;;  %v3490_v43 = vld [vmem:[#allocation3 + $0xca] sm:$0xff]  ;;  %v3455_v61 = vmax.f32 %v3383_v27, %v3419_v56  ;;  %v3321_v30 = vld [vmem:[%s6608_s1 + $0xa8] sm:$0xff]  ;;  %5315 = vrot.lane.b32.xlu1 %v7737_v44, %s6146_s17 }
 0x36a   : > { %v7760_v6 = vmax.f32 %v3453_v4, %v3489_v51  ;;  %v3384_v35 = vld [vmem:[#allocation3 + $0xe0] sm:$0xff]  ;;  %3354 = vst.msk [vmem:[#allocation3 + $0x111] sm:$0xff] %vm989_vm5, %v3321_v30  ;;  %5265 = vrot.lane.b32.xlu0 %v7735_v18, %s6142_s22 }
 0x36b   : > { %v3420_v55 = vld [vmem:[#allocation3 + $0xe1] sm:$0xff]  ;;  %v3526_v26 = vmax.f32 %v3454_v8, %v3490_v43  ;;  %v3422_v8 = vld [vmem:[#allocation3 + $0xf9] sm:$0xff]  ;;  %4886 = vmatmul.mubr.msk.bf16.gmra.mrb[24].mxu0 %vm989_vm5, %v3775_v7 }
 0x36c   : > { %v3491_v23 = vld [vmem:[#allocation3 + $0xda] sm:$0xff]  ;;  %v3456_v49 = vmax.f32 %v3384_v35, %v3420_v55  ;;  %v3492_v41 = vld [vmem:[#allocation3 + $0xe2] sm:$0xff]  ;;  %v3589_v39 = vmax.f32 %v3557_v24, %v7760_v6  ;;  %v3559_v31 = vmax.f32 %v7665_v52, %v7760_v6  ;;  %v3385_v4 = vld [vmem:[#allocation3 + $0xf0] sm:$0xff] }
 0x36d   : > { %v7770_v58 = vmax.f32 %v3455_v61, %v3491_v23  ;;  %v3386_v51 = vld [vmem:[#allocation3 + $0xf8] sm:$0xff]  ;;  %v3590_v17 = vmax.f32 %v3558_v2, %v3526_v26  ;;  %v3560_v52 = vmax.f32 %v7678_v25, %v3526_v26  ;;  %v7789_v23 = vld [vmem:[#allocation4 + $0x98] sm:$0xff]  ;;  %v7791_v30 = vld [vmem:[#allocation5 + $0x90] sm:$0xff]  ;;  %5335 = vrot.lane.b32.xlu1 %v7739_v60, %s6141_s20 }
 0x36e   : > { %v3421_v13 = vld [vmem:[#allocation3 + $0xf1] sm:$0xff]  ;;  %v7783_v24 = vmax.f32 %v3456_v49, %v3492_v41  ;;  %v3494_v27 = vld [vmem:[#allocation3 + $0xfa] sm:$0xff]  ;;  %v3622_v56 = vmul.f32 %v7489_v57, %v3589_v39  ;;  %v3458_v61 = vmax.f32 %v3386_v51, %v3422_v8  ;;  %v7793_v2 = vld [vmem:[#allocation5 + $0x98] sm:$0xff]  ;;  %4056 = vst.msk [vmem:[#allocation4 + $0x90] sm:$0xff] %vm989_vm5, %v7791_v30  ;;  %5270 = vrot.lane.b32.xlu0 %v7737_v44, %s6142_s22 }
 0x36f   : > { %v3493_v43 = vld [vmem:[#allocation3 + $0xf2] sm:$0xff]  ;;  %v3591_v35 = vmax.f32 %v3559_v31, %v7770_v58  ;;  %v3457_v55 = vmax.f32 %v3385_v4, %v3421_v13  ;;  %v3623_v49 = vmul.f32 %v7489_v57, %v3590_v17  ;;  %v3561_v41 = vmax.f32 %v7760_v6, %v7770_v58  ;;  %v3387_v39 = vld [vmem:[#allocation3 + $0x108] sm:$0xff]  ;;  %4057 = vst.msk [vmem:[#allocation4 + $0x98] sm:$0xff] %vm989_vm5, %v7793_v2  ;;  %v5740_v46 = vld [vmem:[#allocation14 + $0x8] sm:$0xff]  }
 0x370   : > { %v3592_v25 = vmax.f32 %v3560_v52, %v7783_v24  ;;  %v3562_v7 = vmax.f32 %v3526_v26, %v7783_v24  ;;  %v3423_v11 = vld [vmem:[#allocation3 + $0x109] sm:$0xff]  ;;  %v5739_v31 = vld [vmem:[#allocation14] sm:$0xff]   ;;  %v1452_v51 = vld [vmem:[#allocation2 + $0x111] sm:$0xff]  ;;  %v3750_v13 = vmax.f32 %v3718_v38, %v3622_v56  ;;  %4082 = vst.msk [vmem:[#allocation5 + $0x60] sm:$0xff] %vm989_vm5, %v3622_v56  ;;  %v7808_v6 = vmax.f32 %v3458_v61, %v3494_v27 }
 0x371   : > { %v1451_v4 = vld [vmem:[#allocation2 + $0x109] sm:$0xff]  ;;  %v3624_v17 = vmul.f32 %v7489_v57, %v3591_v35  ;;  %v7806_v52 = vmax.f32 %v3457_v55, %v3493_v43  ;;  %v3751_v26 = vmax.f32 %v3719_v20, %v3623_v49  ;;  %4083 = vst.msk [vmem:[#allocation5 + $0x68] sm:$0xff] %vm989_vm5, %v3623_v49  ;;  %v3459_v38 = vmax.f32 %v3387_v39, %v3423_v11  ;;  %v3388_v49 = vld [vmem:[#allocation3 + $0x110] sm:$0xff] }
 0x372   : > { %v3625_v8 = vmul.f32 %v7489_v57, %v3592_v25  ;;  %v1467_v56 = vld [vmem:[#allocation2 + $0x4a] sm:$0xff]  ;;  %v3594_v27 = vmax.f32 %v3562_v7, %v7808_v6  ;;  %4829 = vmatprep.subr.bf16.mxu1 %v5739_v31  ;;  %v7821_v20 = vpack.i.bf16 %v1452_v51, %v1451_v4  ;;  %v3495_v25 = vld [vmem:[#allocation3 + $0x10a] sm:$0xff]  ;;  %5300 = vrot.lane.b32.xlu0 %v7581_v32, %s6147_s0 }
 0x373   : > { %v3752_v35 = vmax.f32 %v3720_v40, %v3624_v17  ;;  %4084 = vst.msk [vmem:[#allocation5 + $0x70] sm:$0xff] %vm989_vm5, %v3624_v17  ;;  %v3593_v43 = vmax.f32 %v3561_v41, %v7806_v52  ;;  %v3563_v55 = vmax.f32 %v7770_v58, %v7806_v52  ;;  %v3776_v61 = vpack.c.bf16 %v3751_v26, %v3750_v13  ;;  %v3424_v40 = vld [vmem:[#allocation3 + $0x111] sm:$0xff]  ;;  %v3322_v51 = vld [vmem:[%s6608_s1 + $0xb0] sm:$0xff] }
 0x374   : > { %v3753_v11 = vmax.f32 %v3721_v48, %v3625_v8  ;;  %4085 = vst.msk [vmem:[#allocation5 + $0x78] sm:$0xff] %vm989_vm5, %v3625_v8  ;;  %v3564_v41 = vmax.f32 %v7783_v24, %v7808_v6  ;;  %4830 = vmatpush3.bf16.msra.mxu1 %v5739_v31  ;;  %v3627_v58 = vmul.f32 %v7489_v57, %v3594_v27  ;;  %v3496_v17 = vld [vmem:[#allocation3 + $0x112] sm:$0xff]  ;;  %v3323_v48 = vld [vmem:[%s6608_s1 + $0xb8] sm:$0xff]  ;;  %3355 = vst.msk [vmem:[#allocation3 + $0x121] sm:$0xff] %vm989_vm5, %v3322_v51 }
 0x375   : > { %v3626_v7 = vmul.f32 %v7489_v57, %v3593_v43  ;;  %v3460_v39 = vmax.f32 %v3388_v49, %v3424_v40  ;;  %v7828_v4 = vmax.f32 %v3459_v38, %v3495_v25  ;;  %4831 = vmatprep.subr.bf16.mxu1 %v5740_v46  ;;  %5340 = vrot.lane.b32.xlu1 %v7821_v20, %s6141_s20  ;;  %v7840_v31 = vld [vmem:[#allocation4 + $0xa0] sm:$0xff]  ;;  %v7842_v26 = vld [vmem:[#allocation4 + $0xa8] sm:$0xff]  ;;  %v1484_v49 = vld [vmem:[#allocation2 + $0x112] sm:$0xff] }
 0x376   : > { %v3777_v13 = vpack.c.bf16 %v3753_v11, %v3752_v35  ;;  %v3724_v24 = vmax.f32 %v7777_v16, %v7791_v30  ;;  %3356 = vst.msk [vmem:[#allocation3 + $0x129] sm:$0xff] %vm989_vm5, %v3323_v48  ;;  %v7844_v8 = vld [vmem:[#allocation5 + $0xa0] sm:$0xff]  ;;  %v1483_v32 = vld [vmem:[#allocation2 + $0x10a] sm:$0xff]  ;;  %4889 = vmatprep.mubr.msk.bf16.mxu0 %vm989_vm5, %v3776_v61  ;;  %v9680_v38 = vmax.f32 %v7723_v36, %v7725_v9  ;;  %4087 = vst.msk [vmem:[#allocation5 + $0x88] sm:$0xff] %vm989_vm5, %v3627_v58 }
 0x377   : > { %v9681_v16 = vmax.f32 %v7729_v59, %v7731_v1  ;;  %4086 = vst.msk [vmem:[#allocation5 + $0x80] sm:$0xff] %vm989_vm5, %v3626_v7  ;;  %v7855_v43 = vmax.f32 %v3460_v39, %v3496_v17  ;;  %v3595_v27 = vmax.f32 %v3563_v55, %v7828_v4  ;;  %v7858_v11 = vld [vmem:[#allocation5 + $0xa8] sm:$0xff]  ;;  %4058 = vst.msk [vmem:[#allocation4 + $0xa0] sm:$0xff] %vm989_vm5, %v7844_v8  ;;  %v3324_v61 = vld [vmem:[%s6608_s1 + $0xc0] sm:$0xff]  ;;  %5305 = vrot.lane.b32.xlu0 %v7583_v12, %s6148_s19 }
 0x378   : > { %v3754_v35 = vmax.f32 %v9680_v38, %v3626_v7  ;;  %v3325_v36 = vld [vmem:[%s6608_s1 + $0xc8] sm:$0xff]  ;;  %v7864_v9 = vpack.i.bf16 %v1468_v34, %v1467_v56  ;;  %4890 = vmatmul.mubr.msk.bf16.gmra.mrb[28].mxu0 %vm989_vm5, %v3777_v13  ;;  %4832 = vmatpush3.bf16.msra.mxu1 %v5740_v46  ;;  %4059 = vst.msk [vmem:[#allocation4 + $0xa8] sm:$0xff] %vm989_vm5, %v7858_v11  ;;  %3357 = vst.msk [vmem:[#allocation3 + $0x139] sm:$0xff] %vm989_vm5, %v3324_v61  ;;  %v7871_v59 = vld [vmem:[#allocation4 + $0xb0] sm:$0xff] }
 0x379   : > { %v3755_v30 = vmax.f32 %v9681_v16, %v3627_v58  ;;  %3358 = vst.msk [vmem:[#allocation3 + $0x141] sm:$0xff] %vm989_vm5, %v3325_v36  ;;  %v7873_v1 = vld [vmem:[#allocation5 + $0xb0] sm:$0xff]  ;;  %v3596_v40 = vmax.f32 %v3564_v41, %v7855_v43  ;;  %v3628_v34 = vmul.f32 %v7489_v57, %v3595_v27  ;;  %v3725_v46 = vmax.f32 %v7789_v23, %v7793_v2  ;;  %v7879_v56 = vld [vmem:[#allocation4 + $0xb8] sm:$0xff]  ;;  %v1592_v41 = vld [vmem:[#allocation2 + $0x48] sm:$0xff] }
 0x37a   : > { %v7881_v25 = vld [vmem:[#allocation5 + $0xb8] sm:$0xff]  ;;  %4060 = vst.msk [vmem:[#allocation4 + $0xb0] sm:$0xff] %vm989_vm5, %v7873_v1  ;;  %5345 = vrot.lane.b32.xlu1 %v7864_v9, %s6142_s22  ;;  %v3326_v39 = vld [vmem:[%s6608_s1 + $0xd0] sm:$0xff]  ;;  %v7896_v51 = vpack.i.bf16 %v1484_v49, %v1483_v32  ;;  %v7900_v48 = vld [vmem:[#allocation4 + $0xc0] sm:$0xff]  ;;  %v3565_v36 = vmax.f32 %v7806_v52, %v7828_v4 }
 0x37b   : > { %v3778_v55 = vpack.c.bf16 %v3755_v30, %v3754_v35  ;;  %v5741_v7 = vld [vmem:[#allocation14 + $0x10] sm:$0xff]   ;;  %4061 = vst.msk [vmem:[#allocation4 + $0xb8] sm:$0xff] %vm989_vm5, %v7881_v25  ;;  %v3629_v23 = vmul.f32 %v7489_v57, %v3596_v40  ;;  %v3756_v2 = vmax.f32 %v3724_v24, %v3628_v34  ;;  %4088 = vst.msk [vmem:[#allocation5 + $0x90] sm:$0xff] %vm989_vm5, %v3628_v34  ;;  %v5742_v58 = vld [vmem:[#allocation14 + $0x18] sm:$0xff]   ;;  %5310 = vrot.lane.b32.xlu0 %v7735_v18, %s6149_s3 }
 0x37c   : > { %4833 = vmatprep.subr.bf16.mxu1 %v5741_v7  ;;  %v3327_v17 = vld [vmem:[%s6608_s1 + $0xd8] sm:$0xff]  ;;  %v1593_v12 = vld [vmem:[#allocation2 + $0x50] sm:$0xff]  ;;  %3359 = vst.msk [vmem:[#allocation3 + $0x151] sm:$0xff] %vm989_vm5, %v3326_v39  ;;  %v7902_v13 = vld [vmem:[#allocation5 + $0xc0] sm:$0xff]  ;;  %v3566_v40 = vmax.f32 %v7808_v6, %v7855_v43 }
 0x37d   : > { %4893 = vmatprep.mubr.msk.bf16.mxu0 %vm989_vm5, %v3778_v55  ;;  %4834 = vmatpush3.bf16.msra.mxu1 %v5741_v7  ;;  %3360 = vst.msk [vmem:[#allocation3 + $0x159] sm:$0xff] %vm989_vm5, %v3327_v17  ;;  %v3757_v38 = vmax.f32 %v3725_v46, %v3629_v23  ;;  %4089 = vst.msk [vmem:[#allocation5 + $0x98] sm:$0xff] %vm989_vm5, %v3629_v23  ;;  %v3389_v24 = vld [vmem:[#allocation3 + $0x120] sm:$0xff]  ;;  %v3390_v35 = vld [vmem:[#allocation3 + $0x128] sm:$0xff]  ;;  %v7917_v23 = vpack.i.bf16 %v1593_v12, %v1592_v41 }
 0x37e   : > { %v3425_v16 = vld [vmem:[#allocation3 + $0x121] sm:$0xff]  ;;  %4835 = vmatprep.subr.bf16.mxu1 %v5742_v58  ;;  %4062 = vst.msk [vmem:[#allocation4 + $0xc0] sm:$0xff] %vm989_vm5, %v7902_v13  ;;  %5350 = vrot.lane.b32.xlu1 %v7896_v51, %s6142_s22  ;;  %v3426_v32 = vld [vmem:[#allocation3 + $0x129] sm:$0xff]  ;;  %v7915_v18 = vld [vmem:[#allocation4 + $0xc8] sm:$0xff]  ;;  %v3726_v17 = vmax.f32 %v7840_v31, %v7844_v8  ;;  %v3728_v41 = vmax.f32 %v7871_v59, %v7873_v1 }
 0x37f   : > { %v3461_v30 = vmax.f32 %v3389_v24, %v3425_v16  ;;  %v3497_v27 = vld [vmem:[#allocation3 + $0x122] sm:$0xff]  ;;  %v3498_v61 = vld [vmem:[#allocation3 + $0x12a] sm:$0xff]  ;;  %v3779_v49 = vpack.c.bf16 %v3757_v38, %v3756_v2  ;;  %v3462_v55 = vmax.f32 %v3390_v35, %v3426_v32  ;;  %v3391_v34 = vld [vmem:[#allocation3 + $0x138] sm:$0xff]  ;;  %v3727_v35 = vmax.f32 %v7842_v26, %v7858_v11  ;;  %5320 = vrot.lane.b32.xlu0 %v7586_v33, %s6147_s0 }
 0x380   : > { %v3392_v46 = vld [vmem:[#allocation3 + $0x140] sm:$0xff]  ;;  %v7930_v12 = vld [vmem:[#allocation5 + $0xc8] sm:$0xff]  ;;  %v3328_v32 = vld [vmem:[%s6608_s1 + $0xe0] sm:$0xff] }
 0x381   : > { %v3427_v7 = vld [vmem:[#allocation3 + $0x139] sm:$0xff]  ;;  %v7919_v39 = vmax.f32 %v3461_v30, %v3497_v27  ;;  %v3428_v52 = vld [vmem:[#allocation3 + $0x141] sm:$0xff]  ;;  %4836 = vmatpush3.bf16.msra.mxu1 %v5742_v58  ;;  %4894 = vmatmul.mubr.msk.bf16.gmra.mrb[32].mxu0 %vm989_vm5, %v3779_v49  ;;  %v7924_v6 = vmax.f32 %v3462_v55, %v3498_v61  ;;  %4063 = vst.msk [vmem:[#allocation4 + $0xc8] sm:$0xff] %vm989_vm5, %v7930_v12  ;;  %3361 = vst.msk [vmem:[#allocation3 + $0x169] sm:$0xff] %vm989_vm5, %v3328_v32 }
 0x382   : > { %v3463_v2 = vmax.f32 %v3391_v34, %v3427_v7  ;;  %v3499_v38 = vld [vmem:[#allocation3 + $0x13a] sm:$0xff]  ;;  %v3500_v24 = vld [vmem:[#allocation3 + $0x142] sm:$0xff]  ;;  %v3464_v16 = vmax.f32 %v3392_v46, %v3428_v52  ;;  %5375 = vrot.lane.b32.xlu1 %v7917_v23, %s6147_s0 }
 0x383   : > { %v3329_v31 = vld [vmem:[%s6608_s1 + $0xe8] sm:$0xff]  ;;  %v3597_v8 = vmax.f32 %v3565_v36, %v7919_v39  ;;  %v3567_v26 = vmax.f32 %v7828_v4, %v7919_v39  ;;  %v7947_v11 = vld [vmem:[#allocation4 + $0xd0] sm:$0xff]  ;;  %v3598_v59 = vmax.f32 %v3566_v40, %v7924_v6  ;;  %v3568_v30 = vmax.f32 %v7855_v43, %v7924_v6  ;;  %v3393_v27 = vld [vmem:[#allocation3 + $0x150] sm:$0xff]  ;;  %5325 = vrot.lane.b32.xlu0 %v7690_v47, %s6148_s19 }
 0x384   : > { %v7939_v58 = vmax.f32 %v3463_v2, %v3499_v38  ;;  %3362 = vst.msk [vmem:[#allocation3 + $0x171] sm:$0xff] %vm989_vm5, %v3329_v31  ;;  %v7949_v33 = vld [vmem:[#allocation5 + $0xd0] sm:$0xff]  ;;  %v7952_v1 = vmax.f32 %v3464_v16, %v3500_v24  ;;  %v3729_v4 = vmax.f32 %v7879_v56, %v7881_v25  ;;  %v3394_v61 = vld [vmem:[#allocation3 + $0x158] sm:$0xff]  ;;  %v7958_v49 = vld [vmem:[#allocation4 + $0xd8] sm:$0xff] }
 0x385   : > { %v3429_v36 = vld [vmem:[#allocation3 + $0x151] sm:$0xff]  ;;  %4064 = vst.msk [vmem:[#allocation4 + $0xd0] sm:$0xff] %vm989_vm5, %v7949_v33  ;;  %v3630_v55 = vmul.f32 %v7489_v57, %v3597_v8  ;;  %v3430_v34 = vld [vmem:[#allocation3 + $0x159] sm:$0xff]  ;;  %v3631_v56 = vmul.f32 %v7489_v57, %v3598_v59  ;;  %v7970_v24 = vld [vmem:[#allocation5 + $0xd8] sm:$0xff] }
 0x386   : > { %v3599_v40 = vmax.f32 %v3567_v26, %v7939_v58  ;;  %v3465_v46 = vmax.f32 %v3393_v27, %v3429_v36  ;;  %v3501_v7 = vld [vmem:[#allocation3 + $0x152] sm:$0xff]  ;;  %v3502_v52 = vld [vmem:[#allocation3 + $0x15a] sm:$0xff]  ;;  %v3569_v43 = vmax.f32 %v7919_v39, %v7939_v58  ;;  %v3600_v25 = vmax.f32 %v3568_v30, %v7952_v1  ;;  %5380 = vrot.lane.b32.xlu1 %v7739_v60, %s6148_s19 }
 0x387   : > { %v3466_v2 = vmax.f32 %v3394_v61, %v3430_v34  ;;  %v3570_v38 = vmax.f32 %v7924_v6, %v7952_v1  ;;  %v5743_v16 = vld [vmem:[#allocation14 + $0x20] sm:$0xff]   ;;  %v5744_v32 = vld [vmem:[#allocation14 + $0x28] sm:$0xff]   ;;  %v3758_v39 = vmax.f32 %v3726_v17, %v3630_v55  ;;  %4090 = vst.msk [vmem:[#allocation5 + $0xa0] sm:$0xff] %vm989_vm5, %v3630_v55  ;;  %4065 = vst.msk [vmem:[#allocation4 + $0xd8] sm:$0xff] %vm989_vm5, %v7970_v24  ;;  %5330 = vrot.lane.b32.xlu0 %v7737_v44, %s6149_s3 }
 0x388   : > { %v3632_v31 = vmul.f32 %v7489_v57, %v3599_v40  ;;  %v7978_v8 = vmax.f32 %v3465_v46, %v3501_v7  ;;  %v3330_v6 = vld [vmem:[%s6608_s1 + $0xf0] sm:$0xff]  ;;  %v1608_v26 = vld [vmem:[#allocation2 + $0x108] sm:$0xff]  ;;  %v3759_v30 = vmax.f32 %v3727_v35, %v3631_v56  ;;  %4091 = vst.msk [vmem:[#allocation5 + $0xa8] sm:$0xff] %vm989_vm5, %v3631_v56  ;;  %v3633_v47 = vmul.f32 %v7489_v57, %v3600_v25  ;;  %v3331_v17 = vld [vmem:[%s6608_s1 + $0xf8] sm:$0xff]  ;;  %s4734_s1 = sshll.u32 %s9788_s2, 7 }
 0x389   : > { %v1609_v59 = vld [vmem:[#allocation2 + $0x110] sm:$0xff]  ;;  %v7985_v27 = vmax.f32 %v3466_v2, %v3502_v52  ;;  %4837 = vmatprep.subr.bf16.mxu1 %v5743_v16  ;;  %3363 = vst.msk [vmem:[#allocation3 + $0x181] sm:$0xff] %vm989_vm5, %v3330_v6  ;;  %v7989_v61 = vld [vmem:[#allocation4 + $0xe0] sm:$0xff]  ;;  %v7991_v36 = vld [vmem:[#allocation4 + $0xe8] sm:$0xff]  ;;  %v3730_v35 = vmax.f32 %v7900_v48, %v7902_v13  ;;  %s4469_s18 = sadd.s32 %s4734_s1, %s4733_s27 }
 0x38a   : > { %v3760_v55 = vmax.f32 %v3728_v41, %v3632_v31  ;;  %4092 = vst.msk [vmem:[#allocation5 + $0xb0] sm:$0xff] %vm989_vm5, %v3632_v31  ;;  %v3601_v40 = vmax.f32 %v3569_v43, %v7978_v8  ;;  %4838 = vmatpush3.bf16.msra.mxu1 %v5743_v16  ;;  %3364 = vst.msk [vmem:[#allocation3 + $0x189] sm:$0xff] %vm989_vm5, %v3331_v17  ;;  %v7998_v34 = vld [vmem:[#allocation5 + $0xe0] sm:$0xff]  ;;  %v8000_v46 = vld [vmem:[#allocation5 + $0xe8] sm:$0xff]  ;;  %v3780_v52 = vpack.c.bf16 %v3759_v30, %v3758_v39 }
 0x38b   : > { %v8002_v7 = vld [vmem:[#allocation3 + $0x198] sm:$0xff]  ;;  %v3761_v56 = vmax.f32 %v3729_v4, %v3633_v47  ;;  %4093 = vst.msk [vmem:[#allocation5 + $0xb8] sm:$0xff] %vm989_vm5, %v3633_v47  ;;  %v3602_v41 = vmax.f32 %v3570_v38, %v7985_v27  ;;  %v3731_v43 = vmax.f32 %v7915_v18, %v7930_v12  ;;  %v3395_v25 = vld [vmem:[#allocation3 + $0x168] sm:$0xff]  ;;  %v3396_v48 = vld [vmem:[#allocation3 + $0x170] sm:$0xff]  ;;  %4839 = vmatprep.subr.bf16.mxu1 %v5744_v32 }
 0x38c   : > { %v3431_v13 = vld [vmem:[#allocation3 + $0x169] sm:$0xff]  ;;  %4066 = vst.msk [vmem:[#allocation4 + $0xe0] sm:$0xff] %vm989_vm5, %v7998_v34  ;;  %4067 = vst.msk [vmem:[#allocation4 + $0xe8] sm:$0xff] %vm989_vm5, %v8000_v46  ;;  %5385 = vrot.lane.b32.xlu1 %v7864_v9, %s6149_s3  ;;  %v3634_v4 = vmul.f32 %v7489_v57, %v3601_v40  ;;  %v3432_v2 = vld [vmem:[#allocation3 + $0x171] sm:$0xff]  ;;  %v3571_v16 = vmax.f32 %v7939_v58, %v7978_v8  ;;  %4897 = vmatprep.mubr.msk.bf16.mxu0 %vm989_vm5, %v3780_v52 }
 0x38d   : > { %v3467_v18 = vmax.f32 %v3395_v25, %v3431_v13  ;;  %v3503_v12 = vld [vmem:[#allocation3 + $0x16a] sm:$0xff]  ;;  %v3504_v38 = vld [vmem:[#allocation3 + $0x172] sm:$0xff]  ;;  %v3781_v39 = vpack.c.bf16 %v3761_v56, %v3760_v55  ;;  %v3635_v31 = vmul.f32 %v7489_v57, %v3602_v41  ;;  %v3468_v6 = vmax.f32 %v3396_v48, %v3432_v2  ;;  %v3400_v30 = vld [vmem:[#allocation3 + $0x1a0] sm:$0xff]  ;;  %5355 = vrot.lane.b32.xlu0 %v7917_v23, %s6144_s21 }
 0x38e   : > { %v3572_v44 = vmax.f32 %v7952_v1, %v7985_v27  ;;  %v3435_v47 = vld [vmem:[#allocation3 + $0x199] sm:$0xff]  ;;  %v3436_v17 = vld [vmem:[#allocation3 + $0x1a1] sm:$0xff]  ;;  %v5394_v40 = vpack.i.bf16 %v1609_v59, %v1608_v26  ;;  %v3762_v14 = vmax.f32 %v3730_v35, %v3634_v4  ;;  %4094 = vst.msk [vmem:[#allocation5 + $0xc0] sm:$0xff] %vm989_vm5, %v3634_v4  ;;  %4840 = vmatpush3.bf16.msra.mxu1 %v5744_v32 }
 0x38f   : > { %v3539_v25 = vmax.f32 %v3467_v18, %v3503_v12  ;;  %v3507_v13 = vld [vmem:[#allocation3 + $0x19a] sm:$0xff]  ;;  %4898 = vmatmul.mubr.msk.bf16.gmra.mrb[36].mxu0 %vm989_vm5, %v3781_v39  ;;  %v3763_v55 = vmax.f32 %v3731_v43, %v3635_v31  ;;  %4095 = vst.msk [vmem:[#allocation5 + $0xc8] sm:$0xff] %vm989_vm5, %v3635_v31  ;;  %v3540_v52 = vmax.f32 %v3468_v6, %v3504_v38  ;;  %v3508_v59 = vld [vmem:[#allocation3 + $0x1a2] sm:$0xff] }
 0x390   : > { %v8024_v58 = vld [vmem:[#allocation4 + $0xf0] sm:$0xff]  ;;  %v3732_v1 = vmax.f32 %v7947_v11, %v7949_v33  ;;  %v3471_v26 = vmax.f32 %v8002_v7, %v3435_v47  ;;  %v8031_v35 = vld [vmem:[#allocation4 + $0xf8] sm:$0xff]  ;;  %5395 = vrot.lane.b32.xlu1 %v5394_v40, %s6147_s0  ;;  %v3733_v43 = vmax.f32 %v7958_v49, %v7970_v24  ;;  %v3472_v33 = vmax.f32 %v3400_v30, %v3436_v17 }
 0x391   : > { %v8033_v56 = vld [vmem:[#allocation5 + $0xf0] sm:$0xff]  ;;  %v8035_v32 = vld [vmem:[#allocation5 + $0xf8] sm:$0xff]  ;;  %v3603_v41 = vmax.f32 %v3571_v16, %v3539_v25  ;;  %v3782_v4 = vpack.c.bf16 %v3763_v55, %v3762_v14  ;;  %v3604_v2 = vmax.f32 %v3572_v44, %v3540_v52  ;;  %v3573_v16 = vmax.f32 %v7978_v8, %v3539_v25  ;;  %5360 = vrot.lane.b32.xlu0 %v5394_v40, %s6144_s21 }
 0x392   : > { %v3397_v48 = vld [vmem:[#allocation3 + $0x180] sm:$0xff]  ;;  %4068 = vst.msk [vmem:[#allocation4 + $0xf0] sm:$0xff] %vm989_vm5, %v8033_v56  ;;  %4069 = vst.msk [vmem:[#allocation4 + $0xf8] sm:$0xff] %vm989_vm5, %v8035_v32  ;;  %v3398_v18 = vld [vmem:[#allocation3 + $0x188] sm:$0xff]  ;;  %v3574_v31 = vmax.f32 %v7985_v27, %v3540_v52  ;;  %v3543_v44 = vmax.f32 %v3471_v26, %v3507_v13  ;;  %v3544_v47 = vmax.f32 %v3472_v33, %v3508_v59 }
 0x393   : > { %v3433_v11 = vld [vmem:[#allocation3 + $0x181] sm:$0xff]  ;;  %v3434_v23 = vld [vmem:[#allocation3 + $0x189] sm:$0xff]  ;;  %v3636_v49 = vmul.f32 %v7489_v57, %v3603_v41  ;;  %4901 = vmatprep.mubr.msk.bf16.mxu0 %vm989_vm5, %v3782_v4  ;;  %v3637_v6 = vmul.f32 %v7489_v57, %v3604_v2  ;;  %v3734_v41 = vmax.f32 %v7989_v61, %v7998_v34  ;;  %v3735_v26 = vmax.f32 %v7991_v36, %v8000_v46 }
 0x394   : > { %v5745_v7 = vld [vmem:[#allocation14 + $0x30] sm:$0x3f]   ;;  %v3469_v12 = vmax.f32 %v3397_v48, %v3433_v11  ;;  %v3470_v24 = vmax.f32 %v3398_v18, %v3434_v23  ;;  %v3506_v39 = vld [vmem:[#allocation3 + $0x18a] sm:$0xff]  ;;  %5400 = vrot.lane.b32.xlu1 %v7821_v20, %s6148_s19  ;;  %v3737_v36 = vmax.f32 %v8031_v35, %v8035_v32 }
 0x395   : > { %v3505_v38 = vld [vmem:[#allocation3 + $0x182] sm:$0xff]  ;;  %4913 = vmatprep.subr.msk.bf16.mxu1 %vm3100_vm7, %v5745_v7  ;;  %v3764_v8 = vmax.f32 %v3732_v1, %v3636_v49  ;;  %4096 = vst.msk [vmem:[#allocation5 + $0xd0] sm:$0xff] %vm989_vm5, %v3636_v49  ;;  %v3102_v27 = vsel %vm3100_vm7, %v5745_v7, 0  ;;  %v3765_v17 = vmax.f32 %v3733_v43, %v3637_v6  ;;  %4097 = vst.msk [vmem:[#allocation5 + $0xd8] sm:$0xff] %vm989_vm5, %v3637_v6  ;;  %5365 = vrot.lane.b32.xlu0 %v7739_v60, %s6145_s6 }
 0x396   : > { %v3541_v14 = vmax.f32 %v3469_v12, %v3505_v38  ;;  %v3542_v30 = vmax.f32 %v3470_v24, %v3506_v39  ;;  %4842 = vmatpush3.bf16.msra.mxu1 %v3102_v27  ;;  %v1503_v48 = vld [vmem:[#allocation2 + $0x90] sm:$0xff]  ;;  %v1504_v11 = vld [vmem:[#allocation2 + $0x98] sm:$0xff]  ;;  %v3736_v43 = vmax.f32 %v8024_v58, %v8033_v56  ;;  %v8075_v58 = vpop.permute.xlu1 %5130 }
 0x397   : > { %v3783_v4 = vpack.c.bf16 %v3765_v17, %v3764_v8  ;;  %v8079_v60 = vpack.i.bf16 %v1504_v11, %v1503_v48  ;;  %v1519_v2 = vld [vmem:[#allocation2 + $0x150] sm:$0xff]  ;;  %v1520_v35 = vld [vmem:[#allocation2 + $0x158] sm:$0xff]  ;;  %v1440_v17 = vld [vmem:[#allocation2 + $0x81] sm:$0xff]  ;;  %v5132_v21 = vunpack.i.l.bf16 %v8075_v58 }
 0x398   : > { %v3605_v55 = vmax.f32 %v3573_v16, %v3541_v14  ;;  %v3575_v13 = vmax.f32 %v3539_v25, %v3541_v14  ;;  %v3606_v40 = vmax.f32 %v3574_v31, %v3542_v30  ;;  %v3576_v1 = vmax.f32 %v3540_v52, %v3542_v30  ;;  %5405 = vrot.lane.b32.xlu1 %v7896_v51, %s6149_s3  ;;  %v8077_v52 = vpop.permute.xlu0 %5110  ;;  %v1535_v49 = vld [vmem:[#allocation2 + $0x91] sm:$0xff]  ;;  %v1536_v24 = vld [vmem:[#allocation2 + $0x99] sm:$0xff] }
 0x399   : > { %4902 = vmatmul.mubr.msk.bf16.gmra.mrb[40].mxu0 %vm989_vm5, %v3783_v4  ;;  %5370 = vrot.lane.b32.xlu0 %v7821_v20, %s6145_s6  ;;  %v5444_v31 = vpack.i.bf16 %v1536_v24, %v1535_v49  ;;  %v1567_v6 = vld [vmem:[#allocation2 + $0x92] sm:$0xff]  ;;  %v1568_v14 = vld [vmem:[#allocation2 + $0x9a] sm:$0xff] }
 0x39a   : > { %v3638_v59 = vmul.f32 %v7489_v57, %v3605_v55  ;;  %v3607_v33 = vmax.f32 %v3575_v13, %v3543_v44  ;;  %v3639_v61 = vmul.f32 %v7489_v57, %v3606_v40  ;;  %v3608_v34 = vmax.f32 %v3576_v1, %v3544_v47  ;;  %v8089_v12 = vpop.permute.xlu1 %5135  ;;  %v1457_v30 = vld [vmem:[#allocation2 + $0x151] sm:$0xff]  ;;  %v1458_v47 = vld [vmem:[#allocation2 + $0x159] sm:$0xff] }
 0x39b   : > { %v1439_v27 = vld [vmem:[#allocation2 + $0x79] sm:$0xff] }
 0x39c   : > { %v3766_v46 = vmax.f32 %v3734_v41, %v3638_v59  ;;  %4098 = vst.msk [vmem:[#allocation5 + $0xe0] sm:$0xff] %vm989_vm5, %v3638_v59  ;;  %v3640_v25 = vmul.f32 %v7489_v57, %v3607_v33  ;;  %v3767_v56 = vmax.f32 %v3735_v26, %v3639_v61  ;;  %4099 = vst.msk [vmem:[#allocation5 + $0xe8] sm:$0xff] %vm989_vm5, %v3639_v61  ;;  %5435 = vrot.lane.b32.xlu1 %v8079_v60, %s6144_s21  ;;  %v8091_v38 = vpop.permute.xlu0 %5115  ;;  %v1455_v40 = vld [vmem:[#allocation2 + $0x139] sm:$0xff]  ;;  %v1456_v26 = vld [vmem:[#allocation2 + $0x141] sm:$0xff] }
 0x39d   : > { %v3641_v7 = vmul.f32 %v7489_v57, %v3608_v34  ;;  %v5439_v57 = vpack.i.bf16 %v1520_v35, %v1519_v2  ;;  %5390 = vrot.lane.b32.xlu0 %v7864_v9, %s6146_s17  ;;  %v5449_v9 = vpack.i.bf16 %v1568_v14, %v1567_v6  ;;  %v5469_v13 = vpack.i.bf16 %v1440_v17, %v1439_v27  ;;  %v1489_v4 = vld [vmem:[#allocation2 + $0x152] sm:$0xff]  ;;  %v1490_v59 = vld [vmem:[#allocation2 + $0x15a] sm:$0xff] }
 0x39e   : > { %4100 = vst.msk [vmem:[#allocation5 + $0xf0] sm:$0xff] %vm989_vm5, %v3640_v25  ;;  %v3784_v32 = vpack.c.bf16 %v3767_v56, %v3766_v46  ;;  %v3768_v18 = vmax.f32 %v3736_v43, %v3640_v25  ;;  %v8098_v20 = vpop.permute.xlu1 %5140  ;;  %v8121_v11 = vpack.i.bf16 %v1456_v26, %v1455_v40  ;;  %v1471_v33 = vld [vmem:[#allocation2 + $0x7a] sm:$0xff]  ;;  %v1472_v43 = vld [vmem:[#allocation2 + $0x82] sm:$0xff]  ;;  %v5103_v17 = vunpack.i.h.bf16 %v7386_v19 }
 0x39f   : > { %v3769_v23 = vmax.f32 %v3737_v36, %v3641_v7  ;;  %4101 = vst.msk [vmem:[#allocation5 + $0xf8] sm:$0xff] %vm989_vm5, %v3641_v7  ;;  %v5429_v36 = vpack.i.bf16 %v1490_v59, %v1489_v4  ;;  %v5479_v46 = vpack.i.bf16 %v1472_v43, %v1471_v33  ;;  %v1487_v25 = vld [vmem:[#allocation2 + $0x13a] sm:$0xff]  ;;  %v1488_v56 = vld [vmem:[#allocation2 + $0x142] sm:$0xff]  ;;  %v5107_v59 = vunpack.i.l.bf16 %v7388_v10 }
 0x3a0   : > { %4905 = vmatprep.mubr.msk.bf16.mxu0 %vm989_vm5, %v3784_v32  ;;  %5440 = vrot.lane.b32.xlu1 %v5439_v57, %s6144_s21  ;;  %v8100_v39 = vpop.permute.xlu0 %5120  ;;  %v5484_v35 = vpack.i.bf16 %v1488_v56, %v1487_v25  ;;  %v1596_v32 = vld [vmem:[#allocation2 + $0x78] sm:$0xff]  ;;  %v1398_v4 = vld [vmem:[#allocation2 + $0x8] sm:$0xff]  ;;  %v5108_v43 = vunpack.i.h.bf16 %v7388_v10 }
 0x3a1   : > { %v3785_v16 = vpack.c.bf16 %v3769_v23, %v3768_v18  ;;  %5410 = vrot.lane.b32.xlu0 %v7896_v51, %s6146_s17  ;;  %v5419_v51 = vpack.i.bf16 %v1458_v47, %v1457_v30  ;;  %v1597_v18 = vld [vmem:[#allocation2 + $0x80] sm:$0xff]  ;;  %v1517_v14 = vld [vmem:[#allocation2 + $0x138] sm:$0xff] }
 0x3a2   : > { %v8105_v44 = vpop.permute.xlu1 %5145  ;;  %v1518_v30 = vld [vmem:[#allocation2 + $0x140] sm:$0xff] }
 0x3a3   : > { %4906 = vmatmul.mubr.msk.bf16.gmra.mrb[44].mxu0 %vm989_vm5, %v3785_v16  ;;  %v5504_v16 = vpack.i.bf16 %v1597_v18, %v1596_v32  ;;  %v5494_v27 = vpack.i.bf16 %v1518_v30, %v1517_v14  ;;  %v1507_v18 = vld [vmem:[#allocation2 + $0xc0] sm:$0xff] }
 0x3a4   : > { %5445 = vrot.lane.b32.xlu1 %v5444_v31, %s6145_s6  ;;  %v8107_v8 = vpop.permute.xlu0 %5125 }
 0x3a5   : > { %5415 = vrot.lane.b32.xlu0 %v5444_v31, %s6141_s20 }
 0x3a6   : > { %v8111_v55 = vpop.permute.xlu1 %5150 }
 0x3a7   : > { %v5153_v28 = vunpack.i.h.bf16 %v8111_v55 }
 0x3a8   : > { %5450 = vrot.lane.b32.xlu1 %v5449_v9, %s6146_s17  ;;  %v8113_v41 = vpop.permute.xlu0 %5155 }
 0x3a9   : > { %5420 = vrot.lane.b32.xlu0 %v5419_v51, %s6141_s20  ;;  %v1397_v51 = vld [vmem:[#allocation2] sm:$0xff] }
 0x3aa   : > { %v8117_v1 = vpop.permute.xlu1 %5170 }
 0x3ac   : > { %5470 = vrot.lane.b32.xlu1 %v5469_v13, %s6141_s20  ;;  %v8119_v48 = vpop.permute.xlu0 %5160 }
 0x3ad   : > { %5425 = vrot.lane.b32.xlu0 %v5449_v9, %s6142_s22 }
 0x3ae   : > { %v8126_v61 = vpop.permute.xlu1 %5190 }
 0x3af   : > { %v5193_v37 = vunpack.i.h.bf16 %v8126_v61 }
 0x3b0   : > { %5475 = vrot.lane.b32.xlu1 %v8121_v11, %s6141_s20  ;;  %v8128_v34 = vpop.permute.xlu0 %5165 }
 0x3b1   : > { %5430 = vrot.lane.b32.xlu0 %v5429_v36, %s6142_s22  ;;  %v2711_v36 = vsel %vm1364_vm6, %v1398_v4, %v5103_v17  ;;  %v1523_v4 = vld [vmem:[#allocation2 + $0x180] sm:$0xff] }
 0x3b2   : > { %v8132_v7 = vpop.permute.xlu1 %5195  ;;  %v2744_v10 = vsel %vm2742_vm8, %v2711_v36, %v5108_v43  ;;  %v5158_v43 = vunpack.i.h.bf16 %v8113_v41  ;;  %v5157_v36 = vunpack.i.l.bf16 %v8113_v41 }
 0x3b4   : > { %5480 = vrot.lane.b32.xlu1 %v5479_v46, %s6142_s22  ;;  %v8134_v2 = vpop.permute.xlu0 %5175 }
 0x3b5   : > { %9682 = vst [vmem:[#allocation66_spill] sm:$0xff] %v8134_v2  ;;  %5455 = vrot.lane.b32.xlu0 %v8079_v60, %s6147_s0 }
 0x3b6   : > { %v8139_v23 = vpop.permute.xlu1 %5200 }
 0x3b8   : > { %5485 = vrot.lane.b32.xlu1 %v5484_v35, %s6142_s22  ;;  %v8141_v57 = vpop.permute.xlu0 %5180 }
 0x3b9   : > { %9683 = vst [vmem:[#allocation67_spill] sm:$0xff] %v8141_v57  ;;  %5460 = vrot.lane.b32.xlu0 %v5444_v31, %s6148_s19 }
 0x3ba   : > { %v8145_v49 = vpop.permute.xlu1 %5205 }
 0x3bc   : > { %5505 = vrot.lane.b32.xlu1 %v5504_v16, %s6147_s0  ;;  %v8147_v24 = vpop.permute.xlu0 %5185 }
 0x3bd   : > { %9684 = vst [vmem:[#allocation68_spill] sm:$0xff] %v8147_v24  ;;  %5465 = vrot.lane.b32.xlu0 %v5449_v9, %s6149_s3  ;;  %v5102_v9 = vunpack.i.l.bf16 %v7386_v19  ;;  %v1405_v24 = vld [vmem:[#allocation2 + $0x60] sm:$0xff] }
 0x3be   : > { %v8151_v60 = vpop.permute.xlu1 %5235 }
 0x3bf   : > { %9685 = vst [vmem:[#allocation69_spill] sm:$0xff] %v8151_v60  ;;  %v2710_v33 = vsel %vm1364_vm6, %v1397_v51, %v5102_v9  ;;  %v1446_v51 = vld [vmem:[#allocation2 + $0xc9] sm:$0xff] }
 0x3c0   : > { %5510 = vrot.lane.b32.xlu1 %v5469_v13, %s6148_s19  ;;  %v5211_v6 = vpop.permute.xlu0 %5210 }
 0x3c1   : > { %5490 = vrot.lane.b32.xlu0 %v5504_v16, %s6144_s21  ;;  %v5213_v56 = vunpack.i.h.bf16 %v5211_v6  ;;  %v5212_v32 = vunpack.i.l.bf16 %v5211_v6  ;;  %v1508_v16 = vld [vmem:[#allocation2 + $0xc8] sm:$0xff] }
 0x3c2   : > { %v8155_v31 = vpop.permute.xlu1 %5240  ;;  %v5554_v17 = vpack.i.bf16 %v1508_v16, %v1507_v18 }
 0x3c3   : > { %9686 = vst [vmem:[#allocation70_spill] sm:$0xff] %v8155_v31 }
 0x3c4   : > { %5515 = vrot.lane.b32.xlu1 %v5479_v46, %s6149_s3  ;;  %v8157_v47 = vpop.permute.xlu0 %5215 }
 0x3c5   : > { %5495 = vrot.lane.b32.xlu0 %v5494_v27, %s6144_s21 }
 0x3c6   : > { %v8163_v40 = vpop.permute.xlu1 %5245 }
 0x3c7   : > { %9687 = vst [vmem:[#allocation71_spill] sm:$0xff] %v8163_v40  ;;  %v1406_v40 = vld [vmem:[#allocation2 + $0x68] sm:$0xff] }
 0x3c8   : > { %5525 = vrot.lane.b32.xlu1 %v5494_v27, %s6147_s0  ;;  %v5221_v26 = vpop.permute.xlu0 %5220  ;;  %v1445_v27 = vld [vmem:[#allocation2 + $0xc1] sm:$0xff] }
 0x3c9   : > { %5500 = vrot.lane.b32.xlu0 %v5469_v13, %s6145_s6  ;;  %v2743_v13 = vsel %vm2742_vm8, %v2710_v33, %v5107_v59  ;;  %v5223_v14 = vunpack.i.h.bf16 %v5221_v26  ;;  %v5222_v30 = vunpack.i.l.bf16 %v5221_v26  ;;  %v1524_v59 = vld [vmem:[#allocation2 + $0x188] sm:$0xff] }
 0x3ca   : > { %v8172_v19 = vpop.permute.xlu1 %5275  ;;  %v5559_v16 = vpack.i.bf16 %v1524_v59, %v1523_v4 }
 0x3cc   : > { %5530 = vrot.lane.b32.xlu1 %v8121_v11, %s6148_s19  ;;  %v8174_v25 = vpop.permute.xlu0 %5225 }
 0x3cd   : > { %9688 = vst [vmem:[#allocation72_spill] sm:$0xff] %v8174_v25  ;;  %5520 = vrot.lane.b32.xlu0 %v5479_v46, %s6146_s17  ;;  %v2777_v46 = vsel %vm2775_vm9, %v2744_v10, %v5213_v56  ;;  %v5162_v10 = vunpack.i.l.bf16 %v8119_v48 }
 0x3ce   : > { %v8180_v9 = vpop.permute.xlu1 %5280  ;;  %v2810_v53 = vsel %vm2808_vm10, %v2777_v46, %v5223_v14  ;;  %v1477_v46 = vld [vmem:[#allocation2 + $0xc2] sm:$0xff] }
 0x3d0   : > { %5535 = vrot.lane.b32.xlu1 %v5484_v35, %s6149_s3  ;;  %v5231_v6 = vpop.permute.xlu0 %5230  ;;  %v2776_v35 = vsel %vm2775_vm9, %v2743_v13, %v5212_v32  ;;  %v5544_v32 = vpack.i.bf16 %v1446_v51, %v1445_v27  ;;  %v5163_v13 = vunpack.i.h.bf16 %v8119_v48 }
 0x3d1   : > { %v5233_v26 = vunpack.i.h.bf16 %v5231_v6  ;;  %v5232_v33 = vunpack.i.l.bf16 %v5231_v6  ;;  %v2809_v5 = vsel %vm2808_vm10, %v2776_v35, %v5222_v30  ;;  %5540 = vrot.lane.b32.xlu0 %v8121_v11, %s6145_s6  ;;  %v5168_v11 = vunpack.i.h.bf16 %v8128_v34 }
 0x3d2   : > { %v8197_v14 = vpop.permute.xlu1 %5285 }
 0x3d3   : > { %v2842_v18 = vsel %vm2841_vm11, %v2809_v5, %v5232_v33  ;;  %v2843_v56 = vsel %vm2841_vm11, %v2810_v53, %v5233_v26  ;;  %v5167_v5 = vunpack.i.l.bf16 %v8128_v34  ;;  %v1478_v53 = vld [vmem:[#allocation2 + $0xca] sm:$0xff] }
 0x3d4   : > { %5555 = vrot.lane.b32.xlu1 %v5554_v17, %s6144_s21  ;;  %v2875_v41 = vsel %vm2874_vm12, %v2842_v18, %v5157_v36  ;;  %v2876_v30 = vsel %vm2874_vm12, %v2843_v56, %v5158_v43  ;;  %v8199_v6 = vpop.permute.xlu0 %5250  ;;  %v5549_v26 = vpack.i.bf16 %v1478_v53, %v1477_v46  ;;  %v1443_v36 = vld [vmem:[#allocation2 + $0xa9] sm:$0xff]  ;;  %v1444_v18 = vld [vmem:[#allocation2 + $0xb1] sm:$0xff] }
 0x3d5   : > { %9689 = vst [vmem:[#allocation73_spill] sm:$0xff] %v8199_v6  ;;  %5545 = vrot.lane.b32.xlu0 %v5544_v32, %s6141_s20  ;;  %v2908_v48 = vsel %vm2907_vm13, %v2875_v41, %v5162_v10  ;;  %v2909_v27 = vsel %vm2907_vm13, %v2876_v30, %v5163_v13  ;;  %v5589_v13 = vpack.i.bf16 %v1444_v18, %v1443_v36  ;;  %v1459_v10 = vld [vmem:[#allocation2 + $0x169] sm:$0xff]  ;;  %v1460_v41 = vld [vmem:[#allocation2 + $0x171] sm:$0xff] }
 0x3d6   : > { %v2941_v51 = vsel %vm2940_vm14, %v2908_v48, %v5167_v5  ;;  %v2942_v4 = vsel %vm2940_vm14, %v2909_v27, %v5168_v11  ;;  %v8209_v59 = vpop.permute.xlu1 %5290  ;;  %v1505_v5 = vld [vmem:[#allocation2 + $0xa8] sm:$0xff]  ;;  %v1506_v46 = vld [vmem:[#allocation2 + $0xb0] sm:$0xff] }
 0x3d7   : > { %v2973_v34 = vpack.c.bf16 %v2942_v4, %v2941_v51  ;;  %v1475_v53 = vld [vmem:[#allocation2 + $0xaa] sm:$0xff]  ;;  %v1476_v48 = vld [vmem:[#allocation2 + $0xb2] sm:$0xff]  ;;  %v5609_v51 = vpack.i.bf16 %v1506_v46, %v1505_v5  ;;  %v5192_v5 = vunpack.i.l.bf16 %v8126_v61  ;;  %v5203_v46 = vunpack.i.h.bf16 %v8139_v23 }
 0x3d8   : > { %5560 = vrot.lane.b32.xlu1 %v5559_v16, %s6144_s21  ;;  %v8211_v35 = vpop.permute.xlu0 %5255  ;;  %v5599_v4 = vpack.i.bf16 %v1476_v48, %v1475_v53  ;;  %v1522_v36 = vld [vmem:[#allocation2 + $0x170] sm:$0xff]  ;;  %v5202_v53 = vunpack.i.l.bf16 %v8139_v23  ;;  %v5133_v23 = vunpack.i.h.bf16 %v8075_v58 }
 0x3d9   : > { %4843 = vmatprep.mubr.msk.bf16.mxu1 %vm3051_vm15, %v2973_v34  ;;  %5550 = vrot.lane.b32.xlu0 %v5549_v26, %s6142_s22  ;;  %v1521_v34 = vld [vmem:[#allocation2 + $0x168] sm:$0xff] }
 0x3da   : > { %v8216_v33 = vpop.permute.xlu1 %5295  ;;  %v1491_v18 = vld [vmem:[#allocation2 + $0x16a] sm:$0xff]  ;;  %v8247_v63 = vpack.i.bf16 %v1522_v36, %v1521_v34  ;;  %v5746_v36 = vld [vmem:[#allocation2 + $0x18] sm:$0xff] }
 0x3dc   : > { %5565 = vrot.lane.b32.xlu1 %v5544_v32, %s6145_s6  ;;  %v8218_v43 = vpop.permute.xlu0 %5260 }
 0x3dd   : > { %5575 = vrot.lane.b32.xlu0 %v5554_v17, %s6147_s0  ;;  %v8232_v17 = vpack.i.bf16 %v1460_v41, %v1459_v10  ;;  %v1492_v10 = vld [vmem:[#allocation2 + $0x172] sm:$0xff] }
 0x3de   : > { %v8222_v56 = vpop.permute.xlu1 %5315  ;;  %v8249_v54 = vpack.i.bf16 %v1492_v10, %v1491_v18  ;;  %v2712_v18 = vsel %vm1364_vm6, %v5746_v36, %v5192_v5  ;;  %v5747_v10 = vld [vmem:[#allocation2 + $0x20] sm:$0xff] }
 0x3df   : > { %v2713_v61 = vsel %vm1364_vm6, %v5747_v10, %v5193_v37  ;;  %v2745_v42 = vsel %vm2742_vm8, %v2712_v18, %v5202_v53  ;;  %v1582_v5 = vld [vmem:[#allocation2 + $0x142] sm:$0xff]  ;;  %v5143_v53 = vunpack.i.h.bf16 %v8098_v20  ;;  %v1551_v10 = vld [vmem:[#allocation2 + $0x151] sm:$0xff] }
 0x3e0   : > { %5570 = vrot.lane.b32.xlu1 %v5549_v26, %s6146_s17  ;;  %v8224_v16 = vpop.permute.xlu0 %5265  ;;  %v2746_v15 = vsel %vm2742_vm8, %v2713_v61, %v5203_v46  ;;  %v2778_v36 = vsel %vm2775_vm9, %v2745_v42, %v5132_v21  ;;  %v5142_v46 = vunpack.i.l.bf16 %v8098_v20  ;;  %v5649_v58 = vpack.i.bf16 %v1582_v5, %v1581_v62 }
 0x3e1   : > { %5580 = vrot.lane.b32.xlu0 %v5544_v32, %s6148_s19  ;;  %v2779_v37 = vsel %vm2775_vm9, %v2746_v15, %v5133_v23  ;;  %v1552_v15 = vld [vmem:[#allocation2 + $0x159] sm:$0xff]  ;;  %v1614_v23 = vld [vmem:[#allocation2 + $0x150] sm:$0xff]  ;;  %v5152_v20 = vunpack.i.l.bf16 %v8111_v55 }
 0x3e2   : > { %v8228_v30 = vpop.permute.xlu1 %5335  ;;  %v2811_v61 = vsel %vm2808_vm10, %v2778_v36, %v5142_v46  ;;  %v2812_v50 = vsel %vm2808_vm10, %v2779_v37, %v5143_v53  ;;  %v5639_v37 = vpack.i.bf16 %v1552_v15, %v1551_v10  ;;  %v5659_v53 = vpack.i.bf16 %v8283_v45, %v1614_v23  ;;  %v5749_v45 = vld [vmem:[#allocation2 + $0x30] sm:$0xff] }
 0x3e3   : > { %v2844_v62 = vsel %vm2841_vm11, %v2811_v61, %v5152_v20  ;;  %v2845_v5 = vsel %vm2841_vm11, %v2812_v50, %v5153_v28  ;;  %v1583_v61 = vld [vmem:[#allocation2 + $0x152] sm:$0xff]  ;;  %v1584_v28 = vld [vmem:[#allocation2 + $0x15a] sm:$0xff]  ;;  %v1556_v20 = vld [vmem:[#allocation2 + $0x189] sm:$0xff] }
 0x3e4   : > { %5590 = vrot.lane.b32.xlu1 %v5589_v13, %s6141_s20  ;;  %v8230_v11 = vpop.permute.xlu0 %5270  ;;  %v5654_v23 = vpack.i.bf16 %v1584_v28, %v1583_v61  ;;  %v5113_v28 = vunpack.i.h.bf16 %v8077_v52 }
 0x3e5   : > { %5585 = vrot.lane.b32.xlu0 %v5549_v26, %s6149_s3 }
 0x3e7   : > { %v8237_v32 = vpop.permute.xlu1 %5340 }
 0x3e8   : > { %5595 = vrot.lane.b32.xlu1 %v8232_v17, %s6141_s20  ;;  %v8239_v27 = vpop.permute.xlu0 %5300  ;;  %s4472_s20 = sshll.u32 %s6728_s16, 4  ;;  %s9407_s20 = int_to_ptr.vmem [resolvable:$true] %s4472_s20 }
 0x3e9   : > { %5610 = vrot.lane.b32.xlu0 %v5609_v51, %s6144_s21  ;;  %s5984_s4 = scalar_lea.vmem %s9407_s20, 4096 }
 0x3ea   : > { %p5985_p4 = scmp.ne.s32.totalorder %s9407_s20, %s5984_s4 }
 0x3ec   : > { %5600 = vrot.lane.b32.xlu1 %v5599_v4, %s6142_s22  ;;  %v8243_v26 = vpop.permute.xlu1 %5345  ;;  %v8245_v41 = vpop.permute.xlu0 %5305  ;;  %p5986_p1 = pnand %p5985_p4, %p9804_p7 }
 0x3ed   : > { %5615 = vrot.lane.b32.xlu0 %v8247_v63, %s6144_s21 }
 0x3ee   : > { %p5987_p13 = pneg %p5986_p1 }
 0x3f0   : > { %5605 = vrot.lane.b32.xlu1 %v8249_v54, %s6142_s22  ;;  %v8259_v48 = vpop.permute.xlu1 %5350  ;;  %v8261_v34 = vpop.permute.xlu0 %5310 }
 0x3f1   : > { %5620 = vrot.lane.b32.xlu0 %v5589_v13, %s6145_s6  ;;  %v5353_v60 = vunpack.i.h.bf16 %v8259_v48 }
 0x3f4   : > { %5625 = vrot.lane.b32.xlu1 %v5609_v51, %s6147_s0  ;;  %v5376_v3 = vpop.permute.xlu1 %5375  ;;  %v8271_v0 = vpop.permute.xlu0 %5320 }
 0x3f5   : > { %5645 = vrot.lane.b32.xlu0 %v5599_v4, %s6146_s17  ;;  %v5378_v21 = vunpack.i.h.bf16 %v5376_v3  ;;  %v5377_v42 = vunpack.i.l.bf16 %v5376_v3 }
 0x3f7   : > { %v2878_v46 = vsel %vm2874_vm12, %v2845_v5, %v5378_v21  ;;  %v2877_v55 = vsel %vm2874_vm12, %v2844_v62, %v5377_v42  ;;  %v1618_v5 = vld [vmem:[#allocation2 + $0x180] sm:$0xff] }
 0x3f8   : > { %5630 = vrot.lane.b32.xlu1 %v5589_v13, %s6148_s19  ;;  %v5381_v51 = vpop.permute.xlu1 %5380  ;;  %v8279_v18 = vpop.permute.xlu0 %5325 }
 0x3f9   : > { %9690 = vst [vmem:[#allocation74_spill] sm:$0xff] %v8279_v18  ;;  %v5383_v13 = vunpack.i.h.bf16 %v5381_v51  ;;  %v5382_v29 = vunpack.i.l.bf16 %v5381_v51  ;;  %5650 = vrot.lane.b32.xlu0 %v5649_v58, %s6146_s17 }
 0x3fb   : > { %v2910_v58 = vsel %vm2907_vm13, %v2877_v55, %v5382_v29  ;;  %v1555_v29 = vld [vmem:[#allocation2 + $0x181] sm:$0xff] }
 0x3fc   : > { %5635 = vrot.lane.b32.xlu1 %v5599_v4, %s6149_s3  ;;  %v8291_v3 = vpop.permute.xlu0 %5330  ;;  %v2911_v4 = vsel %vm2907_vm13, %v2878_v46, %v5383_v13  ;;  %v1588_v46 = vld [vmem:[#allocation2 + $0x18a] sm:$0xff] }
 0x3fd   : > { %9692 = vst [vmem:[#allocation76_spill] sm:$0xff] %v8291_v3  ;;  %5660 = vrot.lane.b32.xlu0 %v5659_v53, %s6147_s0  ;;  %v1587_v53 = vld [vmem:[#allocation2 + $0x182] sm:$0xff] }
 0x3fe   : > { %v5386_v36 = vpop.permute.xlu1 %5385  ;;  %v5679_v61 = vpack.i.bf16 %v1588_v46, %v1587_v53 }
 0x3ff   : > { %v5388_v22 = vunpack.i.h.bf16 %v5386_v36  ;;  %v5387_v51 = vunpack.i.l.bf16 %v5386_v36  ;;  %v1619_v36 = vld [vmem:[#allocation2 + $0x188] sm:$0xff] }
 0x400   : > { %5640 = vrot.lane.b32.xlu1 %v5639_v37, %s6145_s6  ;;  %v5356_v42 = vpop.permute.xlu0 %5355 }
 0x401   : > { %v2943_v50 = vsel %vm2940_vm14, %v2910_v58, %v5387_v51  ;;  %v2944_v10 = vsel %vm2940_vm14, %v2911_v4, %v5388_v22  ;;  %5665 = vrot.lane.b32.xlu0 %v5639_v37, %s6148_s19  ;;  %v5674_v22 = vpack.i.bf16 %v1556_v20, %v1555_v29  ;;  %v5684_v51 = vpack.i.bf16 %v1619_v36, %v1618_v5  ;;  %v1620_v58 = vld [vmem:[#allocation2 + $0x198] sm:$0xff]  ;;  %v1621_v4 = vld [vmem:[#allocation2 + $0x1a0] sm:$0xff] }
 0x402   : > { %v2974_v15 = vpack.c.bf16 %v2944_v10, %v2943_v50  ;;  %v8302_v21 = vpop.permute.xlu1 %5395  ;;  %v5112_v50 = vunpack.i.l.bf16 %v8077_v52  ;;  %v5689_v10 = vpack.i.bf16 %v1621_v4, %v1620_v58  ;;  %v5358_v5 = vunpack.i.h.bf16 %v5356_v42 }
 0x403   : > { %v5357_v36 = vunpack.i.l.bf16 %v5356_v42 }
 0x404   : > { %4844 = vmatmul.mubr.msk.bf16.vlgmr.msra.gmra.mrb[16].mxu1 %vm3051_vm15, %v2974_v15  ;;  %5655 = vrot.lane.b32.xlu1 %v5654_v23, %s6146_s17  ;;  %v8309_v62 = vpop.permute.xlu0 %5360  ;;  %v5123_v15 = vunpack.i.h.bf16 %v8100_v39  ;;  %v2714_v58 = vsel %vm1364_vm6, %v5749_v45, %v5112_v50 }
 0x405   : > { %5670 = vrot.lane.b32.xlu0 %v5654_v23, %s6149_s3  ;;  %v5122_v23 = vunpack.i.l.bf16 %v8100_v39 }
 0x406   : > { %v8307_v13 = vpop.permute.xlu1 %5400 }
 0x407   : > { %v2747_v39 = vsel %vm2742_vm8, %v2714_v58, %v5122_v23  ;;  %v5307_v23 = vunpack.i.l.bf16 %v8245_v41  ;;  %v5197_v58 = vunpack.i.l.bf16 %v8132_v7 }
 0x408   : > { %5675 = vrot.lane.b32.xlu1 %v5674_v22, %s6145_s6  ;;  %v5366_v55 = vpop.permute.xlu0 %5365  ;;  %v2780_v42 = vsel %vm2775_vm9, %v2747_v39, %v5357_v36 }
 0x409   : > { %5685 = vrot.lane.b32.xlu0 %v5684_v51, %s6147_s0  ;;  %v5368_v53 = vunpack.i.h.bf16 %v5366_v55  ;;  %v5367_v46 = vunpack.i.l.bf16 %v5366_v55  ;;  %v5748_v51 = vld [vmem:[#allocation2 + $0x38] sm:$0xff] }
 0x40a   : > { %v8313_v37 = vpop.permute.xlu1 %5405  ;;  %v2715_v52 = vsel %vm1364_vm6, %v5748_v51, %v5113_v28  ;;  %v5303_v28 = vunpack.i.h.bf16 %v8239_v27  ;;  %v5302_v51 = vunpack.i.l.bf16 %v8239_v27 }
 0x40b   : > { %v2748_v4 = vsel %vm2742_vm8, %v2715_v52, %v5123_v15  ;;  %v2813_v45 = vsel %vm2808_vm10, %v2780_v42, %v5367_v46  ;;  %v5313_v46 = vunpack.i.h.bf16 %v8261_v34  ;;  %v5207_v42 = vunpack.i.l.bf16 %v8145_v49 }
 0x40c   : > { %5680 = vrot.lane.b32.xlu1 %v5679_v61, %s6146_s17  ;;  %v8323_v20 = vpop.permute.xlu0 %5370  ;;  %v2781_v55 = vsel %vm2775_vm9, %v2748_v4, %v5358_v5 }
 0x40d   : > { %5695 = vrot.lane.b32.xlu0 %v5674_v22, %s6148_s19  ;;  %v2814_v50 = vsel %vm2808_vm10, %v2781_v55, %v5368_v53 }
 0x40e   : > { %v8321_v29 = vpop.permute.xlu1 %5435 }
 0x40f   : > { %9693 = vst [vmem:[#allocation77_spill] sm:$0xff] %v8321_v29 }
 0x410   : > { %5690 = vrot.lane.b32.xlu1 %v5689_v10, %s6147_s0  ;;  %v5391_v3 = vpop.permute.xlu0 %5390 }
 0x411   : > { %v5393_v22 = vunpack.i.h.bf16 %v5391_v3  ;;  %v5392_v18 = vunpack.i.l.bf16 %v5391_v3  ;;  %5720 = vrot.lane.b32.xlu0 %v8232_v17, %s6145_s6  ;;  %v5308_v3 = vunpack.i.h.bf16 %v8245_v41  ;;  %v5198_v41 = vunpack.i.h.bf16 %v8132_v7  ;;  %v5750_v7 = vld [vmem:[#allocation2 + $0xe0] sm:$0xff]  ;;  %s9803_s6 = sld [smem:[#allocation87_spill]] }
 0x412   : > { %v8331_v29 = vpop.permute.xlu1 %5440 }
 0x413   : > { %v2846_v10 = vsel %vm2841_vm11, %v2813_v45, %v5392_v18  ;;  %v2847_v15 = vsel %vm2841_vm11, %v2814_v50, %v5393_v22  ;;  %v5312_v18 = vunpack.i.l.bf16 %v8261_v34  ;;  %v5208_v34 = vunpack.i.h.bf16 %v8145_v49  ;;  %v1653_v45 = vld [vmem:[#allocation2 + $0x1a1] sm:$0xff]  ;;  %v5751_v50 = vld [vmem:[#allocation2 + $0xd8] sm:$0xff] }
 0x414   : > { %5700 = vrot.lane.b32.xlu1 %v8247_v63, %s6147_s0  ;;  %v2879_v27 = vsel %vm2874_vm12, %v2846_v10, %v5302_v51  ;;  %v2880_v5 = vsel %vm2874_vm12, %v2847_v15, %v5303_v28  ;;  %v8351_v53 = vpop.permute.xlu0 %5410  ;;  %v1652_v51 = vld [vmem:[#allocation2 + $0x199] sm:$0xff]  ;;  %v2728_v10 = vsel %vm1364_vm6, %v5751_v50, %v5197_v58  ;;  %v5118_v15 = vunpack.i.h.bf16 %v8091_v38  ;;  %s4457_s0 = scalar_lea.sflag [#allocation8], %s6594_s5 }
 0x415   : > { %5725 = vrot.lane.b32.xlu0 %v8249_v54, %s6146_s17  ;;  %v2912_v63 = vsel %vm2907_vm13, %v2879_v27, %v5307_v23  ;;  %v2913_v52 = vsel %vm2907_vm13, %v2880_v5, %v5308_v3  ;;  %v5714_v49 = vpack.i.bf16 %v1653_v45, %v1652_v51  ;;  %v5117_v3 = vunpack.i.l.bf16 %v8091_v38 }
 0x416   : > { %v8349_v36 = vpop.permute.xlu1 %5445  ;;  %v2945_v39 = vsel %vm2940_vm14, %v2912_v63, %v5312_v18  ;;  %v2946_v4 = vsel %vm2940_vm14, %v2913_v52, %v5313_v46  ;;  %v2761_v23 = vsel %vm2742_vm8, %v2728_v10, %v5207_v42  ;;  %v1684_v46 = vld [vmem:[#allocation2 + $0x19a] sm:$0xff]  ;;  %v1685_v18 = vld [vmem:[#allocation2 + $0x1a2] sm:$0xff]  ;;  %v5138_v63 = vunpack.i.h.bf16 %v8089_v12  ;;  %v5753_v42 = vld [vmem:[#allocation2 + $0xf0] sm:$0xff] }
 0x417   : > { %v2975_v28 = vpack.c.bf16 %v2946_v4, %v2945_v39  ;;  %v5137_v52 = vunpack.i.l.bf16 %v8089_v12  ;;  %v5734_v39 = vpack.i.bf16 %v1685_v18, %v1684_v46  ;;  %v5752_v4 = vld [vmem:[#allocation2 + $0xf8] sm:$0xff]  ;;  %v5148_v51 = vunpack.i.h.bf16 %v8105_v44 }
 0x418   : > { %5705 = vrot.lane.b32.xlu1 %v8232_v17, %s6148_s19  ;;  %v8369_v22 = vpop.permute.xlu0 %5415  ;;  %v2729_v17 = vsel %vm1364_vm6, %v5750_v7, %v5198_v41  ;;  %v5127_v41 = vunpack.i.l.bf16 %v8107_v8  ;;  %v5147_v12 = vunpack.i.l.bf16 %v8105_v44  ;;  %v5173_v50 = vunpack.i.h.bf16 %v8117_v1 }
 0x419   : > { %4847 = vmatprep.mubr.msk.bf16.mxu1 %vm3051_vm15, %v2975_v28  ;;  %5730 = vrot.lane.b32.xlu0 %v5679_v61, %s6149_s3  ;;  %v2762_v27 = vsel %vm2742_vm8, %v2729_v17, %v5208_v34  ;;  %v2794_v38 = vsel %vm2775_vm9, %v2761_v23, %v5137_v52  ;;  %v2731_v34 = vsel %vm1364_vm6, %v5752_v4, %v5118_v15  ;;  %v5172_v10 = vunpack.i.l.bf16 %v8117_v1  ;;  %v1404_v23 = vld [vmem:[#allocation2 + $0x50] sm:$0xff] }
 0x41a   : > { %v8367_v55 = vpop.permute.xlu1 %5450  ;;  %v2795_v58 = vsel %vm2775_vm9, %v2762_v27, %v5138_v63  ;;  %v2730_v28 = vsel %vm1364_vm6, %v5753_v42, %v5117_v3  ;;  %v5337_v42 = vunpack.i.l.bf16 %v8228_v30  ;;  %v5257_v46 = vunpack.i.l.bf16 %v8211_v35 }
 0x41b   : > { %v8401_v7 = vsel %vm2742_vm8, %v2730_v28, %v5127_v41  ;;  %v2828_v15 = vsel %vm2808_vm10, %v2795_v58, %v5148_v51  ;;  %v5348_v28 = vunpack.i.h.bf16 %v8243_v26  ;;  %v5288_v63 = vunpack.i.h.bf16 %v8197_v14 }
 0x41c   : > { %5710 = vrot.lane.b32.xlu1 %v8249_v54, %s6149_s3  ;;  %v8383_v61 = vpop.permute.xlu0 %5420  ;;  %v5128_v54 = vunpack.i.h.bf16 %v8107_v8 }
 0x41e   : > { %v8381_v5 = vpop.permute.xlu1 %5470  ;;  %v8404_v17 = vsel %vm2742_vm8, %v2731_v34, %v5128_v54  ;;  %v5287_v34 = vunpack.i.l.bf16 %v8197_v14 }
 0x41f   : > { %v4879_v44 = vpop.f32.mrb[16].mxu0 }
 0x420   : > { %5715 = vrot.lane.b32.xlu1 %v5714_v49, %s6148_s19  ;;  %v8398_v8 = vpop.permute.xlu0 %5425  ;;  %v2827_v49 = vsel %vm2808_vm10, %v2794_v38, %v5147_v12  ;;  %v5338_v38 = vunpack.i.h.bf16 %v8228_v30  ;;  %v5258_v12 = vunpack.i.h.bf16 %v8211_v35  ;;  %v3879_v18 = vpop.f32.mrb[17].mxu0  ;;  %s6151_s19 = smov [#allocation20]  }
 0x421   : > { %v8426_v58 = vsel %vm2841_vm11, %v2827_v49, %v5172_v10  ;;  %v5347_v10 = vunpack.i.l.bf16 %v8243_v26  ;;  %v5278_v49 = vunpack.i.h.bf16 %v8172_v19  ;;  %v1403_v26 = vld [vmem:[#allocation2 + $0x48] sm:$0xff] }
 0x422   : > { %v8396_v45 = vpop.permute.xlu1 %5475  ;;  %v2717_v4 = vsel %vm1364_vm6, %v1404_v23, %v5338_v38  ;;  %v2716_v3 = vsel %vm1364_vm6, %v1403_v26, %v5337_v42  ;;  %v4880_v38 = vpop.f32.mrb[18].mxu0  ;;  %v8471_v26 = vsel %vm1364_vm6, %v1405_v24, %v5257_v46  ;;  %v5342_v24 = vunpack.i.l.bf16 %v8237_v32 }
 0x423   : > { %v2749_v23 = vsel %vm2742_vm8, %v2716_v3, %v5347_v10  ;;  %v5298_v3 = vunpack.i.h.bf16 %v8216_v33  ;;  %v3882_v51 = vpop.f32.mrb[19].mxu0  ;;  %v5343_v46 = vunpack.i.h.bf16 %v8237_v32 }
 0x424   : > { %5735 = vrot.lane.b32.xlu1 %v5734_v39, %s6149_s3  ;;  %v8421_v54 = vpop.permute.xlu0 %5430  ;;  %v8429_v39 = vsel %vm2841_vm11, %v2828_v15, %v5173_v50  ;;  %v5277_v50 = vunpack.i.l.bf16 %v8172_v19  ;;  %v8451_v19 = vld [vmem:[#allocation18] ss:$0 sm:$0xff]  ;;  %v2750_v15 = vsel %vm2742_vm8, %v2717_v4, %v5348_v28  ;;  %v8468_v28 = vsel %vm1364_vm6, %v1406_v40, %v5258_v12  ;;  %s5988_s3 = sshll.u32 %s6151_s19, 4  ;;  %s5989_s3 = int_to_ptr.vmem [resolvable:$false] %s5988_s3 }
 0x425   : > { %v3888_v4 = vadd.f32 %v4879_v44, %v8451_v19  ;;  %v3880_v14 = vadd.f32 %v8451_v19, %v3879_v18  ;;  %v2783_v10 = vsel %vm2775_vm9, %v2750_v15, %v5278_v49  ;;  %v3891_v1 = vadd.f32 %v4880_v38, %v8451_v19  ;;  %s5990_s25 = scalar_lea.vmem %s5989_s3, 8192  ;;  %p5991_p9 = scmp.lt.s32.totalorder %s9407_s20, %s5989_s3 }
 0x426   : > { %v8419_v52 = vpop.permute.xlu1 %5480  ;;  %v2782_v35 = vsel %vm2775_vm9, %v2749_v23, %v5277_v50  ;;  %v3883_v44 = vadd.f32 %v8451_v19, %v3882_v51  ;;  %v5297_v18 = vunpack.i.l.bf16 %v8216_v33  ;;  %v5263_v40 = vunpack.i.h.bf16 %v8218_v43  ;;  %p5992_p5 = scmp.lt.s32.totalorder %s5990_s25, %s5984_s4 }
 0x427   : > { %v4006_v41 = vmax.f32 %v3880_v14, 0.0  ;;  %v5262_v12 = vunpack.i.l.bf16 %v8218_v43  ;;  %v5352_v49 = vunpack.i.l.bf16 %v8259_v48  ;;  %v4008_v50 = vmax.f32 %v3888_v4, 0.0  ;;  %v1419_v43 = vld [vmem:[#allocation2 + $0x108] sm:$0xff] }
 0x428   : > { %v8445_v27 = vpop.permute.xlu0 %5455  ;;  %v4007_v23 = vmax.f32 %v3883_v44, 0.0  ;;  %v2815_v51 = vsel %vm2808_vm10, %v2782_v35, %v5287_v34  ;;  %v2816_v33 = vsel %vm2808_vm10, %v2783_v10, %v5288_v63  ;;  %v4009_v6 = vmax.f32 %v3891_v1, 0.0  ;;  %v1420_v44 = vld [vmem:[#allocation2 + $0x110] sm:$0xff]  ;;  %p5993_p11 = por %p5992_p5, %p5991_p9 }
 0x429   : > { %4262 = vrot.lane.b32.xlu0 %v4006_v41, %s6142_s22  ;;  %v5267_v4 = vunpack.i.l.bf16 %v8224_v16  ;;  %v5273_v41 = vunpack.i.h.bf16 %v8230_v11  ;;  %v2732_v34 = vsel %vm1364_vm6, %v1419_v43, %v5342_v24  ;;  %v2733_v63 = vsel %vm1364_vm6, %v1420_v44, %v5343_v46  ;;  %v1421_v24 = vld [vmem:[#allocation2 + $0x120] sm:$0xff]  ;;  %v1422_v43 = vld [vmem:[#allocation2 + $0x128] sm:$0xff] }
 0x42a   : > { %v8443_v30 = vpop.permute.xlu1 %5485  ;;  %4264 = vrot.lane.b32.xlu1 %v4007_v23, %s6142_s22  ;;  %v2848_v48 = vsel %vm2841_vm11, %v2815_v51, %v5297_v18  ;;  %v2849_v35 = vsel %vm2841_vm11, %v2816_v33, %v5298_v3  ;;  %v5272_v46 = vunpack.i.l.bf16 %v8230_v11  ;;  %v2734_v51 = vsel %vm1364_vm6, %v1421_v24, %v5262_v12  ;;  %p5994_p3 = pnand %p5993_p11, %p5987_p13 }
 0x42b   : > { %9694 = vst [vmem:[#allocation78_spill] sm:$0xff] %v8443_v30  ;;  %v5268_v30 = vunpack.i.h.bf16 %v8224_v16  ;;  %v9695_v11 = vunpack.i.l.bf16 %v8180_v9  ;;  %v9696_v12 = vunpack.i.h.bf16 %v8180_v9  ;;  %v5322_v9 = vunpack.i.l.bf16 %v8271_v0 }
 0x42c   : > { %v8463_v42 = vpop.permute.xlu0 %5460 }
 0x42d   : > { %4266 = vrot.lane.b32.xlu0 %v4008_v50, %s6142_s22  ;;  %v2735_v50 = vsel %vm1364_vm6, %v1422_v43, %v5263_v40  ;;  %v5317_v40 = vunpack.i.l.bf16 %v8222_v56 }
 0x42e   : > { %v5506_v57 = vpop.permute.xlu1 %5505  ;;  %4268 = vrot.lane.b32.xlu1 %v4009_v6, %s6142_s22 }
 0x42f   : > { %v5508_v38 = vunpack.i.h.bf16 %v5506_v57  ;;  %v5507_v14 = vunpack.i.l.bf16 %v5506_v57  ;;  %v2765_v57 = vsel %vm2742_vm8, %v2732_v34, %v5352_v49  ;;  %v2766_v49 = vsel %vm2742_vm8, %v2733_v63, %v5353_v60 }
 0x430   : > { %v8484_v31 = vpop.permute.xlu0 %5465  ;;  %v2798_v60 = vsel %vm2775_vm9, %v2765_v57, %v9695_v11  ;;  %v2799_v34 = vsel %vm2775_vm9, %v2766_v49, %v9696_v12  ;;  %v5397_v63 = vunpack.i.l.bf16 %v8302_v21  ;;  %v2752_v57 = vsel %vm2742_vm8, %v8468_v28, %v5268_v30 }
 0x431   : > { %v2882_v16 = vsel %vm2874_vm12, %v2849_v35, %v5508_v38  ;;  %v8535_v35 = vsel %vm2742_vm8, %v2735_v50, %v5273_v41  ;;  %v5458_v12 = vunpack.i.h.bf16 %v8445_v27 }
 0x432   : > { %v5511_v15 = vpop.permute.xlu1 %5510  ;;  %v2893_v49 = vsel %vm2874_vm12, %v8426_v58, %v5397_v63  ;;  %v5407_v58 = vunpack.i.l.bf16 %v8313_v37 }
 0x433   : > { %v5513_v2 = vunpack.i.h.bf16 %v5511_v15  ;;  %v5512_v32 = vunpack.i.l.bf16 %v5511_v15  ;;  %v2881_v15 = vsel %vm2874_vm12, %v2848_v48, %v5507_v14  ;;  %v5318_v14 = vunpack.i.h.bf16 %v8222_v56 }
 0x434   : > { %v8499_v10 = vpop.permute.xlu0 %5490  ;;  %v8532_v48 = vsel %vm2742_vm8, %v2734_v51, %v5272_v46 }
 0x435   : > { %v2914_v18 = vsel %vm2907_vm13, %v2881_v15, %v5512_v32  ;;  %v2915_v3 = vsel %vm2907_vm13, %v2882_v16, %v5513_v2  ;;  %v5398_v32 = vunpack.i.h.bf16 %v8302_v21  ;;  %v5402_v21 = vunpack.i.l.bf16 %v8307_v13 }
 0x436   : > { %v5516_v1 = vpop.permute.xlu1 %5515  ;;  %v9697_v16 = vunpack.i.l.bf16 %v8209_v59  ;;  %v5492_v15 = vunpack.i.l.bf16 %v8499_v10 }
 0x437   : > { %v5518_v23 = vunpack.i.h.bf16 %v5516_v1  ;;  %v5517_v25 = vunpack.i.l.bf16 %v5516_v1  ;;  %v5323_v1 = vunpack.i.h.bf16 %v8271_v0  ;;  %v2894_v41 = vsel %vm2874_vm12, %v8429_v39, %v5398_v32 }
 0x438   : > { %v8520_v2 = vpop.permute.xlu0 %5495  ;;  %v8545_v30 = vsel %vm2808_vm10, %v2798_v60, %v9697_v16  ;;  %v2926_v60 = vsel %vm2907_vm13, %v2893_v49, %v5402_v21  ;;  %v5463_v49 = vunpack.i.h.bf16 %v8463_v42  ;;  %v5448_v0 = vunpack.i.h.bf16 %v8349_v36 }
 0x439   : > { %v2947_v33 = vsel %vm2940_vm14, %v2914_v18, %v5517_v25  ;;  %v2948_v38 = vsel %vm2940_vm14, %v2915_v3, %v5518_v23  ;;  %v2751_v25 = vsel %vm2742_vm8, %v8471_v26, %v5267_v4  ;;  %v4883_v26 = vpop.f32.mrb[20].mxu0  ;;  %v5403_v4 = vunpack.i.h.bf16 %v8307_v13 }
 0x43a   : > { %v8518_v44 = vpop.permute.xlu1 %5525  ;;  %v2976_v6 = vpack.c.bf16 %v2948_v38, %v2947_v33  ;;  %v3895_v28 = vpop.f32.mrb[21].mxu0  ;;  %v9698_v23 = vunpack.i.h.bf16 %v8209_v59  ;;  %v5363_v18 = vunpack.i.h.bf16 %v8309_v62  ;;  %v5493_v3 = vunpack.i.h.bf16 %v8499_v10 }
 0x43b   : > { %v3896_v13 = vadd.f32 %v8451_v19, %v3895_v28  ;;  %v3904_v39 = vadd.f32 %v4883_v26, %v8451_v19  ;;  %v4884_v50 = vpop.f32.mrb[22].mxu0  ;;  %v5362_v59 = vunpack.i.l.bf16 %v8309_v62  ;;  %v2927_v32 = vsel %vm2907_vm13, %v2894_v41, %v5403_v4  ;;  %v9699_v62 = vld [vmem:[#allocation74_spill] sm:$0xff] }
 0x43c   : > { %4848 = vmatmul.mubr.msk.bf16.gmra.mrb[20].mxu1 %vm3051_vm15, %v2976_v6  ;;  %v8553_v24 = vsel %vm2808_vm10, %v2799_v34, %v9698_v23  ;;  %v5501_v46 = vpop.permute.xlu0 %5500  ;;  %v3898_v11 = vpop.f32.mrb[23].mxu0  ;;  %v5408_v6 = vunpack.i.h.bf16 %v8313_v37  ;;  %v2784_v10 = vsel %vm2775_vm9, %v2751_v25, %v5492_v15  ;;  %v3907_v26 = vadd.f32 %v4884_v50, %v8451_v19 }
 0x43d   : > { %v5503_v51 = vunpack.i.h.bf16 %v5501_v46  ;;  %v5502_v33 = vunpack.i.l.bf16 %v5501_v46  ;;  %v4010_v38 = vmax.f32 %v3896_v13, 0.0  ;;  %v3899_v16 = vadd.f32 %v8451_v19, %v3898_v11 }
 0x43e   : > { %v8555_v43 = vpop.permute.xlu1 %5530  ;;  %v2785_v21 = vsel %vm2775_vm9, %v2752_v57, %v5493_v3  ;;  %v4012_v41 = vmax.f32 %v3904_v39, 0.0  ;;  %v5457_v37 = vunpack.i.l.bf16 %v8445_v27  ;;  %v4887_v46 = vpop.f32.mrb[24].mxu0  ;;  %v5373_v13 = vunpack.i.h.bf16 %v8323_v20 }
 0x43f   : > { %4270 = vrot.lane.b32.xlu0 %v4010_v38, %s6142_s22  ;;  %v2817_v23 = vsel %vm2808_vm10, %v2784_v10, %v5502_v33  ;;  %v2818_v25 = vsel %vm2808_vm10, %v2785_v21, %v5503_v51  ;;  %v4011_v15 = vmax.f32 %v3899_v16, 0.0  ;;  %v3911_v57 = vpop.f32.mrb[25].mxu0  ;;  %v5462_v3 = vunpack.i.l.bf16 %v8463_v42 }
 0x440   : > { %v5521_v63 = vpop.permute.xlu0 %5520  ;;  %v4013_v11 = vmax.f32 %v3907_v26, 0.0  ;;  %v5372_v10 = vunpack.i.l.bf16 %v8323_v20  ;;  %v5468_v16 = vunpack.i.h.bf16 %v8484_v31  ;;  %v5467_v21 = vunpack.i.l.bf16 %v8484_v31  ;;  %v4888_v42 = vpop.f32.mrb[26].mxu0 }
 0x441   : > { %v5523_v4 = vunpack.i.h.bf16 %v5521_v63  ;;  %v5522_v28 = vunpack.i.l.bf16 %v5521_v63  ;;  %4272 = vrot.lane.b32.xlu1 %v4011_v15, %s6142_s22  ;;  %v5412_v63 = vunpack.i.l.bf16 %v8351_v53  ;;  %v3912_v26 = vadd.f32 %v8451_v19, %v3911_v57 }
 0x442   : > { %v8570_v34 = vpop.permute.xlu1 %5535  ;;  %v2796_v20 = vsel %vm2775_vm9, %v8401_v7, %v5362_v59  ;;  %v8617_v7 = vsel %vm2940_vm14, %v2926_v60, %v5407_v58  ;;  %v8620_v59 = vsel %vm2940_vm14, %v2927_v32, %v5408_v6  ;;  %v8633_v60 = vsel %vm2841_vm11, %v8545_v30, %v5317_v40  ;;  %v9701_v30 = vld [vmem:[#allocation77_spill] sm:$0xff] }
 0x443   : > { %v2850_v50 = vsel %vm2841_vm11, %v2817_v23, %v5522_v28  ;;  %v2851_v38 = vsel %vm2841_vm11, %v2818_v25, %v5523_v4  ;;  %4274 = vrot.lane.b32.xlu0 %v4012_v41, %s6142_s22  ;;  %v3920_v28 = vadd.f32 %v4887_v46, %v8451_v19  ;;  %v5413_v23 = vunpack.i.h.bf16 %v8351_v53 }
 0x444   : > { %v2883_v39 = vsel %vm2874_vm12, %v2850_v50, %v5457_v37  ;;  %v2884_v27 = vsel %vm2874_vm12, %v2851_v38, %v5458_v12  ;;  %v8588_v51 = vpop.permute.xlu0 %5540  ;;  %v3914_v37 = vpop.f32.mrb[27].mxu0  ;;  %v3923_v46 = vadd.f32 %v4888_v42, %v8451_v19  ;;  %v2797_v53 = vsel %vm2775_vm9, %v8404_v17, %v5363_v18 }
 0x445   : > { %v2916_v12 = vsel %vm2907_vm13, %v2883_v39, %v5462_v3  ;;  %v2917_v4 = vsel %vm2907_vm13, %v2884_v27, %v5463_v49  ;;  %v4014_v49 = vmax.f32 %v3912_v26, 0.0  ;;  %v3915_v38 = vadd.f32 %v8451_v19, %v3914_v37  ;;  %4276 = vrot.lane.b32.xlu1 %v4013_v11, %s6142_s22 }
 0x446   : > { %v8586_v33 = vpop.permute.xlu1 %5555  ;;  %v2949_v25 = vsel %vm2940_vm14, %v2916_v12, %v5467_v21  ;;  %v2950_v31 = vsel %vm2940_vm14, %v2917_v4, %v5468_v16  ;;  %v2829_v57 = vsel %vm2808_vm10, %v2796_v20, %v5372_v10  ;;  %v2830_v3 = vsel %vm2808_vm10, %v2797_v53, %v5373_v13  ;;  %v9700_v13 = vld [vmem:[#allocation76_spill] sm:$0xff]  ;;  %v9702_v53 = vld [vmem:[#allocation75_spill] sm:$0xff] }
 0x447   : > { %v2977_v50 = vpack.c.bf16 %v2950_v31, %v2949_v25  ;;  %v2862_v39 = vsel %vm2841_vm11, %v2829_v57, %v5412_v63  ;;  %v4016_v27 = vmax.f32 %v3920_v28, 0.0  ;;  %v4015_v11 = vmax.f32 %v3915_v38, 0.0  ;;  %4278 = vrot.lane.b32.xlu0 %v4014_v49, %s6142_s22  ;;  %v1410_v57 = vld [vmem:[#allocation2 + $0x98] sm:$0xff] }
 0x448   : > { %v8607_v41 = vpop.permute.xlu0 %5545  ;;  %v5328_v17 = vunpack.i.h.bf16 %v9699_v62  ;;  %v2863_v18 = vsel %vm2841_vm11, %v2830_v3, %v5413_v23  ;;  %v8639_v32 = vsel %vm2841_vm11, %v8553_v24, %v5318_v14  ;;  %v5327_v58 = vunpack.i.l.bf16 %v9699_v62  ;;  %v1409_v62 = vld [vmem:[#allocation2 + $0x90] sm:$0xff] }
 0x449   : > { %4851 = vmatprep.mubr.msk.bf16.mxu1 %vm3051_vm15, %v2977_v50  ;;  %v5333_v10 = vunpack.i.h.bf16 %v9700_v13  ;;  %v5332_v63 = vunpack.i.l.bf16 %v9700_v13  ;;  %v4017_v21 = vmax.f32 %v3923_v46, 0.0  ;;  %4280 = vrot.lane.b32.xlu1 %v4015_v11, %s6142_s22  ;;  %v5438_v42 = vunpack.i.h.bf16 %v9701_v30 }
 0x44a   : > { %v8605_v15 = vpop.permute.xlu1 %5560  ;;  %v2895_v56 = vsel %vm2874_vm12, %v2862_v39, %v5322_v9  ;;  %v5437_v28 = vunpack.i.l.bf16 %v9701_v30  ;;  %v2896_v26 = vsel %vm2874_vm12, %v2863_v18, %v5323_v1  ;;  %v5418_v37 = vunpack.i.h.bf16 %v8369_v22 }
 0x44b   : > { %v4891_v6 = vpop.f32.mrb[28].mxu0  ;;  %4282 = vrot.lane.b32.xlu0 %v4016_v27, %s6142_s22  ;;  %v5417_v25 = vunpack.i.l.bf16 %v8369_v22  ;;  %v5447_v1 = vunpack.i.l.bf16 %v8349_v36  ;;  %v2928_v38 = vsel %vm2907_vm13, %v2895_v56, %v5327_v58  ;;  %v5472_v22 = vunpack.i.l.bf16 %v8381_v5  ;;  %v1407_v56 = vld [vmem:[#allocation2 + $0x78] sm:$0xff] }
 0x44c   : > { %v8644_v16 = vpop.permute.xlu0 %5550  ;;  %v3927_v40 = vpop.f32.mrb[29].mxu0  ;;  %v3936_v20 = vadd.f32 %v4891_v6, %v8451_v19  ;;  %v2929_v39 = vsel %vm2907_vm13, %v2896_v26, %v5328_v17  ;;  %v5452_v11 = vunpack.i.l.bf16 %v8367_v55  ;;  %v8681_v18 = vsel %vm1364_vm6, %v1410_v57, %v5418_v37 }
 0x44d   : > { %v3928_v12 = vadd.f32 %v8451_v19, %v3927_v40  ;;  %v4892_v4 = vpop.f32.mrb[30].mxu0  ;;  %4284 = vrot.lane.b32.xlu1 %v4017_v21, %s6142_s22  ;;  %v5473_v6 = vunpack.i.h.bf16 %v8381_v5  ;;  %v2722_v13 = vsel %vm1364_vm6, %v1409_v62, %v5417_v25  ;;  %v5482_v21 = vunpack.i.l.bf16 %v8419_v52 }
 0x44e   : > { %v8651_v14 = vpop.permute.xlu1 %5565  ;;  %v3930_v9 = vpop.f32.mrb[31].mxu0  ;;  %v3939_v27 = vadd.f32 %v4892_v4, %v8451_v19  ;;  %v4020_v58 = vmax.f32 %v3936_v20, 0.0  ;;  %v8688_v40 = vsel %vm2940_vm14, %v2928_v38, %v5332_v63  ;;  %v5547_v26 = vunpack.i.l.bf16 %v8607_v41 }
 0x44f   : > { %v4018_v31 = vmax.f32 %v3928_v12, 0.0  ;;  %v3931_v50 = vadd.f32 %v8451_v19, %v3930_v9  ;;  %v5423_v12 = vunpack.i.h.bf16 %v8383_v61  ;;  %v8696_v5 = vsel %vm2940_vm14, %v2929_v39, %v5333_v10  ;;  %v1408_v9 = vld [vmem:[#allocation2 + $0x80] sm:$0xff] }
 0x450   : > { %v8669_v46 = vpop.permute.xlu0 %5575  ;;  %v2720_v25 = vsel %vm1364_vm6, %v1407_v56, %v5472_v22  ;;  %v5483_v63 = vunpack.i.h.bf16 %v8419_v52  ;;  %v4021_v38 = vmax.f32 %v3939_v27, 0.0  ;;  %v2721_v62 = vsel %vm1364_vm6, %v1408_v9, %v5473_v6  ;;  %v1413_v22 = vld [vmem:[#allocation2 + $0xc0] sm:$0xff] }
 0x451   : > { %4286 = vrot.lane.b32.xlu0 %v4018_v31, %s6142_s22  ;;  %v4019_v17 = vmax.f32 %v3931_v50, 0.0  ;;  %v5552_v31 = vunpack.i.l.bf16 %v8644_v16  ;;  %v5478_v24 = vunpack.i.h.bf16 %v8396_v45  ;;  %v5477_v10 = vunpack.i.l.bf16 %v8396_v45 }
 0x452   : > { %v8675_v3 = vpop.permute.xlu1 %5570  ;;  %v5548_v39 = vunpack.i.h.bf16 %v8607_v41  ;;  %v2753_v52 = vsel %vm2742_vm8, %v2720_v25, %v5482_v21  ;;  %v5553_v56 = vunpack.i.h.bf16 %v8644_v16  ;;  %v5428_v6 = vunpack.i.h.bf16 %v8398_v8  ;;  %v1414_v25 = vld [vmem:[#allocation2 + $0xc8] sm:$0xff] }
 0x453   : > { %4288 = vrot.lane.b32.xlu1 %v4019_v17, %s6142_s22  ;;  %v5427_v9 = vunpack.i.l.bf16 %v8398_v8  ;;  %v2726_v45 = vsel %vm1364_vm6, %v1413_v22, %v5547_v26  ;;  %v2754_v21 = vsel %vm2742_vm8, %v2721_v62, %v5483_v63  ;;  %v8725_v8 = vsel %vm1364_vm6, %v9702_v53, %v5423_v12  ;;  %v1423_v62 = vld [vmem:[#allocation2 + $0x138] sm:$0xff] }
 0x454   : > { %v8693_v37 = vpop.permute.xlu0 %5580  ;;  %v4895_v20 = vpop.f32.mrb[32].mxu0  ;;  %v2759_v16 = vsel %vm2742_vm8, %v2726_v45, %v5552_v31  ;;  %v2727_v26 = vsel %vm1364_vm6, %v1414_v25, %v5548_v39  ;;  %v1424_v31 = vld [vmem:[#allocation2 + $0x140] sm:$0xff]  ;;  %v9703_v12 = vunpack.i.l.bf16 %v8157_v47  ;;  %v9704_v30 = vunpack.i.h.bf16 %v8157_v47 }
 0x455   : > { %v3943_v57 = vpop.f32.mrb[33].mxu0  ;;  %4290 = vrot.lane.b32.xlu0 %v4020_v58, %s6142_s22  ;;  %v3952_v27 = vadd.f32 %v4895_v20, %v8451_v19  ;;  %v2760_v22 = vsel %vm2742_vm8, %v2727_v26, %v5553_v56  ;;  %v8737_v53 = vsel %vm1364_vm6, %v1424_v31, %v5478_v24  ;;  %v2756_v56 = vsel %vm2742_vm8, %v8681_v18, %v5428_v6  ;;  %v1411_v24 = vld [vmem:[#allocation2 + $0xa8] sm:$0xff] }
 0x456   : > { %v5591_v50 = vpop.permute.xlu1 %5590  ;;  %v4896_v23 = vpop.f32.mrb[34].mxu0  ;;  %v3944_v17 = vadd.f32 %v8451_v19, %v3943_v57  ;;  %v2792_v39 = vsel %vm2775_vm9, %v2759_v16, %v9703_v12  ;;  %v5558_v26 = vunpack.i.h.bf16 %v8586_v33  ;;  %v9709_v12 = vld [vmem:[#allocation73_spill] sm:$0xff] }
 0x457   : > { %v3946_v49 = vpop.f32.mrb[35].mxu0  ;;  %v3955_v57 = vadd.f32 %v4896_v23, %v8451_v19  ;;  %4292 = vrot.lane.b32.xlu1 %v4021_v38, %s6142_s22  ;;  %v5592_v45 = vunpack.i.l.bf16 %v5591_v50  ;;  %v4024_v23 = vmax.f32 %v3952_v27, 0.0  ;;  %v8734_v38 = vsel %vm1364_vm6, %v1423_v62, %v5477_v10 }
 0x458   : > { %v8714_v41 = vpop.permute.xlu0 %5585  ;;  %v3947_v58 = vadd.f32 %v8451_v19, %v3946_v49  ;;  %v4022_v20 = vmax.f32 %v3944_v17, 0.0  ;;  %v2786_v49 = vsel %vm2775_vm9, %v2753_v52, %v5437_v28  ;;  %v5593_v17 = vunpack.i.h.bf16 %v5591_v50 }
 0x459   : > { %v2787_v28 = vsel %vm2775_vm9, %v2754_v21, %v5438_v42  ;;  %v2755_v50 = vsel %vm2742_vm8, %v2722_v13, %v5427_v9  ;;  %v2793_v42 = vsel %vm2775_vm9, %v2760_v22, %v9704_v30  ;;  %v1412_v21 = vld [vmem:[#allocation2 + $0xb0] sm:$0xff]  ;;  %v2819_v13 = vsel %vm2808_vm10, %v2786_v49, %v5447_v1  ;;  %v9707_v22 = vld [vmem:[#allocation78_spill] sm:$0xff] }
 0x45a   : > { %v8719_v4 = vpop.permute.xlu1 %5595  ;;  %v4023_v63 = vmax.f32 %v3947_v58, 0.0  ;;  %4294 = vrot.lane.b32.xlu0 %v4022_v20, %s6142_s22  ;;  %v4025_v58 = vmax.f32 %v3955_v57, 0.0  ;;  %v9705_v9 = vld [vmem:[#allocation72_spill] sm:$0xff]  ;;  %v2724_v20 = vsel %vm1364_vm6, %v1411_v24, %v5592_v45  ;;  %v2725_v57 = vsel %vm1364_vm6, %v1412_v21, %v5593_v17 }
 0x45b   : > { %v9706_v18 = vunpack.i.l.bf16 %v9705_v9  ;;  %v2820_v47 = vsel %vm2808_vm10, %v2787_v28, %v5448_v0  ;;  %v9708_v36 = vunpack.i.h.bf16 %v9705_v9  ;;  %v9711_v21 = vunpack.i.h.bf16 %v8367_v55 }
 0x45c   : > { %v5611_v52 = vpop.permute.xlu0 %5610  ;;  %4296 = vrot.lane.b32.xlu1 %v4023_v63, %s6142_s22  ;;  %v5557_v63 = vunpack.i.l.bf16 %v8586_v33  ;;  %v2852_v33 = vsel %vm2841_vm11, %v2819_v13, %v5452_v11  ;;  %v5567_v11 = vunpack.i.l.bf16 %v8651_v14  ;;  %v5577_v55 = vunpack.i.l.bf16 %v8669_v46 }
 0x45d   : > { %v2825_v6 = vsel %vm2808_vm10, %v2792_v39, %v9706_v18  ;;  %v2826_v0 = vsel %vm2808_vm10, %v2793_v42, %v9708_v36  ;;  %v9710_v39 = vunpack.i.l.bf16 %v9709_v12  ;;  %v2853_v42 = vsel %vm2841_vm11, %v2820_v47, %v9711_v21 }
 0x45e   : > { %v5601_v27 = vpop.permute.xlu1 %5600  ;;  %4298 = vrot.lane.b32.xlu0 %v4024_v23, %s6142_s22  ;;  %v5613_v13 = vunpack.i.h.bf16 %v5611_v52  ;;  %v5612_v9 = vunpack.i.l.bf16 %v5611_v52  ;;  %v9712_v18 = vunpack.i.h.bf16 %v9709_v12  ;;  %v5582_v12 = vunpack.i.l.bf16 %v8693_v37 }
 0x45f   : > { %v5603_v25 = vunpack.i.h.bf16 %v5601_v27  ;;  %v5602_v16 = vunpack.i.l.bf16 %v5601_v27  ;;  %v2858_v27 = vsel %vm2841_vm11, %v2825_v6, %v9710_v39 }
 0x460   : > { %v8769_v62 = vpop.permute.xlu0 %5615  ;;  %4300 = vrot.lane.b32.xlu1 %v4025_v58, %s6142_s22  ;;  %v8795_v6 = vsel %vm2841_vm11, %v2826_v0, %v9712_v18  ;;  %v5583_v0 = vunpack.i.h.bf16 %v8693_v37 }
 0x461   : > { %v2758_v1 = vsel %vm2742_vm8, %v2725_v57, %v5603_v25  ;;  %v2757_v49 = vsel %vm2742_vm8, %v2724_v20, %v5602_v16  ;;  %v5568_v16 = vunpack.i.h.bf16 %v8651_v14  ;;  %v5573_v20 = vunpack.i.h.bf16 %v8675_v3 }
 0x462   : > { %v4899_v31 = vpop.f32.mrb[36].mxu0  ;;  %v8776_v23 = vpop.permute.xlu1 %5605  ;;  %v2791_v30 = vsel %vm2775_vm9, %v2758_v1, %v5558_v26  ;;  %v2790_v24 = vsel %vm2775_vm9, %v2757_v49, %v5557_v63  ;;  %v5578_v57 = vunpack.i.h.bf16 %v8669_v46  ;;  %v5572_v26 = vunpack.i.l.bf16 %v8675_v3  ;;  %v9713_v1 = vld [vmem:[#allocation66_spill] sm:$0xff] }
 0x463   : > { %v3959_v28 = vpop.f32.mrb[37].mxu0  ;;  %v2824_v63 = vsel %vm2808_vm10, %v2791_v30, %v5568_v16  ;;  %v2823_v14 = vsel %vm2808_vm10, %v2790_v24, %v5567_v11  ;;  %v9714_v49 = vunpack.i.l.bf16 %v9713_v1  ;;  %v5588_v46 = vunpack.i.h.bf16 %v8714_v41 }
 0x464   : > { %v4900_v25 = vpop.f32.mrb[38].mxu0  ;;  %v5621_v47 = vpop.permute.xlu0 %5620  ;;  %v5587_v3 = vunpack.i.l.bf16 %v8714_v41  ;;  %v2788_v30 = vsel %vm2775_vm9, %v2755_v50, %v5612_v9  ;;  %v2789_v24 = vsel %vm2775_vm9, %v2756_v56, %v5613_v13  ;;  %v2857_v16 = vsel %vm2841_vm11, %v2824_v63, %v5573_v20 }
 0x465   : > { %v3962_v58 = vpop.f32.mrb[39].mxu0  ;;  %v8806_v36 = vsel %vm2874_vm12, %v2858_v27, %v9714_v49  ;;  %v5623_v39 = vunpack.i.h.bf16 %v5621_v47  ;;  %v5622_v21 = vunpack.i.l.bf16 %v5621_v47  ;;  %v2856_v11 = vsel %vm2841_vm11, %v2823_v14, %v5572_v26 }
 0x466   : > { %v5626_v52 = vpop.permute.xlu1 %5625  ;;  %v3968_v47 = vadd.f32 %v4899_v31, %v8451_v19  ;;  %v3960_v17 = vadd.f32 %v8451_v19, %v3959_v28  ;;  %v3963_v14 = vadd.f32 %v8451_v19, %v3962_v58 }
 0x467   : > { %v5628_v27 = vunpack.i.h.bf16 %v5626_v52  ;;  %v5627_v18 = vunpack.i.l.bf16 %v5626_v52  ;;  %v2821_v41 = vsel %vm2808_vm10, %v2788_v30, %v5622_v21  ;;  %v2822_v50 = vsel %vm2808_vm10, %v2789_v24, %v5623_v39  ;;  %v9715_v39 = vld [vmem:[#allocation69_spill] sm:$0xff] }
 0x468   : > { %v5646_v49 = vpop.permute.xlu0 %5645  ;;  %v4026_v63 = vmax.f32 %v3960_v17, 0.0  ;;  %v9716_v30 = vunpack.i.l.bf16 %v9715_v39  ;;  %v4028_v58 = vmax.f32 %v3968_v47, 0.0 }
 0x469   : > { %v5648_v45 = vunpack.i.h.bf16 %v5646_v49  ;;  %v5647_v37 = vunpack.i.l.bf16 %v5646_v49  ;;  %v2885_v49 = vsel %vm2874_vm12, %v2852_v33, %v5627_v18 }
 0x46a   : > { %v5631_v10 = vpop.permute.xlu1 %5630  ;;  %4302 = vrot.lane.b32.xlu0 %v4026_v63, %s6142_s22  ;;  %v9717_v63 = vunpack.i.h.bf16 %v9715_v39 }
 0x46b   : > { %v5633_v9 = vunpack.i.h.bf16 %v5631_v10  ;;  %v5632_v56 = vunpack.i.l.bf16 %v5631_v10  ;;  %v2854_v20 = vsel %vm2841_vm11, %v2821_v41, %v5647_v37  ;;  %v2855_v26 = vsel %vm2841_vm11, %v2822_v50, %v5648_v45 }
 0x46c   : > { %v4903_v13 = vpop.f32.mrb[40].mxu0  ;;  %v2887_v31 = vsel %vm2874_vm12, %v2854_v20, %v5577_v55  ;;  %v2888_v28 = vsel %vm2874_vm12, %v2855_v26, %v5578_v57  ;;  %v8826_v21 = vpop.permute.xlu0 %5650  ;;  %v2889_v10 = vsel %vm2874_vm12, %v2856_v11, %v9716_v30  ;;  %v3971_v41 = vadd.f32 %v4900_v25, %v8451_v19  ;;  %v9721_v30 = vld [vmem:[#allocation70_spill] sm:$0xff] }
 0x46d   : > { %v3975_v52 = vpop.f32.mrb[41].mxu0  ;;  %v2920_v45 = vsel %vm2907_vm13, %v2887_v31, %v5582_v12  ;;  %v2921_v17 = vsel %vm2907_vm13, %v2888_v28, %v5583_v0  ;;  %v2886_v57 = vsel %vm2874_vm12, %v2853_v42, %v5628_v27  ;;  %v2918_v55 = vsel %vm2907_vm13, %v2885_v49, %v5632_v56 }
 0x46e   : > { %v4904_v24 = vpop.f32.mrb[42].mxu0  ;;  %v5636_v37 = vpop.permute.xlu1 %5635  ;;  %v2919_v11 = vsel %vm2907_vm13, %v2886_v57, %v5633_v9  ;;  %v2953_v20 = vsel %vm2940_vm14, %v2920_v45, %v5587_v3  ;;  %v2954_v12 = vsel %vm2940_vm14, %v2921_v17, %v5588_v46  ;;  %v4027_v26 = vmax.f32 %v3963_v14, 0.0  ;;  %4306 = vrot.lane.b32.xlu0 %v4028_v58, %s6142_s22 }
 0x46f   : > { %v3978_v33 = vpop.f32.mrb[43].mxu0  ;;  %v5638_v18 = vunpack.i.h.bf16 %v5636_v37  ;;  %v5637_v50 = vunpack.i.l.bf16 %v5636_v37  ;;  %v2890_v42 = vsel %vm2874_vm12, %v2857_v16, %v9717_v63  ;;  %v3976_v27 = vadd.f32 %v8451_v19, %v3975_v52 }
 0x470   : > { %v8842_v47 = vpop.permute.xlu0 %5660  ;;  %v9718_v3 = vunpack.i.h.bf16 %v9713_v1  ;;  %v4029_v9 = vmax.f32 %v3971_v41, 0.0  ;;  %v3984_v14 = vadd.f32 %v4903_v13, %v8451_v19  ;;  %4304 = vrot.lane.b32.xlu1 %v4027_v26, %s6142_s22  ;;  %v5432_v31 = vunpack.i.l.bf16 %v8421_v54 }
 0x471   : > { %v2951_v0 = vsel %vm2940_vm14, %v2918_v55, %v5637_v50  ;;  %v2952_v25 = vsel %vm2940_vm14, %v2919_v11, %v5638_v18  ;;  %v9719_v16 = vunpack.i.l.bf16 %v9707_v22  ;;  %v2979_v28 = vpack.c.bf16 %v2954_v12, %v2953_v20  ;;  %v9724_v55 = vld [vmem:[#allocation67_spill] sm:$0xff] }
 0x472   : > { %v2978_v56 = vpack.c.bf16 %v2952_v25, %v2951_v0  ;;  %v8848_v49 = vpop.permute.xlu1 %5640  ;;  %v2892_v46 = vsel %vm2874_vm12, %v8795_v6, %v9718_v3  ;;  %v4030_v39 = vmax.f32 %v3976_v27, 0.0  ;;  %v9720_v6 = vunpack.i.h.bf16 %v9707_v22 }
 0x473   : > { %v2769_v52 = vsel %vm2742_vm8, %v8734_v38, %v9719_v16  ;;  %v9722_v37 = vunpack.i.l.bf16 %v9721_v30  ;;  %v9723_v17 = vunpack.i.h.bf16 %v9721_v30  ;;  %v3979_v38 = vadd.f32 %v8451_v19, %v3978_v33 }
 0x474   : > { %v2770_v13 = vsel %vm2742_vm8, %v8737_v53, %v9720_v6  ;;  %4852 = vmatmul.mubr.msk.bf16.gmra.mrb[24].mxu1 %vm3051_vm15, %v2978_v56  ;;  %v5528_v57 = vunpack.i.h.bf16 %v8518_v44  ;;  %v5527_v22 = vunpack.i.l.bf16 %v8518_v44  ;;  %v8879_v53 = vpop.permute.xlu0 %5665  ;;  %v9725_v18 = vunpack.i.l.bf16 %v9724_v55  ;;  %4308 = vrot.lane.b32.xlu1 %v4029_v9, %s6142_s22 }
 0x475   : > { %v2922_v45 = vsel %vm2907_vm13, %v2889_v10, %v9722_v37  ;;  %v2923_v58 = vsel %vm2907_vm13, %v2890_v42, %v9723_v17  ;;  %4855 = vmatprep.mubr.msk.bf16.mxu1 %vm3051_vm15, %v2979_v28  ;;  %v9726_v50 = vunpack.i.h.bf16 %v9724_v55  ;;  %v4032_v12 = vmax.f32 %v3984_v14, 0.0  ;;  %4310 = vrot.lane.b32.xlu0 %v4030_v39, %s6142_s22  ;;  %v9727_v42 = vld [vmem:[#allocation71_spill] sm:$0xff]  ;;  %v9730_v14 = vld [vmem:[#allocation68_spill] sm:$0xff] }
 0x476   : > { %v8862_v1 = vpop.f32.mrb[44].mxu0  ;;  %v2924_v10 = vsel %vm2907_vm13, %v8806_v36, %v9725_v18  ;;  %v8890_v33 = vpop.permute.xlu1 %5655  ;;  %v3987_v44 = vadd.f32 %v4904_v24, %v8451_v19  ;;  %v4031_v26 = vmax.f32 %v3979_v38, 0.0  ;;  %v5533_v36 = vunpack.i.h.bf16 %v8555_v43  ;;  %v5754_v55 = vld [vmem:[#allocation2 + $0x150] sm:$0xff] }
 0x477   : > { %v3991_v41 = vpop.f32.mrb[45].mxu0  ;;  %v2925_v11 = vsel %vm2907_vm13, %v2892_v46, %v9726_v50  ;;  %v5532_v63 = vunpack.i.l.bf16 %v8555_v43  ;;  %v9728_v27 = vunpack.i.l.bf16 %v9727_v42  ;;  %v9729_v3 = vunpack.i.h.bf16 %v9727_v42 }
 0x478   : > { %v8888_v20 = vpop.f32.mrb[46].mxu0  ;;  %v3992_v0 = vadd.f32 %v8451_v19, %v3991_v41  ;;  %v5538_v46 = vunpack.i.h.bf16 %v8570_v34  ;;  %v5537_v9 = vunpack.i.l.bf16 %v8570_v34  ;;  %v9731_v16 = vunpack.i.l.bf16 %v9730_v14  ;;  %v8918_v17 = vpop.permute.xlu0 %5670  ;;  %4312 = vrot.lane.b32.xlu1 %v4031_v26, %s6142_s22 }
 0x479   : > { %v3994_v25 = vpop.f32.mrb[47].mxu0  ;;  %v2955_v56 = vsel %vm2940_vm14, %v2922_v45, %v9728_v27  ;;  %v2956_v24 = vsel %vm2940_vm14, %v2923_v58, %v9729_v3  ;;  %v9732_v39 = vunpack.i.h.bf16 %v9730_v14  ;;  %v2898_v6 = vsel %vm2874_vm12, %v8639_v32, %v5528_v57  ;;  %4314 = vrot.lane.b32.xlu0 %v4032_v12, %s6142_s22 }
 0x47a   : > { %v2957_v28 = vsel %vm2940_vm14, %v2924_v10, %v9731_v16  ;;  %v2897_v30 = vsel %vm2874_vm12, %v8633_v60, %v5527_v22  ;;  %v5498_v37 = vunpack.i.h.bf16 %v8520_v2  ;;  %v5497_v45 = vunpack.i.l.bf16 %v8520_v2  ;;  %v8920_v34 = vpop.permute.xlu1 %5675 }
 0x47b   : > { %v2958_v43 = vsel %vm2940_vm14, %v2925_v11, %v9732_v39  ;;  %v2980_v58 = vpack.c.bf16 %v2956_v24, %v2955_v56  ;;  %v4033_v38 = vmax.f32 %v3987_v44, 0.0  ;;  %v4034_v41 = vmax.f32 %v3992_v0, 0.0 }
 0x47c   : > { %v3995_v32 = vadd.f32 %v8451_v19, %v3994_v25  ;;  %v2930_v57 = vsel %vm2907_vm13, %v2897_v30, %v5532_v63  ;;  %v2931_v60 = vsel %vm2907_vm13, %v2898_v6, %v5533_v36  ;;  %v5542_v22 = vunpack.i.l.bf16 %v8588_v51  ;;  %v8948_v25 = vpop.permute.xlu0 %5685  ;;  %v1427_v6 = vld [vmem:[#allocation2 + $0x168] sm:$0xff] }
 0x47d   : > { %v2981_v2 = vpack.c.bf16 %v2958_v43, %v2957_v28  ;;  %v9733_v18 = vunpack.i.l.bf16 %v8383_v61  ;;  %v8932_v50 = vsel %vm2940_vm14, %v2930_v57, %v5537_v9  ;;  %v8935_v11 = vsel %vm2940_vm14, %v2931_v60, %v5538_v46  ;;  %4856 = vmatmul.mubr.msk.bf16.gmra.mrb[28].mxu1 %vm3051_vm15, %v2980_v58  ;;  %4316 = vrot.lane.b32.xlu1 %v4033_v38, %s6142_s22  ;;  %v1428_v58 = vld [vmem:[#allocation2 + $0x170] sm:$0xff] }
 0x47e   : > { %v5543_v19 = vunpack.i.h.bf16 %v8588_v51  ;;  %v9734_v44 = vunpack.i.h.bf16 %v8421_v54  ;;  %v9735_v61 = vunpack.i.l.bf16 %v8331_v29  ;;  %v2983_v51 = vpack.c.bf16 %v8696_v5, %v8688_v40  ;;  %v8959_v63 = vpop.permute.xlu1 %5680  ;;  %4318 = vrot.lane.b32.xlu0 %v4034_v41, %s6142_s22 }
 0x47f   : > { %v2738_v10 = vsel %vm1364_vm6, %v5754_v55, %v9733_v18  ;;  %4859 = vmatprep.mubr.msk.bf16.mxu1 %vm3051_vm15, %v2981_v2  ;;  %v2800_v36 = vsel %vm2775_vm9, %v8532_v48, %v5497_v45  ;;  %v2801_v54 = vsel %vm2775_vm9, %v8535_v35, %v5498_v37  ;;  %v5653_v40 = vunpack.i.h.bf16 %v8826_v21 }
 0x480   : > { %v2771_v12 = vsel %vm2742_vm8, %v2738_v10, %v5432_v31  ;;  %v2772_v26 = vsel %vm2742_vm8, %v8725_v8, %v9734_v44  ;;  %v2802_v0 = vsel %vm2775_vm9, %v2769_v52, %v9735_v61  ;;  %v9736_v31 = vunpack.i.h.bf16 %v8331_v29 }
 0x481   : > { %v4035_v52 = vmax.f32 %v3995_v32, 0.0  ;;  %v2833_v42 = vsel %vm2808_vm10, %v2800_v36, %v5542_v22  ;;  %v5652_v48 = vunpack.i.l.bf16 %v8826_v21  ;;  %v2984_v35 = vpack.c.bf16 %v8935_v11, %v8932_v50  ;;  %v8976_v21 = vpop.permute.xlu0 %5695 }
 0x482   : > { %v2803_v8 = vsel %vm2775_vm9, %v2770_v13, %v9736_v31  ;;  %v2834_v29 = vsel %vm2808_vm10, %v2801_v54, %v5543_v19  ;;  %v5563_v5 = vunpack.i.h.bf16 %v8605_v15  ;;  %v5663_v13 = vunpack.i.h.bf16 %v8842_v47  ;;  %v8982_v39 = vpop.permute.xlu1 %5690 }
 0x483   : > { %v5662_v27 = vunpack.i.l.bf16 %v8842_v47  ;;  %v5598_v56 = vunpack.i.h.bf16 %v8719_v4  ;;  %v5597_v3 = vunpack.i.l.bf16 %v8719_v4  ;;  %v5668_v24 = vunpack.i.h.bf16 %v8879_v53  ;;  %4320 = vrot.lane.b32.xlu1 %v4035_v52, %s6142_s22 }
 0x484   : > { %v5667_v46 = vunpack.i.l.bf16 %v8879_v53  ;;  %v5618_v9 = vunpack.i.h.bf16 %v8769_v62  ;;  %v5617_v14 = vunpack.i.l.bf16 %v8769_v62  ;;  %v5673_v16 = vunpack.i.h.bf16 %v8918_v17 }
 0x485   : > { %v5672_v28 = vunpack.i.l.bf16 %v8918_v17  ;;  %v5608_v4 = vunpack.i.h.bf16 %v8776_v23  ;;  %v5607_v47 = vunpack.i.l.bf16 %v8776_v23  ;;  %v2866_v53 = vsel %vm2841_vm11, %v2833_v42, %v5652_v48 }
 0x486   : > { %v2867_v43 = vsel %vm2841_vm11, %v2834_v29, %v5653_v40  ;;  %v5643_v30 = vunpack.i.h.bf16 %v8848_v49  ;;  %v5642_v62 = vunpack.i.l.bf16 %v8848_v49  ;;  %v2899_v37 = vsel %vm2874_vm12, %v2866_v53, %v5662_v27  ;;  %v5721_v49 = vpop.permute.xlu0 %5720  ;;  %v5701_v22 = vpop.permute.xlu1 %5700 }
 0x487   : > { %v2900_v45 = vsel %vm2874_vm12, %v2867_v43, %v5663_v13  ;;  %v9737_v17 = vpack.c.bf16 %v8620_v59, %v8617_v7  ;;  %v2740_v23 = vsel %vm1364_vm6, %v1427_v6, %v5597_v3  ;;  %v5657_v38 = vunpack.i.l.bf16 %v8890_v33 }
 0x488   : > { %v2932_v41 = vsel %vm2907_vm13, %v2899_v37, %v5667_v46  ;;  %v2933_v32 = vsel %vm2907_vm13, %v2900_v45, %v5668_v24  ;;  %v2741_v57 = vsel %vm1364_vm6, %v1428_v58, %v5598_v56  ;;  %v2804_v60 = vsel %vm2775_vm9, %v2771_v12, %v5617_v14 }
 0x489   : > { %4860 = vmatmul.mubr.msk.bf16.gmra.mrb[32].mxu1 %vm3051_vm15, %v9737_v17  ;;  %v2965_v7 = vsel %vm2940_vm14, %v2932_v41, %v5672_v28  ;;  %v2966_v59 = vsel %vm2940_vm14, %v2933_v32, %v5673_v16  ;;  %v2773_v2 = vsel %vm2742_vm8, %v2740_v23, %v5607_v47  ;;  %v2805_v55 = vsel %vm2775_vm9, %v2772_v26, %v5618_v9 }
 0x48a   : > { %4863 = vmatprep.mubr.msk.bf16.mxu1 %vm3051_vm15, %v2983_v51  ;;  %v5723_v18 = vunpack.i.h.bf16 %v5721_v49  ;;  %v5722_v10 = vunpack.i.l.bf16 %v5721_v49  ;;  %v2774_v19 = vsel %vm2742_vm8, %v2741_v57, %v5608_v4  ;;  %v2836_v44 = vsel %vm2808_vm10, %v2803_v8, %v5643_v30  ;;  %v5726_v52 = vpop.permute.xlu0 %5725  ;;  %v5706_v40 = vpop.permute.xlu1 %5705 }
 0x48b   : > { %v2835_v61 = vsel %vm2808_vm10, %v2802_v0, %v5642_v62  ;;  %v5658_v51 = vunpack.i.h.bf16 %v8890_v33  ;;  %v2985_v36 = vpack.c.bf16 %v2966_v59, %v2965_v7  ;;  %v5688_v54 = vunpack.i.h.bf16 %v8948_v25 }
 0x48c   : > { %v2868_v12 = vsel %vm2841_vm11, %v2835_v61, %v5657_v38  ;;  %v5687_v31 = vunpack.i.l.bf16 %v8948_v25  ;;  %v5698_v26 = vunpack.i.h.bf16 %v8976_v21  ;;  %v5697_v42 = vunpack.i.l.bf16 %v8976_v21 }
 0x48d   : > { %v5728_v48 = vunpack.i.h.bf16 %v5726_v52  ;;  %v5727_v29 = vunpack.i.l.bf16 %v5726_v52  ;;  %v5703_v8 = vunpack.i.h.bf16 %v5701_v22  ;;  %v5702_v13 = vunpack.i.l.bf16 %v5701_v22 }
 0x48e   : > { %v2837_v0 = vsel %vm2808_vm10, %v2804_v60, %v5722_v10  ;;  %v2838_v33 = vsel %vm2808_vm10, %v2805_v55, %v5723_v18  ;;  %v5708_v27 = vunpack.i.h.bf16 %v5706_v40  ;;  %v5707_v56 = vunpack.i.l.bf16 %v5706_v40  ;;  %v5731_v14 = vpop.permute.xlu0 %5730  ;;  %v5711_v16 = vpop.permute.xlu1 %5710 }
 0x48f   : > { %v2870_v3 = vsel %vm2841_vm11, %v2837_v0, %v5727_v29  ;;  %v2871_v25 = vsel %vm2841_vm11, %v2838_v33, %v5728_v48  ;;  %v2869_v24 = vsel %vm2841_vm11, %v2836_v44, %v5658_v51  ;;  %v5678_v46 = vunpack.i.h.bf16 %v8920_v34 }
 0x490   : > { %v2903_v21 = vsel %vm2874_vm12, %v2870_v3, %v5687_v31  ;;  %v2904_v9 = vsel %vm2874_vm12, %v2871_v25, %v5688_v54  ;;  %v5733_v28 = vunpack.i.h.bf16 %v5731_v14  ;;  %v5732_v4 = vunpack.i.l.bf16 %v5731_v14  ;;  %v9063_v31 = vld [vmem:[#allocation15] ss:$0 sm:$0xff] }
 0x491   : > { %4864 = vmatmul.mubr.msk.bf16.gmra.mrb[36].mxu1 %vm3051_vm15, %v2984_v35  ;;  %v2936_v47 = vsel %vm2907_vm13, %v2903_v21, %v5697_v42  ;;  %v2937_v50 = vsel %vm2907_vm13, %v2904_v9, %v5698_v26  ;;  %v2901_v11 = vsel %vm2874_vm12, %v2868_v12, %v5702_v13  ;;  %v2902_v35 = vsel %vm2874_vm12, %v2869_v24, %v5703_v8 }
 0x492   : > { %4867 = vmatprep.mubr.msk.bf16.mxu1 %vm3051_vm15, %v2985_v36  ;;  %v5713_v53 = vunpack.i.h.bf16 %v5711_v16  ;;  %v5712_v43 = vunpack.i.l.bf16 %v5711_v16  ;;  %v2934_v6 = vsel %vm2907_vm13, %v2901_v11, %v5707_v56  ;;  %v2935_v30 = vsel %vm2907_vm13, %v2902_v35, %v5708_v27  ;;  %v5716_v57 = vpop.permute.xlu1 %5715 }
 0x493   : > { %v2969_v62 = vsel %vm2940_vm14, %v2936_v47, %v5732_v4  ;;  %v2970_v37 = vsel %vm2940_vm14, %v2937_v50, %v5733_v28  ;;  %v5677_v45 = vunpack.i.l.bf16 %v8920_v34  ;;  %v5562_v38 = vunpack.i.l.bf16 %v8605_v15 }
 0x494   : > { %v2967_v17 = vsel %vm2940_vm14, %v2934_v6, %v5712_v43  ;;  %v2968_v58 = vsel %vm2940_vm14, %v2935_v30, %v5713_v53  ;;  %v2987_v23 = vpack.c.bf16 %v2970_v37, %v2969_v62  ;;  %v5683_v41 = vunpack.i.h.bf16 %v8959_v63 }
 0x495   : > { %v5682_v32 = vunpack.i.l.bf16 %v8959_v63  ;;  %v2986_v49 = vpack.c.bf16 %v2968_v58, %v2967_v17  ;;  %v5693_v60 = vunpack.i.h.bf16 %v8982_v39  ;;  %v5692_v7 = vunpack.i.l.bf16 %v8982_v39 }
 0x496   : > { %v2806_v59 = vsel %vm2775_vm9, %v2773_v2, %v5562_v38  ;;  %v2807_v34 = vsel %vm2775_vm9, %v2774_v19, %v5563_v5  ;;  %v5718_v22 = vunpack.i.h.bf16 %v5716_v57  ;;  %v5717_v55 = vunpack.i.l.bf16 %v5716_v57  ;;  %v5736_v44 = vpop.permute.xlu1 %5735 }
 0x497   : > { %v2839_v18 = vsel %vm2808_vm10, %v2806_v59, %v5677_v45  ;;  %v2840_v63 = vsel %vm2808_vm10, %v2807_v34, %v5678_v46  ;;  %v5738_v5 = vunpack.i.h.bf16 %v5736_v44  ;;  %v5737_v19 = vunpack.i.l.bf16 %v5736_v44 }
 0x498   : > { %v2872_v10 = vsel %vm2841_vm11, %v2839_v18, %v5682_v32  ;;  %v2873_v39 = vsel %vm2841_vm11, %v2840_v63, %v5683_v41 }
 0x499   : > { %4868 = vmatmul.mubr.msk.bf16.gmra.mrb[40].mxu1 %vm3051_vm15, %v2986_v49  ;;  %v2905_v2 = vsel %vm2874_vm12, %v2872_v10, %v5692_v7  ;;  %v2906_v15 = vsel %vm2874_vm12, %v2873_v39, %v5693_v60 }
 0x49a   : > { %4871 = vmatprep.mubr.msk.bf16.mxu1 %vm3051_vm15, %v2987_v23  ;;  %v2938_v61 = vsel %vm2907_vm13, %v2905_v2, %v5717_v55  ;;  %v2939_v51 = vsel %vm2907_vm13, %v2906_v15, %v5718_v22 }
 0x49b   : > { %v2971_v12 = vsel %vm2940_vm14, %v2938_v61, %v5737_v19  ;;  %v2972_v36 = vsel %vm2940_vm14, %v2939_v51, %v5738_v5  ;;  %v9073_v3 = vpop.permute.xlu0 %4262 }
 0x49c   : > { %v2988_v54 = vpack.c.bf16 %v2972_v36, %v2971_v12  ;;  %v9075_v25 = vpop.permute.xlu1 %4264 }
 0x49f   : > { %v4267_v24 = vpop.permute.xlu0 %4266 }
 0x4a0   : > { %v9077_v46 = vpop.permute.xlu1 %4268 }
 0x4a1   : > { %4872 = vmatmul.mubr.msk.bf16.gmra.mrb[44].mxu1 %vm3051_vm15, %v2988_v54 }
 0x4b1   : > { %v9079_v21 = vpop.permute.xlu0 %4270 }
 0x4b3   : > { %v9081_v9 = vpop.permute.xlu1 %4272 }
 0x4b5   : > { %v9083_v14 = vpop.permute.xlu0 %4274 }
 0x4b7   : > { %v9085_v16 = vpop.permute.xlu1 %4276 }
 0x4b9   : > { %v9087_v28 = vpop.permute.xlu0 %4278 }
 0x4bb   : > { %v9089_v4 = vpop.permute.xlu1 %4280 }
 0x4bd   : > { %v9094_v62 = vpop.permute.xlu0 %4282 }
 0x4bf   : > { %v9098_v17 = vpop.permute.xlu1 %4284 }
 0x4c3   : > { %v9102_v38 = vpop.permute.xlu0 %4286 }
 0x4c5   : > { %v9105_v41 = vpop.permute.xlu1 %4288 }
 0x4c7   : > { %v9107_v32 = vpop.permute.xlu0 %4290 }
 0x4c9   : > { %v9109_v49 = vpop.permute.xlu1 %4292 }
 0x4cc   : > { %v9111_v57 = vpop.permute.xlu0 %4294 }
 0x4ce   : > { %v9113_v60 = vpop.permute.xlu1 %4296 }
 0x4d0   : > { %v9115_v7 = vpop.permute.xlu0 %4298 }
 0x4d2   : > { %v9117_v59 = vpop.permute.xlu1 %4300 }
 0x4d7   : > { %v4845_v52 = vpop.f32.mrb[16].mxu1 }
 0x4d8   : > { %v3147_v26 = vadd.f32 %v4845_v52, %v9063_v31  ;;  %v3138_v42 = vpop.f32.mrb[17].mxu1 }
 0x4d9   : > { %v4846_v40 = vpop.f32.mrb[18].mxu1  ;;  %v3139_v29 = vadd.f32 %v9063_v31, %v3138_v42 }
 0x4da   : > { %v3267_v48 = vmax.f32 %v3147_v26, 0.0  ;;  %v3150_v8 = vadd.f32 %v4846_v40, %v9063_v31  ;;  %v3141_v13 = vpop.f32.mrb[19].mxu1 }
 0x4db   : > { %v3142_v33 = vadd.f32 %v9063_v31, %v3141_v13  ;;  %v3265_v27 = vmax.f32 %v3139_v29, 0.0  ;;  %v9738_v29 = vld [vmem:[#allocation34_spill] sm:$0xff] }
 0x4dc   : > { %v3268_v0 = vmax.f32 %v3150_v8, 0.0  ;;  %4138 = vrot.lane.b32.xlu0 %v3267_v48, %s6150_s8  ;;  %v9119_v34 = vpop.permute.xlu0 %4302  ;;  %v9739_v8 = vmax.f32 %v9738_v29, 0.0 }
 0x4dd   : > { %v3266_v56 = vmax.f32 %v3142_v33, 0.0 }
 0x4de   : > { %4140 = vrot.lane.b32.xlu1 %v3268_v0, %s6150_s8 }
 0x4e0   : > { %4134 = vrot.lane.b32.xlu0 %v3265_v27, %s6150_s8  ;;  %v9123_v55 = vpop.permute.xlu0 %4306 }
 0x4e2   : > { %4136 = vrot.lane.b32.xlu1 %v3266_v56, %s6150_s8  ;;  %v9121_v22 = vpop.permute.xlu1 %4304 }
 0x4e6   : > { %v9125_v18 = vpop.permute.xlu1 %4308 }
 0x4e7   : > { %v9127_v63 = vpop.permute.xlu0 %4310 }
 0x4ea   : > { %v9129_v10 = vpop.permute.xlu1 %4312 }
 0x4eb   : > { %v9131_v39 = vpop.permute.xlu0 %4314 }
 0x4ef   : > { %v9133_v44 = vpop.permute.xlu1 %4316 }
 0x4f0   : > { %v9135_v15 = vpop.permute.xlu0 %4318 }
 0x4f5   : > { %v9138_v51 = vpop.permute.xlu1 %4320 }
 0x50f   : > { %v4849_v47 = vpop.f32.mrb[20].mxu1 }
 0x510   : > { %v3163_v50 = vadd.f32 %v4849_v47, %v9063_v31  ;;  %v3154_v11 = vpop.f32.mrb[21].mxu1 }
 0x511   : > { %v4850_v35 = vpop.f32.mrb[22].mxu1  ;;  %v3155_v43 = vadd.f32 %v9063_v31, %v3154_v11 }
 0x512   : > { %v3271_v53 = vmax.f32 %v3163_v50, 0.0  ;;  %v3166_v6 = vadd.f32 %v4850_v35, %v9063_v31  ;;  %v3157_v30 = vpop.f32.mrb[23].mxu1  ;;  %v9740_v50 = vld [vmem:[#allocation37_spill] sm:$0xff] }
 0x513   : > { %v3158_v45 = vadd.f32 %v9063_v31, %v3157_v30  ;;  %v3269_v58 = vmax.f32 %v3155_v43, 0.0  ;;  %v9741_v11 = vmax.f32 %v9740_v50, 0.0 }
 0x514   : > { %v3272_v37 = vmax.f32 %v3166_v6, 0.0  ;;  %4146 = vrot.lane.b32.xlu0 %v3271_v53, %s6150_s8 }
 0x515   : > { %v3270_v23 = vmax.f32 %v3158_v45, 0.0 }
 0x516   : > { %4148 = vrot.lane.b32.xlu1 %v3272_v37, %s6150_s8 }
 0x518   : > { %4142 = vrot.lane.b32.xlu0 %v3269_v58, %s6150_s8  ;;  %v9742_v58 = vld [vmem:[#allocation36_spill] sm:$0xff] }
 0x51a   : > { %4144 = vrot.lane.b32.xlu1 %v3270_v23, %s6150_s8  ;;  %v9743_v23 = vmax.f32 %v9742_v58, 0.0 }
 0x547   : > { %v4853_v2 = vpop.f32.mrb[24].mxu1 }
 0x548   : > { %v3179_v5 = vadd.f32 %v4853_v2, %v9063_v31  ;;  %v3170_v19 = vpop.f32.mrb[25].mxu1 }
 0x549   : > { %v4854_v61 = vpop.f32.mrb[26].mxu1  ;;  %v3171_v36 = vadd.f32 %v9063_v31, %v3170_v19 }
 0x54a   : > { %v3275_v12 = vmax.f32 %v3179_v5, 0.0  ;;  %v3182_v54 = vadd.f32 %v4854_v61, %v9063_v31  ;;  %v3173_v52 = vpop.f32.mrb[27].mxu1 }
 0x54b   : > { %v3174_v42 = vadd.f32 %v9063_v31, %v3173_v52  ;;  %v3273_v48 = vmax.f32 %v3171_v36, 0.0  ;;  %v9744_v36 = vld [vmem:[#allocation40_spill] sm:$0xff] }
 0x54c   : > { %v3276_v26 = vmax.f32 %v3182_v54, 0.0  ;;  %4154 = vrot.lane.b32.xlu0 %v3275_v12, %s6150_s8  ;;  %v9745_v54 = vmax.f32 %v9744_v36, 0.0 }
 0x54d   : > { %v3274_v56 = vmax.f32 %v3174_v42, 0.0 }
 0x54e   : > { %v4139_v40 = vpop.permute.xlu0 %4138  ;;  %4156 = vrot.lane.b32.xlu1 %v3276_v26, %s6150_s8 }
 0x54f   : > { %v4361_v13 = vsel %vm4358_vm0, %v9739_v8, %v4139_v40 }
 0x550   : > { %v4393_v0 = vsel %vm2742_vm8, %v4361_v13, %v4267_v24  ;;  %v4857_v33 = vpop.f32.mrb[28].mxu1  ;;  %v4141_v27 = vpop.permute.xlu1 %4140  ;;  %4150 = vrot.lane.b32.xlu0 %v3273_v48, %s6150_s8 }
 0x551   : > { %4426 = vst.msk [vmem:[%s6728_s16 + $0x10] sm:$0xff] %vm4423_vm1, %v4393_v0  ;;  %v3195_v47 = vadd.f32 %v4857_v33, %v9063_v31  ;;  %v4362_v35 = vsel %vm4358_vm0, %v9741_v11, %v4141_v27  ;;  %v3186_v53 = vpop.f32.mrb[29].mxu1 }
 0x552   : > { %v4394_v43 = vsel %vm2742_vm8, %v4362_v35, %v9077_v46  ;;  %v4858_v6 = vpop.f32.mrb[30].mxu1  ;;  %v4135_v24 = vpop.permute.xlu0 %4134  ;;  %v3187_v37 = vadd.f32 %v9063_v31, %v3186_v53  ;;  %4152 = vrot.lane.b32.xlu1 %v3274_v56, %s6150_s8 }
 0x553   : > { %v3279_v30 = vmax.f32 %v3195_v47, 0.0  ;;  %4427 = vst.msk [vmem:[%s6728_s16 + $0x18] sm:$0xff] %vm4423_vm1, %v4394_v43  ;;  %v3198_v45 = vadd.f32 %v4858_v6, %v9063_v31  ;;  %v4359_v2 = vsel %vm4358_vm0, %v9743_v23, %v4135_v24  ;;  %v3189_v5 = vpop.f32.mrb[31].mxu1 }
 0x554   : > { %v4391_v46 = vsel %vm2742_vm8, %v4359_v2, %v9073_v3  ;;  %v4137_v19 = vpop.permute.xlu1 %4136  ;;  %v3190_v12 = vadd.f32 %v9063_v31, %v3189_v5  ;;  %v3277_v42 = vmax.f32 %v3187_v37, 0.0 }
 0x555   : > { %v3280_v61 = vmax.f32 %v3198_v45, 0.0  ;;  %4424 = vst.msk [vmem:[%s6728_s16] sm:$0xff] %vm4423_vm1, %v4391_v46  ;;  %v4360_v52 = vsel %vm4358_vm0, %v9745_v54, %v4137_v19  ;;  %4162 = vrot.lane.b32.xlu0 %v3279_v30, %s6150_s8 }
 0x556   : > { %v4392_v26 = vsel %vm2742_vm8, %v4360_v52, %v9075_v25  ;;  %v3278_v40 = vmax.f32 %v3190_v12, 0.0 }
 0x557   : > { %4425 = vst.msk [vmem:[%s6728_s16 + $0x8] sm:$0xff] %vm4423_vm1, %v4392_v26  ;;  %4164 = vrot.lane.b32.xlu1 %v3280_v61, %s6150_s8 }
 0x559   : > { %4158 = vrot.lane.b32.xlu0 %v3277_v42, %s6150_s8 }
 0x55b   : > { %4160 = vrot.lane.b32.xlu1 %v3278_v40, %s6150_s8 }
 0x55c   : > { %v4861_v3 = vpop.f32.mrb[32].mxu1 }
 0x55d   : > { %v3211_v48 = vadd.f32 %v4861_v3, %v9063_v31  ;;  %v3202_v29 = vpop.f32.mrb[33].mxu1 }
 0x55e   : > { %v4862_v8 = vpop.f32.mrb[34].mxu1  ;;  %v3203_v0 = vadd.f32 %v9063_v31, %v3202_v29 }
 0x55f   : > { %v3283_v13 = vmax.f32 %v3211_v48, 0.0  ;;  %v3214_v33 = vadd.f32 %v4862_v8, %v9063_v31  ;;  %v3205_v27 = vpop.f32.mrb[35].mxu1 }
 0x560   : > { %v3206_v56 = vadd.f32 %v9063_v31, %v3205_v27  ;;  %v3281_v47 = vmax.f32 %v3203_v0, 0.0 }
 0x561   : > { %v3284_v25 = vmax.f32 %v3214_v33, 0.0  ;;  %4170 = vrot.lane.b32.xlu0 %v3283_v13, %s6150_s8 }
 0x562   : > { %v3282_v11 = vmax.f32 %v3206_v56, 0.0 }
 0x563   : > { %4172 = vrot.lane.b32.xlu1 %v3284_v25, %s6150_s8 }
 0x564   : > { %v4865_v50 = vpop.f32.mrb[36].mxu1 }
 0x565   : > { %v3227_v35 = vadd.f32 %v4865_v50, %v9063_v31  ;;  %v3218_v53 = vpop.f32.mrb[37].mxu1  ;;  %4166 = vrot.lane.b32.xlu0 %v3281_v47, %s6150_s8  ;;  %v5755_v50 = vld [vmem:[#allocation18] ss:$0 sm:$0xff] }
 0x566   : > { %v4866_v43 = vpop.f32.mrb[38].mxu1  ;;  %v3219_v24 = vadd.f32 %v9063_v31, %v3218_v53  ;;  %v4003_v53 = vadd.f32 %v5755_v50, %v8888_v20 }
 0x567   : > { %v3287_v6 = vmax.f32 %v3227_v35, 0.0  ;;  %v3230_v30 = vadd.f32 %v4866_v43, %v9063_v31  ;;  %v3221_v37 = vpop.f32.mrb[39].mxu1  ;;  %4168 = vrot.lane.b32.xlu1 %v3282_v11, %s6150_s8  ;;  %v4000_v11 = vadd.f32 %v5755_v50, %v8862_v1  ;;  %v9760_v50 = vld [vmem:[#allocation55_spill] sm:$0xff] }
 0x568   : > { %v3222_v58 = vadd.f32 %v9063_v31, %v3221_v37  ;;  %v3285_v23 = vmax.f32 %v3219_v24, 0.0  ;;  %v9746_v24 = vld [vmem:[#allocation42_spill] sm:$0xff] }
 0x569   : > { %v3288_v45 = vmax.f32 %v3230_v30, 0.0  ;;  %4178 = vrot.lane.b32.xlu0 %v3287_v6, %s6150_s8  ;;  %v4036_v6 = vmax.f32 %v4000_v11, 0.0  ;;  %v9747_v30 = vmax.f32 %v9746_v24, 0.0  ;;  %v9761_v11 = vmax.f32 %v9760_v50, 0.0  ;;  %v9764_v24 = vld [vmem:[#allocation59_spill] sm:$0xff] }
 0x56a   : > { %v3286_v5 = vmax.f32 %v3222_v58, 0.0  ;;  %v9748_v58 = vld [vmem:[#allocation43_spill] sm:$0xff] }
 0x56b   : > { %4180 = vrot.lane.b32.xlu1 %v3288_v45, %s6150_s8 }
 0x56c   : > { %v4869_v2 = vpop.f32.mrb[40].mxu1 }
 0x56d   : > { %v3243_v46 = vadd.f32 %v4869_v2, %v9063_v31  ;;  %v3234_v19 = vpop.f32.mrb[41].mxu1  ;;  %4174 = vrot.lane.b32.xlu0 %v3285_v23, %s6150_s8  ;;  %v9749_v23 = vmax.f32 %v9748_v58, 0.0 }
 0x56e   : > { %v4870_v61 = vpop.f32.mrb[42].mxu1  ;;  %v3235_v36 = vadd.f32 %v9063_v31, %v3234_v19  ;;  %v9750_v19 = vld [vmem:[#allocation46_spill] sm:$0xff] }
 0x56f   : > { %v3291_v12 = vmax.f32 %v3243_v46, 0.0  ;;  %v3246_v54 = vadd.f32 %v4870_v61, %v9063_v31  ;;  %v3237_v52 = vpop.f32.mrb[43].mxu1  ;;  %4176 = vrot.lane.b32.xlu1 %v3286_v5, %s6150_s8  ;;  %v9751_v61 = vmax.f32 %v9750_v19, 0.0 }
 0x570   : > { %v3238_v42 = vadd.f32 %v9063_v31, %v3237_v52  ;;  %v3289_v3 = vmax.f32 %v3235_v36, 0.0 }
 0x571   : > { %v3292_v26 = vmax.f32 %v3246_v54, 0.0  ;;  %4186 = vrot.lane.b32.xlu0 %v3291_v12, %s6150_s8  ;;  %v9752_v54 = vld [vmem:[#allocation47_spill] sm:$0xff] }
 0x572   : > { %v3290_v48 = vmax.f32 %v3238_v42, 0.0  ;;  %v9753_v52 = vmax.f32 %v9752_v54, 0.0 }
 0x573   : > { %4188 = vrot.lane.b32.xlu1 %v3292_v26, %s6150_s8 }
 0x574   : > { %v4873_v40 = vpop.f32.mrb[44].mxu1 }
 0x575   : > { %v3259_v29 = vadd.f32 %v4873_v40, %v9063_v31  ;;  %v3250_v8 = vpop.f32.mrb[45].mxu1  ;;  %4182 = vrot.lane.b32.xlu0 %v3289_v3, %s6150_s8  ;;  %v9754_v3 = vld [vmem:[#allocation50_spill] sm:$0xff] }
 0x576   : > { %v4874_v13 = vpop.f32.mrb[46].mxu1  ;;  %v3251_v33 = vadd.f32 %v9063_v31, %v3250_v8  ;;  %v9755_v40 = vmax.f32 %v9754_v3, 0.0  ;;  %v9756_v8 = vld [vmem:[#allocation51_spill] sm:$0xff]  ;;  %v9774_v3 = vld [vmem:[#allocation38_spill] sm:$0xff] }
 0x577   : > { %v3295_v0 = vmax.f32 %v3259_v29, 0.0  ;;  %v3262_v27 = vadd.f32 %v4874_v13, %v9063_v31  ;;  %v3253_v25 = vpop.f32.mrb[47].mxu1  ;;  %4184 = vrot.lane.b32.xlu1 %v3290_v48, %s6150_s8  ;;  %v9757_v13 = vmax.f32 %v9756_v8, 0.0 }
 0x578   : > { %v3254_v47 = vadd.f32 %v9063_v31, %v3253_v25  ;;  %v3293_v35 = vmax.f32 %v3251_v33, 0.0  ;;  %v4037_v31 = vmax.f32 %v4003_v53, 0.0 }
 0x579   : > { %v3296_v56 = vmax.f32 %v3262_v27, 0.0  ;;  %4194 = vrot.lane.b32.xlu0 %v3295_v0, %s6150_s8  ;;  %v9758_v27 = vld [vmem:[#allocation54_spill] sm:$0xff] }
 0x57a   : > { %v3294_v43 = vmax.f32 %v3254_v47, 0.0  ;;  %v9759_v25 = vmax.f32 %v9758_v27, 0.0 }
 0x57b   : > { %4196 = vrot.lane.b32.xlu1 %v3296_v56, %s6150_s8 }
 0x57d   : > { %4190 = vrot.lane.b32.xlu0 %v3293_v35, %s6150_s8 }
 0x57f   : > { %4192 = vrot.lane.b32.xlu1 %v3294_v43, %s6150_s8  ;;  %v9762_v43 = vld [vmem:[#allocation58_spill] sm:$0xff] }
 0x581   : > { %4322 = vrot.lane.b32.xlu0 %v4036_v6, %s6142_s22  ;;  %v9763_v6 = vmax.f32 %v9762_v43, 0.0  ;;  %v9784_v43 = vld [vmem:[#allocation49_spill] sm:$0xff] }
 0x583   : > { %4324 = vrot.lane.b32.xlu1 %v4037_v31, %s6142_s22  ;;  %s4735_s22 = sshll.u32 %s4469_s18, 7 }
 0x584   : > { %s9417_s17 = scalar_lea.hbm %s9803_s6, %s4735_s22 }
 0x586   : > { %v4147_v1 = vpop.permute.xlu0 %4146 }
 0x587   : > { %v4365_v37 = vsel %vm4358_vm0, %v9747_v30, %v4147_v1  ;;  %v9765_v30 = vmax.f32 %v9764_v24, 0.0 }
 0x588   : > { %v4397_v20 = vsel %vm2742_vm8, %v4365_v37, %v9083_v14  ;;  %v4149_v45 = vpop.permute.xlu1 %4148 }
 0x589   : > { %4430 = vst.msk [vmem:[%s6728_s16 + $0x30] sm:$0xff] %vm4423_vm1, %v4397_v20  ;;  %v4366_v2 = vsel %vm4358_vm0, %v9749_v23, %v4149_v45  ;;  %v9766_v45 = vld [vmem:[#allocation62_spill] sm:$0xff] }
 0x58a   : > { %v4398_v5 = vsel %vm2742_vm8, %v4366_v2, %v9085_v16  ;;  %v4143_v46 = vpop.permute.xlu0 %4142  ;;  %v9767_v58 = vmax.f32 %v9766_v45, 0.0 }
 0x58b   : > { %4431 = vst.msk [vmem:[%s6728_s16 + $0x38] sm:$0xff] %vm4423_vm1, %v4398_v5  ;;  %v4363_v12 = vsel %vm4358_vm0, %v9751_v61, %v4143_v46  ;;  %v9768_v5 = vld [vmem:[#allocation63_spill] sm:$0xff] }
 0x58c   : > { %v4395_v14 = vsel %vm2742_vm8, %v4363_v12, %v9079_v21  ;;  %v4145_v36 = vpop.permute.xlu1 %4144  ;;  %v9769_v46 = vmax.f32 %v9768_v5, 0.0  ;;  %v9770_v12 = vld [vmem:[#allocation35_spill] sm:$0xff] }
 0x58d   : > { %4428 = vst.msk [vmem:[%s6728_s16 + $0x20] sm:$0xff] %vm4423_vm1, %v4395_v14  ;;  %v4364_v26 = vsel %vm4358_vm0, %v9753_v52, %v4145_v36  ;;  %v9771_v14 = vmax.f32 %v9770_v12, 0.0  ;;  %v9772_v52 = vld [vmem:[#allocation39_spill] sm:$0xff] }
 0x58e   : > { %v4396_v16 = vsel %vm2742_vm8, %v4364_v26, %v9081_v9  ;;  %v9773_v26 = vmax.f32 %v9772_v52, 0.0 }
 0x58f   : > { %4429 = vst.msk [vmem:[%s6728_s16 + $0x28] sm:$0xff] %vm4423_vm1, %v4396_v16 }
 0x5be   : > { %v4155_v42 = vpop.permute.xlu0 %4154 }
 0x5bf   : > { %v4369_v48 = vsel %vm4358_vm0, %v9755_v40, %v4155_v42  ;;  %v9775_v40 = vmax.f32 %v9774_v3, 0.0 }
 0x5c0   : > { %v4401_v21 = vsel %vm2742_vm8, %v4369_v48, %v9094_v62  ;;  %v4157_v29 = vpop.permute.xlu1 %4156 }
 0x5c1   : > { %4434 = vst.msk [vmem:[%s6728_s16 + $0x50] sm:$0xff] %vm4423_vm1, %v4401_v21  ;;  %v4370_v0 = vsel %vm4358_vm0, %v9757_v13, %v4157_v29  ;;  %v9776_v29 = vld [vmem:[#allocation41_spill] sm:$0xff] }
 0x5c2   : > { %v4402_v9 = vsel %vm2742_vm8, %v4370_v0, %v9098_v17  ;;  %v4151_v33 = vpop.permute.xlu0 %4150  ;;  %v9777_v8 = vmax.f32 %v9776_v29, 0.0 }
 0x5c3   : > { %4435 = vst.msk [vmem:[%s6728_s16 + $0x58] sm:$0xff] %vm4423_vm1, %v4402_v9  ;;  %v4367_v56 = vsel %vm4358_vm0, %v9759_v25, %v4151_v33  ;;  %v9778_v9 = vld [vmem:[#allocation44_spill] sm:$0xff] }
 0x5c4   : > { %v4399_v62 = vsel %vm2742_vm8, %v4367_v56, %v9087_v28  ;;  %v4153_v47 = vpop.permute.xlu1 %4152  ;;  %v9779_v33 = vmax.f32 %v9778_v9, 0.0  ;;  %v9780_v56 = vld [vmem:[#allocation45_spill] sm:$0xff] }
 0x5c5   : > { %4432 = vst.msk [vmem:[%s6728_s16 + $0x40] sm:$0xff] %vm4423_vm1, %v4399_v62  ;;  %v4368_v35 = vsel %vm4358_vm0, %v9761_v11, %v4153_v47  ;;  %v9781_v62 = vmax.f32 %v9780_v56, 0.0  ;;  %v9782_v11 = vld [vmem:[#allocation48_spill] sm:$0xff] }
 0x5c6   : > { %v4400_v17 = vsel %vm2742_vm8, %v4368_v35, %v9089_v4  ;;  %v9783_v35 = vmax.f32 %v9782_v11, 0.0 }
 0x5c7   : > { %v4163_v53 = vpop.permute.xlu0 %4162  ;;  %4433 = vst.msk [vmem:[%s6728_s16 + $0x48] sm:$0xff] %vm4423_vm1, %v4400_v17 }
 0x5c8   : > { %v4373_v31 = vsel %vm4358_vm0, %v9763_v6, %v4163_v53  ;;  %v9785_v6 = vmax.f32 %v9784_v43, 0.0 }
 0x5c9   : > { %v4405_v28 = vsel %vm2742_vm8, %v4373_v31, %v9107_v32  ;;  %v4165_v1 = vpop.permute.xlu1 %4164 }
 0x5ca   : > { %4438 = vst.msk [vmem:[%s6728_s16 + $0x70] sm:$0xff] %vm4423_vm1, %v4405_v28  ;;  %v4374_v37 = vsel %vm4358_vm0, %v9765_v30, %v4165_v1  ;;  %v9786_v1 = vld [vmem:[#allocation52_spill] sm:$0xff] }
 0x5cb   : > { %v4406_v4 = vsel %vm2742_vm8, %v4374_v37, %v9109_v49  ;;  %v4159_v20 = vpop.permute.xlu0 %4158  ;;  %v9787_v24 = vmax.f32 %v9786_v1, 0.0 }
 0x5cc   : > { %4439 = vst.msk [vmem:[%s6728_s16 + $0x78] sm:$0xff] %vm4423_vm1, %v4406_v4  ;;  %v4371_v23 = vsel %vm4358_vm0, %v9767_v58, %v4159_v20  ;;  %v9789_v4 = vld [vmem:[#allocation53_spill] sm:$0xff] }
 0x5cd   : > { %v4403_v32 = vsel %vm2742_vm8, %v4371_v23, %v9102_v38  ;;  %v4161_v2 = vpop.permute.xlu1 %4160  ;;  %v9790_v20 = vmax.f32 %v9789_v4, 0.0  ;;  %v9791_v23 = vld [vmem:[#allocation56_spill] sm:$0xff] }
 0x5ce   : > { %4436 = vst.msk [vmem:[%s6728_s16 + $0x60] sm:$0xff] %vm4423_vm1, %v4403_v32  ;;  %v4372_v19 = vsel %vm4358_vm0, %v9769_v46, %v4161_v2  ;;  %v9792_v32 = vmax.f32 %v9791_v23, 0.0  ;;  %v9793_v46 = vld [vmem:[#allocation57_spill] sm:$0xff] }
 0x5cf   : > { %v4404_v49 = vsel %vm2742_vm8, %v4372_v19, %v9105_v41  ;;  %v9794_v19 = vmax.f32 %v9793_v46, 0.0 }
 0x5d0   : > { %4437 = vst.msk [vmem:[%s6728_s16 + $0x68] sm:$0xff] %vm4423_vm1, %v4404_v49 }
 0x5d3   : > { %v4171_v61 = vpop.permute.xlu0 %4170 }
 0x5d4   : > { %v4377_v36 = vsel %vm4358_vm0, %v9771_v14, %v4171_v61 }
 0x5d5   : > { %v4409_v38 = vsel %vm2742_vm8, %v4377_v36, %v9115_v7  ;;  %v4173_v54 = vpop.permute.xlu1 %4172 }
 0x5d6   : > { %4442 = vst.msk [vmem:[%s6728_s16 + $0x90] sm:$0xff] %vm4423_vm1, %v4409_v38  ;;  %v4378_v16 = vsel %vm4358_vm0, %v9773_v26, %v4173_v54 }
 0x5d7   : > { %v4410_v41 = vsel %vm2742_vm8, %v4378_v16, %v9117_v59  ;;  %v4167_v42 = vpop.permute.xlu0 %4166 }
 0x5d8   : > { %4443 = vst.msk [vmem:[%s6728_s16 + $0x98] sm:$0xff] %vm4423_vm1, %v4410_v41  ;;  %v4375_v48 = vsel %vm4358_vm0, %v9775_v40, %v4167_v42  ;;  %v9799_v41 = vld [vmem:[#allocation60_spill] sm:$0xff] }
 0x5d9   : > { %v4407_v7 = vsel %vm2742_vm8, %v4375_v48, %v9111_v57  ;;  %v4169_v21 = vpop.permute.xlu1 %4168  ;;  %v9800_v42 = vmax.f32 %v9799_v41, 0.0 }
 0x5da   : > { %4440 = vst.msk [vmem:[%s6728_s16 + $0x80] sm:$0xff] %vm4423_vm1, %v4407_v7  ;;  %v4376_v13 = vsel %vm4358_vm0, %v9777_v8, %v4169_v21  ;;  %v9801_v7 = vld [vmem:[#allocation61_spill] sm:$0xff] }
 0x5db   : > { %v4408_v59 = vsel %vm2742_vm8, %v4376_v13, %v9113_v60  ;;  %v4179_v0 = vpop.permute.xlu0 %4178  ;;  %v9802_v21 = vmax.f32 %v9801_v7, 0.0 }
 0x5dc   : > { %4441 = vst.msk [vmem:[%s6728_s16 + $0x88] sm:$0xff] %vm4423_vm1, %v4408_v59  ;;  %v4381_v27 = vsel %vm4358_vm0, %v9779_v33, %v4179_v0 }
 0x5dd   : > { %v4413_v57 = vsel %vm2742_vm8, %v4381_v27, %v9123_v55  ;;  %v4181_v25 = vpop.permute.xlu1 %4180 }
 0x5de   : > { %4446 = vst.msk [vmem:[%s6728_s16 + $0xb0] sm:$0xff] %vm4423_vm1, %v4413_v57  ;;  %v4382_v47 = vsel %vm4358_vm0, %v9781_v62, %v4181_v25 }
 0x5df   : > { %v4414_v60 = vsel %vm2742_vm8, %v4382_v47, %v9125_v18  ;;  %v4175_v50 = vpop.permute.xlu0 %4174 }
 0x5e0   : > { %4447 = vst.msk [vmem:[%s6728_s16 + $0xb8] sm:$0xff] %vm4423_vm1, %v4414_v60  ;;  %v4379_v17 = vsel %vm4358_vm0, %v9783_v35, %v4175_v50 }
 0x5e1   : > { %v4411_v55 = vsel %vm2742_vm8, %v4379_v17, %v9119_v34  ;;  %v4177_v53 = vpop.permute.xlu1 %4176 }
 0x5e2   : > { %4444 = vst.msk [vmem:[%s6728_s16 + $0xa0] sm:$0xff] %vm4423_vm1, %v4411_v55  ;;  %v4380_v31 = vsel %vm4358_vm0, %v9785_v6, %v4177_v53 }
 0x5e3   : > { %v4412_v18 = vsel %vm2742_vm8, %v4380_v31, %v9121_v22  ;;  %v4187_v28 = vpop.permute.xlu0 %4186 }
 0x5e4   : > { %4445 = vst.msk [vmem:[%s6728_s16 + $0xa8] sm:$0xff] %vm4423_vm1, %v4412_v18  ;;  %v4385_v30 = vsel %vm4358_vm0, %v9787_v24, %v4187_v28 }
 0x5e5   : > { %v4417_v34 = vsel %vm2742_vm8, %v4385_v30, %v9131_v39  ;;  %v4189_v37 = vpop.permute.xlu1 %4188 }
 0x5e6   : > { %4450 = vst.msk [vmem:[%s6728_s16 + $0xd0] sm:$0xff] %vm4423_vm1, %v4417_v34  ;;  %v4386_v22 = vsel %vm4358_vm0, %v9790_v20, %v4189_v37 }
 0x5e7   : > { %v4418_v45 = vsel %vm2742_vm8, %v4386_v22, %v9133_v44  ;;  %v4183_v58 = vpop.permute.xlu0 %4182 }
 0x5e8   : > { %4451 = vst.msk [vmem:[%s6728_s16 + $0xd8] sm:$0xff] %vm4423_vm1, %v4418_v45  ;;  %v4383_v2 = vsel %vm4358_vm0, %v9792_v32, %v4183_v58 }
 0x5e9   : > { %v4415_v39 = vsel %vm2742_vm8, %v4383_v2, %v9127_v63  ;;  %v4185_v5 = vpop.permute.xlu1 %4184  ;;  %v9795_v63 = vld [vmem:[#allocation64_spill] sm:$0xff] }
 0x5ea   : > { %4448 = vst.msk [vmem:[%s6728_s16 + $0xc0] sm:$0xff] %vm4423_vm1, %v4415_v39  ;;  %v4384_v49 = vsel %vm4358_vm0, %v9794_v19, %v4185_v5  ;;  %v9796_v36 = vmax.f32 %v9795_v63, 0.0 }
 0x5eb   : > { %v4416_v44 = vsel %vm2742_vm8, %v4384_v49, %v9129_v10  ;;  %v4195_v61 = vpop.permute.xlu0 %4194  ;;  %v9797_v10 = vld [vmem:[#allocation65_spill] sm:$0xff] }
 0x5ec   : > { %4449 = vst.msk [vmem:[%s6728_s16 + $0xc8] sm:$0xff] %vm4423_vm1, %v4416_v44  ;;  %v9798_v26 = vmax.f32 %v9797_v10, 0.0  ;;  %v4389_v3 = vsel %vm4358_vm0, %v9800_v42, %v4195_v61 }
 0x5ed   : > { %v4197_v12 = vpop.permute.xlu1 %4196 }
 0x5ee   : > { %v4390_v29 = vsel %vm4358_vm0, %v9802_v21, %v4197_v12 }
 0x5ef   : > { %v4191_v14 = vpop.permute.xlu0 %4190 }
 0x5f0   : > { %v4387_v38 = vsel %vm4358_vm0, %v9796_v36, %v4191_v14 }
 0x5f1   : > { %v4419_v54 = vsel %vm2742_vm8, %v4387_v38, %v9135_v15  ;;  %v4193_v52 = vpop.permute.xlu1 %4192 }
 0x5f2   : > { %4452 = vst.msk [vmem:[%s6728_s16 + $0xe0] sm:$0xff] %vm4423_vm1, %v4419_v54  ;;  %v4388_v16 = vsel %vm4358_vm0, %v9798_v26, %v4193_v52 }
 0x5f3   : > { %v4420_v40 = vsel %vm2742_vm8, %v4388_v16, %v9138_v51  ;;  %v4323_v15 = vpop.permute.xlu0 %4322 }
 0x5f4   : > { %4453 = vst.msk [vmem:[%s6728_s16 + $0xe8] sm:$0xff] %vm4423_vm1, %v4420_v40  ;;  %v4421_v48 = vsel %vm2742_vm8, %v4389_v3, %v4323_v15 }
 0x5f5   : > { %4454 = vst.msk [vmem:[%s6728_s16 + $0xf0] sm:$0xff] %vm4423_vm1, %v4421_v48  ;;  %v4325_v8 = vpop.permute.xlu1 %4324 }
 0x5f6   : > { %v4422_v51 = vsel %vm2742_vm8, %v4390_v29, %v4325_v8 }
 0x5f7   : > { %4455 = vst.msk [vmem:[%s6728_s16 + $0xf8] sm:$0xff] %vm4423_vm1, %v4422_v51 }
 0x5f8   : > { %5997 = shalt.err (!%p5994_p3)
}
 0x5f9   : > { %s5998_s16 = scalar_lea.hbm %s9417_s17, 4096  ;;  %s6002_s27 = scalar_lea.hbm %s9803_s6, 32768 }
 0x5fa   : > { %p5999_p6 = scmp.ne.s32.totalorder %s9417_s17, %s5998_s16  ;;  %p6003_p12 = scmp.lt.u32.totalorder %s9417_s17, %s9803_s6 }
 0x5fb   : > { %p6004_p0 = scmp.lt.u32.totalorder %s6002_s27, %s5998_s16  ;;  %p6006_p4 = scmp.lt.u32.totalorder %s5998_s16, %s9417_s17 }
 0x5fc   : > { %p6000_p10 = pnand %p5999_p6, %p9804_p7 }
 0x5fd   : > { %p6005_p8 = por %p6004_p0, %p6003_p12 }
 0x5fe   : > { %p6001_p2 = pneg %p6000_p10 }
 0x5ff   : > { %p6007_p1 = por %p6006_p4, %p6005_p8 }
 0x601   : > { %p6008_p13 = pnand %p6007_p1, %p6001_p2 }
 0x603   : > { %6011 = shalt.err (!%p6008_p13)
}
 0x604   : > { %s6152_s22 = smov 128  }
 0x605   : > { %4943 = dma.vmem_to_hbm [thread:$0]  (%p9804_p7), %s9407_s20, 4096, %s9417_s17, %s4457_s0, %s6152_s22, %s6152_s22, %s6150_s8  }
 0x606 PF: > { %p4988_p9 = scmp.ge.s32.totalorder %s6126_s15, 2  ;;  %s4487_s26 = sand.u32 1, %s6098_s30  }
 0x607   : > { %p9805_p5 = scmp.ne.s32.totalorder %s9620_s12, 0  ;;  %s4488_s21 = scalar_lea.sflag [#allocation8], %s4487_s26 }
 0x609   : > { %p4972_p11 = pnand %p4988_p9, %p9805_p5 }
 0x60b   : > { %6081 = dma.done.wait (!%p4972_p11), %s4488_s21, 4096  }
 0x60c   : > { %6083 = vsyncadd (!%p4972_p11), %s4488_s21, 4294963200  ;;  %s30_s15 = sadd.s32 1, %s6126_s15   ;;  %s9806_s11 = sld [smem:[#allocation30_spill]] }
 0x60d   : > { %p27_p3 = scmp.ge.s32.totalorder %s30_s15, 10   ;;  %s9807_s23 = sld [smem:[#allocation32_spill]] }
 0x60e   : > { %s9808_s5 = sld [smem:[#allocation33_spill]]  ;;  %s9809_s27 = smov %s6090_s28 }
 0x60f   : > { %s9810_s28 = smov %s6094_s29  ;;  %s9811_s29 = smov %s6536_s13 }
 0x610   : > { %s9812_s30 = smov %s6102_s9  ;;  %s9813_s9 = smov %s6106_s10 }
 0x611   : > { %s9814_s10 = smov %s6450_s24  ;;  %s9815_s12 = smov %s6122_s14 }
 0x612   :  { %29 = sbr.rel (!%p27_p3) target bundleno = 24 (0x18), region = 142 }
 0x613   : > { %s9816_s13 = smov %s9807_s23 }
 0x614   : > { %s9817_s14 = smov %s9808_s5 }
 0x619   :  { %4493 = vsyncpa [#allocation7], 1 }
 0x61a   :  { %4495 = vsyncpa [#allocation7 + $0x1], 1 }
 0x61b   :  { %4496 = vsyncpa [#allocation10], 1 }
 0x61c   :  { %4498 = vsyncpa [#allocation10 + $0x1], 1 }
 0x61d   :  { %4499 = vsyncpa [#allocation13], 1 }
 0x61e   :  { %4500 = vsyncpa [#allocation16], 1 }
 0x61f   :  { %4501 = vsyncpa [#allocation19], 1 }
 0x620   :  { %4502 = vsyncpa [#allocation8], 1 }
 0x621   :  { %4504 = vsyncpa [#allocation8 + $0x1], 1 }

</bundles_post_ra>
